<compile_context>
chip_gen: v7x
topology: tpu7x:2x2x1
jax: 0.10.0
libtpu: 0.0.40
codegen_flags: <defaults>
</compile_context>

<pallas_src>
import jax
import jax.numpy as jnp
from jax import lax
from jax.experimental import pallas as pl
from jax.experimental.pallas import tpu as pltpu


# ----------------------------- small helpers --------------------------------

def _round_up(n, m):
    return (n + m - 1) // m * m


def _pad_to(a, shape):
    pads = [(0, t - s) for s, t in zip(a.shape, shape)]
    return jnp.pad(a, pads)


def extract_patches(x_nchw, patch_size):
    """(B, C, H, W) -> (B, num_patches, C*p*p), flattened in (c, ph, pw) order."""
    B, C, H, W = x_nchw.shape
    p = patch_size
    hp, wp = H // p, W // p
    x = x_nchw.reshape(B, C, hp, p, wp, p)
    x = jnp.transpose(x, (0, 2, 4, 1, 3, 5))  # (B, hp, wp, C, p, p)
    return x.reshape(B, hp * wp, C * p * p)


# ------------------------------- the kernel ----------------------------------

def make_mixer_kernel(*, real_p, real_d, has_fc):
    """One grid step = (one batch tile, one mixer block)."""
    inv_p = 1.0 / float(real_p)
    inv_d = 1.0 / float(real_d)
    sqrt_half = 0.7071067811865476

    def _gelu(v):
        # exact (erf-based) GELU, matching torch.nn.GELU() default
        return 0.5 * v * (1.0 + lax.erf(v * sqrt_half))

    def _layernorm(v, g, b, cmask, eps=1e-5):
        # masked LayerNorm over the (padded) last dim; divisor is the real D.
        mu = jnp.sum(v * cmask, axis=-1, keepdims=True) * inv_d
        d = (v - mu) * cmask
        var = jnp.sum(d * d, axis=-1, keepdims=True) * inv_d
        return d * lax.rsqrt(var + eps) * g + b

    def kernel(*refs):
        (patches_ref, emb_w, emb_b,
         ln1_g, ln1_b, tw1, tb1, tw2, tb2,
         ln2_g, ln2_b, cw1, cb1, cw2, cb2,
         lnf_g, lnf_b) = refs[:17]
        if has_fc:
            fc_w, fc_b = refs[17:19]
        out_ref, x_scr = refs[-2], refs[-1]

        k = pl.program_id(1)
        TB, Pp, Kp = patches_ref.shape
        Dp = x_scr.shape[-1]
        bf16 = jnp.bfloat16

        # mask of real hidden channels (padded lanes beyond real_d are ignored)
        cmask = (lax.broadcasted_iota(jnp.int32, (1, Dp), 1)
                 < real_d).astype(jnp.float32)

        # -------- patch embedding: only at the first block step --------
        @pl.when(k == 0)
        def _():
            pr = patches_ref[...].reshape(TB * Pp, Kp)              # bf16
            x0 = jnp.dot(pr, emb_w[...],
                         preferred_element_type=jnp.float32)
            x_scr[...] = x0 + emb_b[...]

        x = x_scr[...]                                              # (TB*Pp, Dp) f32

        # -------- token mixing (MLP across the patch axis) --------
        y = _layernorm(x, ln1_g[0], ln1_b[0], cmask)
        yt = jnp.transpose(y.reshape(TB, Pp, Dp), (0, 2, 1)).reshape(TB * Dp, Pp)
        h = jnp.dot(yt.astype(bf16), tw1[0],
                    preferred_element_type=jnp.float32) + tb1[0]
        h = _gelu(h)
        u = jnp.dot(h.astype(bf16), tw2[0],
                    preferred_element_type=jnp.float32) + tb2[0]
        ut = jnp.transpose(u.reshape(TB, Dp, Pp), (0, 2, 1)).reshape(TB * Pp, Dp)
        x = x + ut

        # -------- channel mixing (MLP across the hidden axis) --------
        y = _layernorm(x, ln2_g[0], ln2_b[0], cmask)
        h = jnp.dot(y.astype(bf16), cw1[0],
                    preferred_element_type=jnp.float32) + cb1[0]
        h = _gelu(h)
        u = jnp.dot(h.astype(bf16), cw2[0],
                    preferred_element_type=jnp.float32) + cb2[0]
        x = x + u
        x_scr[...] = x

        # -------- classification head: only after the last block --------
        @pl.when(k == pl.num_programs(1) - 1)
        def _():
            xf = _layernorm(x, lnf_g[...], lnf_b[...], cmask)
            rmask = (lax.broadcasted_iota(jnp.int32, (Pp, 1), 0)
                     < real_p).astype(jnp.float32)
            pooled = jnp.sum(xf.reshape(TB, Pp, Dp) * rmask, axis=1) * inv_p
            if has_fc:
                out_ref[...] = (jnp.dot(pooled.astype(bf16), fc_w[...],
                                        preferred_element_type=jnp.float32)
                                + fc_b[...])
            else:
                out_ref[...] = pooled

    return kernel


# ----------------------------- wrapper / glue --------------------------------

def mlp_mixer_forward(x_nchw, params, *, patch_size, num_blocks, num_classes,
                      batch_tile=8):
    B, C, H, W = x_nchw.shape
    p = patch_size
    P = (H // p) * (W // p)
    Cpp = C * p * p
    D = params["emb_w"].shape[1]
    d_tok = params["blocks"][0]["tok_w1"].shape[1]
    d_ch = params["blocks"][0]["ch_w1"].shape[1]

    # padded, TPU-friendly sizes: lane dims -> x128, patch axis -> x8
    Pp = _round_up(P, 8)
    Dp = _round_up(D, 128)
    Kp = _round_up(Cpp, 128)
    Tp = _round_up(d_tok, 128)
    Chp = _round_up(d_ch, 128)
    out_dim = num_classes if num_classes else D
    Op = _round_up(out_dim, 128)

    TB = batch_tile
    Bp = _round_up(max(B, 1), TB)
    nbt = Bp // TB

    bf16, f32 = jnp.bfloat16, jnp.float32

    # patch features: bf16, zero-padded, batch padded to a multiple of TB
    patches = extract_patches(x_nchw, p).astype(bf16)
    patches = _pad_to(patches, (Bp, Pp, Kp))

    # constant (non per-block) weights
    emb_w = _pad_to(params["emb_w"].astype(bf16), (Kp, Dp))
    emb_b = _pad_to(params["emb_b"].astype(f32), (1, Dp))
    lnf_g = _pad_to(params["ln_g"].astype(f32), (1, Dp))
    lnf_b = _pad_to(params["ln_b"].astype(f32), (1, Dp))

    # per-block weights stacked along a leading num_blocks axis (streamed by grid)
    def stack(key, shape, dtype):
        return jnp.stack([_pad_to(blk[key].astype(dtype), shape)
                          for blk in params["blocks"]])

    stacked = [
        stack("ln1_g", (1, Dp), f32), stack("ln1_b", (1, Dp), f32),
        stack("tok_w1", (Pp, Tp), bf16), stack("tok_b1", (1, Tp), f32),
        stack("tok_w2", (Tp, Pp), bf16), stack("tok_b2", (1, Pp), f32),
        stack("ln2_g", (1, Dp), f32), stack("ln2_b", (1, Dp), f32),
        stack("ch_w1", (Dp, Chp), bf16), stack("ch_b1", (1, Chp), f32),
        stack("ch_w2", (Chp, Dp), bf16), stack("ch_b2", (1, Dp), f32),
    ]

    flat = [emb_w, emb_b] + stacked + [lnf_g, lnf_b]
    if num_classes:
        fc_w = _pad_to(params["fc_w"].astype(bf16), (Dp, Op))
        fc_b = _pad_to(params["fc_b"].astype(f32), (1, Op))
        flat += [fc_w, fc_b]

    def const_spec(a):
        return pl.BlockSpec(a.shape, lambda b, k, _n=a.ndim: (0,) * _n)

    def perblock_spec(a):
        return pl.BlockSpec((1,) + a.shape[1:], lambda b, k: (k, 0, 0))

    in_specs = [pl.BlockSpec((TB, Pp, Kp), lambda b, k: (b, 0, 0))]
    in_specs += [const_spec(emb_w), const_spec(emb_b)]
    in_specs += [perblock_spec(a) for a in stacked]
    in_specs += [const_spec(lnf_g), const_spec(lnf_b)]
    if num_classes:
        in_specs += [const_spec(fc_w), const_spec(fc_b)]

    # advisory cost estimate (helps XLA overlap surrounding ops)
    flops = (2 * Bp * Pp * Kp * Dp
             + num_blocks * 2 * Bp * (2 * Dp * Pp * Tp + 2 * Pp * Dp * Chp)
             + 2 * Bp * Dp * Op)
    transcendentals = num_blocks * Bp * (Dp * Tp + Pp * Chp)
    bytes_accessed = (int(patches.size) * 2 + Bp * Op * 4
                      + nbt * sum(int(a.size) * a.dtype.itemsize for a in flat))

    out = pl.pallas_call(
        make_mixer_kernel(real_p=P, real_d=D, has_fc=bool(num_classes)),
        out_shape=jax.ShapeDtypeStruct((Bp, Op), jnp.float32),
        grid_spec=pltpu.PrefetchScalarGridSpec(
            num_scalar_prefetch=0,
            grid=(nbt, num_blocks),
            in_specs=in_specs,
            out_specs=pl.BlockSpec((TB, Op), lambda b, k: (b, 0)),
            scratch_shapes=[pltpu.VMEM((TB * Pp, Dp), jnp.float32)],
        ),
        compiler_params=pltpu.CompilerParams(
            dimension_semantics=("parallel", "arbitrary"),
            vmem_limit_bytes=32 * 1024 * 1024),
        cost_estimate=pl.CostEstimate(flops=flops,
                                      transcendentals=transcendentals,
                                      bytes_accessed=bytes_accessed),
    )(patches, *flat)

    return out[:B, :out_dim]


# ----------------------------- parameter init --------------------------------

def init_params(key, *, in_channels, patch_size, d_hidden, num_patches,
                num_classes, num_blocks, d_tokens_mlp, d_channels_mlp):
    p = patch_size

    def lin(k, fan_in, fan_out):
        kw, kb = jax.random.split(k)
        w = jax.random.normal(kw, (fan_in, fan_out), jnp.float32) * 0.02
        b = jax.random.normal(kb, (1, fan_out), jnp.float32) * 0.01
        return w, b

    keys = jax.random.split(key, num_blocks + 2)
    # conv weight (d_hidden, C, p, p) flattened to (C*p*p, d_hidden)
    emb_w, emb_b = lin(keys[0], in_channels * p * p, d_hidden)

    blocks = []
    for i in range(num_blocks):
        k = keys[1 + i]
        tw1, tb1 = lin(jax.random.fold_in(k, 0), num_patches, d_tokens_mlp)
        tw2, tb2 = lin(jax.random.fold_in(k, 1), d_tokens_mlp, num_patches)
        cw1, cb1 = lin(jax.random.fold_in(k, 2), d_hidden, d_channels_mlp)
        cw2, cb2 = lin(jax.random.fold_in(k, 3), d_channels_mlp, d_hidden)
        blocks.append(dict(
            ln1_g=jnp.ones((1, d_hidden), jnp.float32),
            ln1_b=jnp.zeros((1, d_hidden), jnp.float32),
            tok_w1=tw1, tok_b1=tb1, tok_w2=tw2, tok_b2=tb2,
            ln2_g=jnp.ones((1, d_hidden), jnp.float32),
            ln2_b=jnp.zeros((1, d_hidden), jnp.float32),
            ch_w1=cw1, ch_b1=cb1, ch_w2=cw2, ch_b2=cb2))

    params = dict(emb_w=emb_w, emb_b=emb_b, blocks=blocks,
                  ln_g=jnp.ones((1, d_hidden), jnp.float32),
                  ln_b=jnp.zeros((1, d_hidden), jnp.float32))
    if num_classes:
        fc_w, fc_b = lin(keys[-1], d_hidden, num_classes)
        params.update(fc_w=fc_w, fc_b=fc_b)
    return params


# ----------------------------- pure-JAX reference ----------------------------

def _gelu_ref(x):
    return 0.5 * x * (1.0 + lax.erf(x * (1.0 / jnp.sqrt(2.0).astype(x.dtype)))) 


def _layernorm_ref(x, g, b, eps=1e-5):
    mu = jnp.mean(x, axis=-1, keepdims=True)
    var = jnp.mean((x - mu) ** 2, axis=-1, keepdims=True)
    return (x - mu) * lax.rsqrt(var + eps) * g + b


def _bf16w(w):
    # use the same bf16-rounded weight values as the kernel (f32 compute)
    return w.astype(jnp.bfloat16).astype(jnp.float32)


def reference_forward(x_nchw, params, *, patch_size, num_blocks, num_classes):
    patches = extract_patches(x_nchw, patch_size)
    x = patches @ _bf16w(params["emb_w"]) + params["emb_b"]
    for blk in params["blocks"]:
        y = _layernorm_ref(x, blk["ln1_g"], blk["ln1_b"])
        y = jnp.swapaxes(y, 1, 2)
        y = (_gelu_ref(y @ _bf16w(blk["tok_w1"]) + blk["tok_b1"])
             @ _bf16w(blk["tok_w2"]) + blk["tok_b2"])
        x = x + jnp.swapaxes(y, 1, 2)
        y = _layernorm_ref(x, blk["ln2_g"], blk["ln2_b"])
        y = (_gelu_ref(y @ _bf16w(blk["ch_w1"]) + blk["ch_b1"])
             @ _bf16w(blk["ch_w2"]) + blk["ch_b2"])
        x = x + y
    x = _layernorm_ref(x, params["ln_g"], params["ln_b"]).mean(axis=1)
    if num_classes:
        x = x @ _bf16w(params["fc_w"]) + params["fc_b"]
    return x


# ----------------------------------- main -------------------------------------

if __name__ == "__main__":
    B, C, H, W = 2, 3, 16, 16
    patch_size = 4
    d_hidden = 32
    num_classes = 10
    num_blocks = 2
    d_tokens_mlp = 16
    d_channels_mlp = 64
    num_patches = (H // patch_size) * (W // patch_size)

    key = jax.random.PRNGKey(0)
    kx, kp = jax.random.split(key)
    x = jax.random.normal(kx, (B, C, H, W), jnp.float32)
    params = init_params(kp, in_channels=C, patch_size=patch_size,
                         d_hidden=d_hidden, num_patches=num_patches,
                         num_classes=num_classes, num_blocks=num_blocks,
                         d_tokens_mlp=d_tokens_mlp,
                         d_channels_mlp=d_channels_mlp)

    out = mlp_mixer_forward(x, params, patch_size=patch_size,
                            num_blocks=num_blocks, num_classes=num_classes,
                            batch_tile=8)
    out = jax.block_until_ready(out)

    ref = reference_forward(x, params, patch_size=patch_size,
                            num_blocks=num_blocks, num_classes=num_classes)
    assert out.shape == (B, num_classes)
    # bf16 MXU matmuls vs f32 reference: relaxed (but tight-enough) tolerance
    assert jnp.allclose(out, ref, rtol=2e-2, atol=2e-2), (
        float(jnp.max(jnp.abs(out - ref))))

    print("KERNEL_OK")
</pallas_src>

<mosaic_0001>
module attributes {stable_mosaic.version = 11 : i64} {
  func.func @kernel(%arg0: i32, %arg1: i32, %arg2: memref<8x16x128xbf16, #tpu.memory_space<vmem>>, %arg3: memref<128x128xbf16, #tpu.memory_space<vmem>>, %arg4: memref<1x128xf32, #tpu.memory_space<vmem>>, %arg5: memref<1x1x128xf32, #tpu.memory_space<vmem>>, %arg6: memref<1x1x128xf32, #tpu.memory_space<vmem>>, %arg7: memref<1x16x128xbf16, #tpu.memory_space<vmem>>, %arg8: memref<1x1x128xf32, #tpu.memory_space<vmem>>, %arg9: memref<1x128x16xbf16, #tpu.memory_space<vmem>>, %arg10: memref<1x1x16xf32, #tpu.memory_space<vmem>>, %arg11: memref<1x1x128xf32, #tpu.memory_space<vmem>>, %arg12: memref<1x1x128xf32, #tpu.memory_space<vmem>>, %arg13: memref<1x128x128xbf16, #tpu.memory_space<vmem>>, %arg14: memref<1x1x128xf32, #tpu.memory_space<vmem>>, %arg15: memref<1x128x128xbf16, #tpu.memory_space<vmem>>, %arg16: memref<1x1x128xf32, #tpu.memory_space<vmem>>, %arg17: memref<1x128xf32, #tpu.memory_space<vmem>>, %arg18: memref<1x128xf32, #tpu.memory_space<vmem>>, %arg19: memref<128x128xbf16, #tpu.memory_space<vmem>>, %arg20: memref<1x128xf32, #tpu.memory_space<vmem>>, %arg21: memref<8x128xf32, #tpu.memory_space<vmem>>, %arg22: memref<128x128xf32, #tpu.memory_space<vmem>>) attributes {dimension_semantics = [#tpu.dimension_semantics<parallel>, #tpu.dimension_semantics<arbitrary>], iteration_bounds = array<i64: 1, 2>, scalar_prefetch = 0 : i64, scratch_operands = 1 : i64, tpu.core_type = #tpu.core_type<tc>, window_params = [{transform_indices = @transform_0, window_bounds = array<i64: 8, 16, 128>}, {pipeline_mode = #tpu.pipeline_mode<synchronous>, transform_indices = @transform_1, window_bounds = array<i64: 128, 128>}, {pipeline_mode = #tpu.pipeline_mode<synchronous>, transform_indices = @transform_2, window_bounds = array<i64: 1, 128>}, {transform_indices = @transform_3, window_bounds = array<i64: 1, 1, 128>}, {transform_indices = @transform_4, window_bounds = array<i64: 1, 1, 128>}, {transform_indices = @transform_5, window_bounds = array<i64: 1, 16, 128>}, {transform_indices = @transform_6, window_bounds = array<i64: 1, 1, 128>}, {transform_indices = @transform_7, window_bounds = array<i64: 1, 128, 16>}, {transform_indices = @transform_8, window_bounds = array<i64: 1, 1, 16>}, {transform_indices = @transform_9, window_bounds = array<i64: 1, 1, 128>}, {transform_indices = @transform_10, window_bounds = array<i64: 1, 1, 128>}, {transform_indices = @transform_11, window_bounds = array<i64: 1, 128, 128>}, {transform_indices = @transform_12, window_bounds = array<i64: 1, 1, 128>}, {transform_indices = @transform_13, window_bounds = array<i64: 1, 128, 128>}, {transform_indices = @transform_14, window_bounds = array<i64: 1, 1, 128>}, {pipeline_mode = #tpu.pipeline_mode<synchronous>, transform_indices = @transform_15, window_bounds = array<i64: 1, 128>}, {pipeline_mode = #tpu.pipeline_mode<synchronous>, transform_indices = @transform_16, window_bounds = array<i64: 1, 128>}, {pipeline_mode = #tpu.pipeline_mode<synchronous>, transform_indices = @transform_17, window_bounds = array<i64: 128, 128>}, {pipeline_mode = #tpu.pipeline_mode<synchronous>, transform_indices = @transform_18, window_bounds = array<i64: 1, 128>}, {transform_indices = @transform_19, window_bounds = array<i64: 8, 128>}]} {
    %0 = tpu.iota {dimensions = array<i32: 1>} : vector<1x128xi32>
    %c32_i32 = arith.constant 32 : i32
    %1 = vector.broadcast %c32_i32 : i32 to vector<1x128xi32>
    %2 = arith.cmpi slt, %0, %1 : vector<1x128xi32>
    %3 = arith.extui %2 : vector<1x128xi1> to vector<1x128xi32>
    %4 = arith.sitofp %3 : vector<1x128xi32> to vector<1x128xf32>
    %c0_i32 = arith.constant 0 : i32
    %5 = arith.cmpi eq, %arg1, %c0_i32 : i32
    %6 = arith.extui %5 : i1 to i32
    %c0_i32_0 = arith.constant 0 : i32
    %7 = arith.cmpi ne, %6, %c0_i32_0 : i32
    scf.if %7 {
      %c0_60 = arith.constant 0 : index
      %c0_61 = arith.constant 0 : index
      %c0_62 = arith.constant 0 : index
      %125 = vector.load %arg2[%c0_60, %c0_61, %c0_62] : memref<8x16x128xbf16, #tpu.memory_space<vmem>>, vector<8x16x128xbf16>
      %126 = vector.shape_cast %125 : vector<8x16x128xbf16> to vector<128x128xbf16>
      %c0_63 = arith.constant 0 : index
      %c0_64 = arith.constant 0 : index
      %127 = vector.load %arg3[%c0_63, %c0_64] : memref<128x128xbf16, #tpu.memory_space<vmem>>, vector<128x128xbf16>
      %cst_65 = arith.constant dense<0.000000e+00> : vector<128x128xf32>
      %128 = tpu.matmul %126, %127, %cst_65 {dimension_numbers = #tpu.dot_dimension_numbers<[1], [0], [0], [1], [0, 0, 1, 1], [], []>} : vector<128x128xbf16>, vector<128x128xbf16>, vector<128x128xf32> -> vector<128x128xf32>
      %c0_66 = arith.constant 0 : index
      %c0_67 = arith.constant 0 : index
      %129 = vector.load %arg4[%c0_66, %c0_67] : memref<1x128xf32, #tpu.memory_space<vmem>>, vector<1x128xf32>
      %130 = vector.broadcast %129 : vector<1x128xf32> to vector<128x128xf32>
      %131 = arith.addf %128, %130 : vector<128x128xf32>
      %c0_68 = arith.constant 0 : index
      %c0_69 = arith.constant 0 : index
      %132 = vector.load %arg22[%c0_68, %c0_69] : memref<128x128xf32, #tpu.memory_space<vmem>>, vector<128x128xf32>
      tpu.vector_store %arg22[%c0_68, %c0_69], %131 {strides = array<i32>} : memref<128x128xf32, #tpu.memory_space<vmem>>, vector<128x128xf32>,
    } else {
    }
    %c0 = arith.constant 0 : index
    %c0_1 = arith.constant 0 : index
    %8 = vector.load %arg22[%c0, %c0_1] : memref<128x128xf32, #tpu.memory_space<vmem>>, vector<128x128xf32>
    %c0_2 = arith.constant 0 : index
    %c0_3 = arith.constant 0 : index
    %c0_4 = arith.constant 0 : index
    %9 = vector.load %arg5[%c0_2, %c0_3, %c0_4] : memref<1x1x128xf32, #tpu.memory_space<vmem>>, vector<1x1x128xf32>
    %10 = vector.shape_cast %9 : vector<1x1x128xf32> to vector<1x128xf32>
    %c0_5 = arith.constant 0 : index
    %c0_6 = arith.constant 0 : index
    %c0_7 = arith.constant 0 : index
    %11 = vector.load %arg6[%c0_5, %c0_6, %c0_7] : memref<1x1x128xf32, #tpu.memory_space<vmem>>, vector<1x1x128xf32>
    %12 = vector.shape_cast %11 : vector<1x1x128xf32> to vector<1x128xf32>
    %13 = vector.broadcast %4 : vector<1x128xf32> to vector<128x128xf32>
    %14 = arith.mulf %8, %13 : vector<128x128xf32>
    %cst = arith.constant dense<0.000000e+00> : vector<128xf32>
    %15 = vector.multi_reduction <add>, %14, %cst [1] : vector<128x128xf32> to vector<128xf32>
    %16 = vector.shape_cast %15 : vector<128xf32> to vector<128x1xf32>
    %cst_8 = arith.constant 3.125000e-02 : f32
    %17 = vector.broadcast %cst_8 : f32 to vector<128x1xf32>
    %18 = arith.mulf %16, %17 : vector<128x1xf32>
    %19 = vector.broadcast %18 : vector<128x1xf32> to vector<128x128xf32>
    %20 = arith.subf %8, %19 : vector<128x128xf32>
    %21 = vector.broadcast %4 : vector<1x128xf32> to vector<128x128xf32>
    %22 = arith.mulf %20, %21 : vector<128x128xf32>
    %23 = arith.mulf %22, %22 : vector<128x128xf32>
    %cst_9 = arith.constant dense<0.000000e+00> : vector<128xf32>
    %24 = vector.multi_reduction <add>, %23, %cst_9 [1] : vector<128x128xf32> to vector<128xf32>
    %25 = vector.shape_cast %24 : vector<128xf32> to vector<128x1xf32>
    %cst_10 = arith.constant 3.125000e-02 : f32
    %26 = vector.broadcast %cst_10 : f32 to vector<128x1xf32>
    %27 = arith.mulf %25, %26 : vector<128x1xf32>
    %cst_11 = arith.constant 9.99999974E-6 : f32
    %28 = vector.broadcast %cst_11 : f32 to vector<128x1xf32>
    %29 = arith.addf %27, %28 : vector<128x1xf32>
    %30 = math.rsqrt %29 : vector<128x1xf32>
    %31 = vector.broadcast %30 : vector<128x1xf32> to vector<128x128xf32>
    %32 = arith.mulf %22, %31 : vector<128x128xf32>
    %33 = vector.broadcast %10 : vector<1x128xf32> to vector<128x128xf32>
    %34 = arith.mulf %32, %33 : vector<128x128xf32>
    %35 = vector.broadcast %12 : vector<1x128xf32> to vector<128x128xf32>
    %36 = arith.addf %34, %35 : vector<128x128xf32>
    %37 = vector.shape_cast %36 : vector<128x128xf32> to vector<8x16x128xf32>
    %38 = tpu.transpose %37, [0, 2, 1] : vector<8x16x128xf32> -> vector<8x128x16xf32>
    %39 = vector.shape_cast %38 : vector<8x128x16xf32> to vector<1024x16xf32>
    %40 = arith.truncf %39 : vector<1024x16xf32> to vector<1024x16xbf16>
    %c0_12 = arith.constant 0 : index
    %c0_13 = arith.constant 0 : index
    %c0_14 = arith.constant 0 : index
    %41 = vector.load %arg7[%c0_12, %c0_13, %c0_14] : memref<1x16x128xbf16, #tpu.memory_space<vmem>>, vector<1x16x128xbf16>
    %42 = vector.shape_cast %41 : vector<1x16x128xbf16> to vector<16x128xbf16>
    %cst_15 = arith.constant dense<0.000000e+00> : vector<1024x128xf32>
    %43 = tpu.matmul %40, %42, %cst_15 {dimension_numbers = #tpu.dot_dimension_numbers<[1], [0], [0], [1], [0, 0, 1, 1], [], []>} : vector<1024x16xbf16>, vector<16x128xbf16>, vector<1024x128xf32> -> vector<1024x128xf32>
    %c0_16 = arith.constant 0 : index
    %c0_17 = arith.constant 0 : index
    %c0_18 = arith.constant 0 : index
    %44 = vector.load %arg8[%c0_16, %c0_17, %c0_18] : memref<1x1x128xf32, #tpu.memory_space<vmem>>, vector<1x1x128xf32>
    %45 = vector.shape_cast %44 : vector<1x1x128xf32> to vector<1x128xf32>
    %46 = vector.broadcast %45 : vector<1x128xf32> to vector<1024x128xf32>
    %47 = arith.addf %43, %46 : vector<1024x128xf32>
    %cst_19 = arith.constant 5.000000e-01 : f32
    %48 = vector.broadcast %cst_19 : f32 to vector<1024x128xf32>
    %49 = arith.mulf %48, %47 : vector<1024x128xf32>
    %cst_20 = arith.constant 0.707106769 : f32
    %50 = vector.broadcast %cst_20 : f32 to vector<1024x128xf32>
    %51 = arith.mulf %47, %50 : vector<1024x128xf32>
    %52 = math.erf %51 : vector<1024x128xf32>
    %cst_21 = arith.constant 1.000000e+00 : f32
    %53 = vector.broadcast %cst_21 : f32 to vector<1024x128xf32>
    %54 = arith.addf %53, %52 : vector<1024x128xf32>
    %55 = arith.mulf %49, %54 : vector<1024x128xf32>
    %56 = arith.truncf %55 : vector<1024x128xf32> to vector<1024x128xbf16>
    %c0_22 = arith.constant 0 : index
    %c0_23 = arith.constant 0 : index
    %c0_24 = arith.constant 0 : index
    %57 = vector.load %arg9[%c0_22, %c0_23, %c0_24] : memref<1x128x16xbf16, #tpu.memory_space<vmem>>, vector<1x128x16xbf16>
    %58 = vector.shape_cast %57 : vector<1x128x16xbf16> to vector<128x16xbf16>
    %cst_25 = arith.constant dense<0.000000e+00> : vector<1024x16xf32>
    %59 = tpu.matmul %56, %58, %cst_25 {dimension_numbers = #tpu.dot_dimension_numbers<[1], [0], [0], [1], [0, 0, 1, 1], [], []>} : vector<1024x128xbf16>, vector<128x16xbf16>, vector<1024x16xf32> -> vector<1024x16xf32>
    %c0_26 = arith.constant 0 : index
    %c0_27 = arith.constant 0 : index
    %c0_28 = arith.constant 0 : index
    %60 = vector.load %arg10[%c0_26, %c0_27, %c0_28] : memref<1x1x16xf32, #tpu.memory_space<vmem>>, vector<1x1x16xf32>
    %61 = vector.shape_cast %60 : vector<1x1x16xf32> to vector<1x16xf32>
    %62 = vector.broadcast %61 : vector<1x16xf32> to vector<1024x16xf32>
    %63 = arith.addf %59, %62 : vector<1024x16xf32>
    %64 = vector.shape_cast %63 : vector<1024x16xf32> to vector<8x128x16xf32>
    %65 = tpu.transpose %64, [0, 2, 1] : vector<8x128x16xf32> -> vector<8x16x128xf32>
    %66 = vector.shape_cast %65 : vector<8x16x128xf32> to vector<128x128xf32>
    %67 = arith.addf %8, %66 : vector<128x128xf32>
    %c0_29 = arith.constant 0 : index
    %c0_30 = arith.constant 0 : index
    %c0_31 = arith.constant 0 : index
    %68 = vector.load %arg11[%c0_29, %c0_30, %c0_31] : memref<1x1x128xf32, #tpu.memory_space<vmem>>, vector<1x1x128xf32>
    %69 = vector.shape_cast %68 : vector<1x1x128xf32> to vector<1x128xf32>
    %c0_32 = arith.constant 0 : index
    %c0_33 = arith.constant 0 : index
    %c0_34 = arith.constant 0 : index
    %70 = vector.load %arg12[%c0_32, %c0_33, %c0_34] : memref<1x1x128xf32, #tpu.memory_space<vmem>>, vector<1x1x128xf32>
    %71 = vector.shape_cast %70 : vector<1x1x128xf32> to vector<1x128xf32>
    %72 = vector.broadcast %4 : vector<1x128xf32> to vector<128x128xf32>
    %73 = arith.mulf %67, %72 : vector<128x128xf32>
    %cst_35 = arith.constant dense<0.000000e+00> : vector<128xf32>
    %74 = vector.multi_reduction <add>, %73, %cst_35 [1] : vector<128x128xf32> to vector<128xf32>
    %75 = vector.shape_cast %74 : vector<128xf32> to vector<128x1xf32>
    %cst_36 = arith.constant 3.125000e-02 : f32
    %76 = vector.broadcast %cst_36 : f32 to vector<128x1xf32>
    %77 = arith.mulf %75, %76 : vector<128x1xf32>
    %78 = vector.broadcast %77 : vector<128x1xf32> to vector<128x128xf32>
    %79 = arith.subf %67, %78 : vector<128x128xf32>
    %80 = vector.broadcast %4 : vector<1x128xf32> to vector<128x128xf32>
    %81 = arith.mulf %79, %80 : vector<128x128xf32>
    %82 = arith.mulf %81, %81 : vector<128x128xf32>
    %cst_37 = arith.constant dense<0.000000e+00> : vector<128xf32>
    %83 = vector.multi_reduction <add>, %82, %cst_37 [1] : vector<128x128xf32> to vector<128xf32>
    %84 = vector.shape_cast %83 : vector<128xf32> to vector<128x1xf32>
    %cst_38 = arith.constant 3.125000e-02 : f32
    %85 = vector.broadcast %cst_38 : f32 to vector<128x1xf32>
    %86 = arith.mulf %84, %85 : vector<128x1xf32>
    %cst_39 = arith.constant 9.99999974E-6 : f32
    %87 = vector.broadcast %cst_39 : f32 to vector<128x1xf32>
    %88 = arith.addf %86, %87 : vector<128x1xf32>
    %89 = math.rsqrt %88 : vector<128x1xf32>
    %90 = vector.broadcast %89 : vector<128x1xf32> to vector<128x128xf32>
    %91 = arith.mulf %81, %90 : vector<128x128xf32>
    %92 = vector.broadcast %69 : vector<1x128xf32> to vector<128x128xf32>
    %93 = arith.mulf %91, %92 : vector<128x128xf32>
    %94 = vector.broadcast %71 : vector<1x128xf32> to vector<128x128xf32>
    %95 = arith.addf %93, %94 : vector<128x128xf32>
    %96 = arith.truncf %95 : vector<128x128xf32> to vector<128x128xbf16>
    %c0_40 = arith.constant 0 : index
    %c0_41 = arith.constant 0 : index
    %c0_42 = arith.constant 0 : index
    %97 = vector.load %arg13[%c0_40, %c0_41, %c0_42] : memref<1x128x128xbf16, #tpu.memory_space<vmem>>, vector<1x128x128xbf16>
    %98 = vector.shape_cast %97 : vector<1x128x128xbf16> to vector<128x128xbf16>
    %cst_43 = arith.constant dense<0.000000e+00> : vector<128x128xf32>
    %99 = tpu.matmul %96, %98, %cst_43 {dimension_numbers = #tpu.dot_dimension_numbers<[1], [0], [0], [1], [0, 0, 1, 1], [], []>} : vector<128x128xbf16>, vector<128x128xbf16>, vector<128x128xf32> -> vector<128x128xf32>
    %c0_44 = arith.constant 0 : index
    %c0_45 = arith.constant 0 : index
    %c0_46 = arith.constant 0 : index
    %100 = vector.load %arg14[%c0_44, %c0_45, %c0_46] : memref<1x1x128xf32, #tpu.memory_space<vmem>>, vector<1x1x128xf32>
    %101 = vector.shape_cast %100 : vector<1x1x128xf32> to vector<1x128xf32>
    %102 = vector.broadcast %101 : vector<1x128xf32> to vector<128x128xf32>
    %103 = arith.addf %99, %102 : vector<128x128xf32>
    %cst_47 = arith.constant 5.000000e-01 : f32
    %104 = vector.broadcast %cst_47 : f32 to vector<128x128xf32>
    %105 = arith.mulf %104, %103 : vector<128x128xf32>
    %cst_48 = arith.constant 0.707106769 : f32
    %106 = vector.broadcast %cst_48 : f32 to vector<128x128xf32>
    %107 = arith.mulf %103, %106 : vector<128x128xf32>
    %108 = math.erf %107 : vector<128x128xf32>
    %cst_49 = arith.constant 1.000000e+00 : f32
    %109 = vector.broadcast %cst_49 : f32 to vector<128x128xf32>
    %110 = arith.addf %109, %108 : vector<128x128xf32>
    %111 = arith.mulf %105, %110 : vector<128x128xf32>
    %112 = arith.truncf %111 : vector<128x128xf32> to vector<128x128xbf16>
    %c0_50 = arith.constant 0 : index
    %c0_51 = arith.constant 0 : index
    %c0_52 = arith.constant 0 : index
    %113 = vector.load %arg15[%c0_50, %c0_51, %c0_52] : memref<1x128x128xbf16, #tpu.memory_space<vmem>>, vector<1x128x128xbf16>
    %114 = vector.shape_cast %113 : vector<1x128x128xbf16> to vector<128x128xbf16>
    %cst_53 = arith.constant dense<0.000000e+00> : vector<128x128xf32>
    %115 = tpu.matmul %112, %114, %cst_53 {dimension_numbers = #tpu.dot_dimension_numbers<[1], [0], [0], [1], [0, 0, 1, 1], [], []>} : vector<128x128xbf16>, vector<128x128xbf16>, vector<128x128xf32> -> vector<128x128xf32>
    %c0_54 = arith.constant 0 : index
    %c0_55 = arith.constant 0 : index
    %c0_56 = arith.constant 0 : index
    %116 = vector.load %arg16[%c0_54, %c0_55, %c0_56] : memref<1x1x128xf32, #tpu.memory_space<vmem>>, vector<1x1x128xf32>
    %117 = vector.shape_cast %116 : vector<1x1x128xf32> to vector<1x128xf32>
    %118 = vector.broadcast %117 : vector<1x128xf32> to vector<128x128xf32>
    %119 = arith.addf %115, %118 : vector<128x128xf32>
    %120 = arith.addf %67, %119 : vector<128x128xf32>
    %c0_57 = arith.constant 0 : index
    %c0_58 = arith.constant 0 : index
    %121 = vector.load %arg22[%c0_57, %c0_58] : memref<128x128xf32, #tpu.memory_space<vmem>>, vector<128x128xf32>
    tpu.vector_store %arg22[%c0_57, %c0_58], %120 {strides = array<i32>} : memref<128x128xf32, #tpu.memory_space<vmem>>, vector<128x128xf32>,
    %c1_i32 = arith.constant 1 : i32
    %122 = arith.cmpi eq, %arg1, %c1_i32 : i32
    %123 = arith.extui %122 : i1 to i32
    %c0_i32_59 = arith.constant 0 : i32
    %124 = arith.cmpi ne, %123, %c0_i32_59 : i32
    scf.if %124 {
      %c0_60 = arith.constant 0 : index
      %c0_61 = arith.constant 0 : index
      %125 = vector.load %arg17[%c0_60, %c0_61] : memref<1x128xf32, #tpu.memory_space<vmem>>, vector<1x128xf32>
      %c0_62 = arith.constant 0 : index
      %c0_63 = arith.constant 0 : index
      %126 = vector.load %arg18[%c0_62, %c0_63] : memref<1x128xf32, #tpu.memory_space<vmem>>, vector<1x128xf32>
      %127 = vector.broadcast %4 : vector<1x128xf32> to vector<128x128xf32>
      %128 = arith.mulf %120, %127 : vector<128x128xf32>
      %cst_64 = arith.constant dense<0.000000e+00> : vector<128xf32>
      %129 = vector.multi_reduction <add>, %128, %cst_64 [1] : vector<128x128xf32> to vector<128xf32>
      %130 = vector.shape_cast %129 : vector<128xf32> to vector<128x1xf32>
      %cst_65 = arith.constant 3.125000e-02 : f32
      %131 = vector.broadcast %cst_65 : f32 to vector<128x1xf32>
      %132 = arith.mulf %130, %131 : vector<128x1xf32>
      %133 = vector.broadcast %132 : vector<128x1xf32> to vector<128x128xf32>
      %134 = arith.subf %120, %133 : vector<128x128xf32>
      %135 = vector.broadcast %4 : vector<1x128xf32> to vector<128x128xf32>
      %136 = arith.mulf %134, %135 : vector<128x128xf32>
      %137 = arith.mulf %136, %136 : vector<128x128xf32>
      %cst_66 = arith.constant dense<0.000000e+00> : vector<128xf32>
      %138 = vector.multi_reduction <add>, %137, %cst_66 [1] : vector<128x128xf32> to vector<128xf32>
      %139 = vector.shape_cast %138 : vector<128xf32> to vector<128x1xf32>
      %cst_67 = arith.constant 3.125000e-02 : f32
      %140 = vector.broadcast %cst_67 : f32 to vector<128x1xf32>
      %141 = arith.mulf %139, %140 : vector<128x1xf32>
      %cst_68 = arith.constant 9.99999974E-6 : f32
      %142 = vector.broadcast %cst_68 : f32 to vector<128x1xf32>
      %143 = arith.addf %141, %142 : vector<128x1xf32>
      %144 = math.rsqrt %143 : vector<128x1xf32>
      %145 = vector.broadcast %144 : vector<128x1xf32> to vector<128x128xf32>
      %146 = arith.mulf %136, %145 : vector<128x128xf32>
      %147 = vector.broadcast %125 : vector<1x128xf32> to vector<128x128xf32>
      %148 = arith.mulf %146, %147 : vector<128x128xf32>
      %149 = vector.broadcast %126 : vector<1x128xf32> to vector<128x128xf32>
      %150 = arith.addf %148, %149 : vector<128x128xf32>
      %151 = tpu.iota {dimensions = array<i32: 0>} : vector<16x1xi32>
      %c16_i32 = arith.constant 16 : i32
      %152 = vector.broadcast %c16_i32 : i32 to vector<16x1xi32>
      %153 = arith.cmpi slt, %151, %152 : vector<16x1xi32>
      %154 = arith.extui %153 : vector<16x1xi1> to vector<16x1xi32>
      %155 = arith.sitofp %154 : vector<16x1xi32> to vector<16x1xf32>
      %156 = vector.shape_cast %150 : vector<128x128xf32> to vector<8x16x128xf32>
      %157 = vector.shape_cast %155 : vector<16x1xf32> to vector<1x16x1xf32>
      %158 = vector.broadcast %157 : vector<1x16x1xf32> to vector<8x16x128xf32>
      %159 = arith.mulf %156, %158 : vector<8x16x128xf32>
      %cst_69 = arith.constant dense<0.000000e+00> : vector<8x128xf32>
      %160 = vector.multi_reduction <add>, %159, %cst_69 [1] : vector<8x16x128xf32> to vector<8x128xf32>
      %cst_70 = arith.constant 6.250000e-02 : f32
      %161 = vector.broadcast %cst_70 : f32 to vector<8x128xf32>
      %162 = arith.mulf %160, %161 : vector<8x128xf32>
      %163 = arith.truncf %162 : vector<8x128xf32> to vector<8x128xbf16>
      %c0_71 = arith.constant 0 : index
      %c0_72 = arith.constant 0 : index
      %164 = vector.load %arg19[%c0_71, %c0_72] : memref<128x128xbf16, #tpu.memory_space<vmem>>, vector<128x128xbf16>
      %cst_73 = arith.constant dense<0.000000e+00> : vector<8x128xf32>
      %165 = tpu.matmul %163, %164, %cst_73 {dimension_numbers = #tpu.dot_dimension_numbers<[1], [0], [0], [1], [0, 0, 1, 1], [], []>} : vector<8x128xbf16>, vector<128x128xbf16>, vector<8x128xf32> -> vector<8x128xf32>
      %c0_74 = arith.constant 0 : index
      %c0_75 = arith.constant 0 : index
      %166 = vector.load %arg20[%c0_74, %c0_75] : memref<1x128xf32, #tpu.memory_space<vmem>>, vector<1x128xf32>
      %167 = vector.broadcast %166 : vector<1x128xf32> to vector<8x128xf32>
      %168 = arith.addf %165, %167 : vector<8x128xf32>
      %c0_76 = arith.constant 0 : index
      %c0_77 = arith.constant 0 : index
      %169 = vector.load %arg21[%c0_76, %c0_77] : memref<8x128xf32, #tpu.memory_space<vmem>>, vector<8x128xf32>
      tpu.vector_store %arg21[%c0_76, %c0_77], %168 {strides = array<i32>} : memref<8x128xf32, #tpu.memory_space<vmem>>, vector<8x128xf32>,
    } else {
    }
    return
  }
  func.func @transform_0(%arg0: i32, %arg1: i32) -> (i32, i32, i32) {
    %c0_i32 = arith.constant 0 : i32
    %c0_i32_0 = arith.constant 0 : i32
    %c0_i32_1 = arith.constant 0 : i32
    return %arg0, %c0_i32, %c0_i32_0 : i32, i32, i32
  }
  func.func @transform_1(%arg0: i32, %arg1: i32) -> (i32, i32) {
    %c0_i32 = arith.constant 0 : i32
    %c0_i32_0 = arith.constant 0 : i32
    %c0_i32_1 = arith.constant 0 : i32
    return %c0_i32, %c0_i32_0 : i32, i32
  }
  func.func @transform_2(%arg0: i32, %arg1: i32) -> (i32, i32) {
    %c0_i32 = arith.constant 0 : i32
    %c0_i32_0 = arith.constant 0 : i32
    %c0_i32_1 = arith.constant 0 : i32
    return %c0_i32, %c0_i32_0 : i32, i32
  }
  func.func @transform_3(%arg0: i32, %arg1: i32) -> (i32, i32, i32) {
    %c0_i32 = arith.constant 0 : i32
    %c0_i32_0 = arith.constant 0 : i32
    %c0_i32_1 = arith.constant 0 : i32
    return %arg1, %c0_i32, %c0_i32_0 : i32, i32, i32
  }
  func.func @transform_4(%arg0: i32, %arg1: i32) -> (i32, i32, i32) {
    %c0_i32 = arith.constant 0 : i32
    %c0_i32_0 = arith.constant 0 : i32
    %c0_i32_1 = arith.constant 0 : i32
    return %arg1, %c0_i32, %c0_i32_0 : i32, i32, i32
  }
  func.func @transform_5(%arg0: i32, %arg1: i32) -> (i32, i32, i32) {
    %c0_i32 = arith.constant 0 : i32
    %c0_i32_0 = arith.constant 0 : i32
    %c0_i32_1 = arith.constant 0 : i32
    return %arg1, %c0_i32, %c0_i32_0 : i32, i32, i32
  }
  func.func @transform_6(%arg0: i32, %arg1: i32) -> (i32, i32, i32) {
    %c0_i32 = arith.constant 0 : i32
    %c0_i32_0 = arith.constant 0 : i32
    %c0_i32_1 = arith.constant 0 : i32
    return %arg1, %c0_i32, %c0_i32_0 : i32, i32, i32
  }
  func.func @transform_7(%arg0: i32, %arg1: i32) -> (i32, i32, i32) {
    %c0_i32 = arith.constant 0 : i32
    %c0_i32_0 = arith.constant 0 : i32
    %c0_i32_1 = arith.constant 0 : i32
    return %arg1, %c0_i32, %c0_i32_0 : i32, i32, i32
  }
  func.func @transform_8(%arg0: i32, %arg1: i32) -> (i32, i32, i32) {
    %c0_i32 = arith.constant 0 : i32
    %c0_i32_0 = arith.constant 0 : i32
    %c0_i32_1 = arith.constant 0 : i32
    return %arg1, %c0_i32, %c0_i32_0 : i32, i32, i32
  }
  func.func @transform_9(%arg0: i32, %arg1: i32) -> (i32, i32, i32) {
    %c0_i32 = arith.constant 0 : i32
    %c0_i32_0 = arith.constant 0 : i32
    %c0_i32_1 = arith.constant 0 : i32
    return %arg1, %c0_i32, %c0_i32_0 : i32, i32, i32
  }
  func.func @transform_10(%arg0: i32, %arg1: i32) -> (i32, i32, i32) {
    %c0_i32 = arith.constant 0 : i32
    %c0_i32_0 = arith.constant 0 : i32
    %c0_i32_1 = arith.constant 0 : i32
    return %arg1, %c0_i32, %c0_i32_0 : i32, i32, i32
  }
  func.func @transform_11(%arg0: i32, %arg1: i32) -> (i32, i32, i32) {
    %c0_i32 = arith.constant 0 : i32
    %c0_i32_0 = arith.constant 0 : i32
    %c0_i32_1 = arith.constant 0 : i32
    return %arg1, %c0_i32, %c0_i32_0 : i32, i32, i32
  }
  func.func @transform_12(%arg0: i32, %arg1: i32) -> (i32, i32, i32) {
    %c0_i32 = arith.constant 0 : i32
    %c0_i32_0 = arith.constant 0 : i32
    %c0_i32_1 = arith.constant 0 : i32
    return %arg1, %c0_i32, %c0_i32_0 : i32, i32, i32
  }
  func.func @transform_13(%arg0: i32, %arg1: i32) -> (i32, i32, i32) {
    %c0_i32 = arith.constant 0 : i32
    %c0_i32_0 = arith.constant 0 : i32
    %c0_i32_1 = arith.constant 0 : i32
    return %arg1, %c0_i32, %c0_i32_0 : i32, i32, i32
  }
  func.func @transform_14(%arg0: i32, %arg1: i32) -> (i32, i32, i32) {
    %c0_i32 = arith.constant 0 : i32
    %c0_i32_0 = arith.constant 0 : i32
    %c0_i32_1 = arith.constant 0 : i32
    return %arg1, %c0_i32, %c0_i32_0 : i32, i32, i32
  }
  func.func @transform_15(%arg0: i32, %arg1: i32) -> (i32, i32) {
    %c0_i32 = arith.constant 0 : i32
    %c0_i32_0 = arith.constant 0 : i32
    %c0_i32_1 = arith.constant 0 : i32
    return %c0_i32, %c0_i32_0 : i32, i32
  }
  func.func @transform_16(%arg0: i32, %arg1: i32) -> (i32, i32) {
    %c0_i32 = arith.constant 0 : i32
    %c0_i32_0 = arith.constant 0 : i32
    %c0_i32_1 = arith.constant 0 : i32
    return %c0_i32, %c0_i32_0 : i32, i32
  }
  func.func @transform_17(%arg0: i32, %arg1: i32) -> (i32, i32) {
    %c0_i32 = arith.constant 0 : i32
    %c0_i32_0 = arith.constant 0 : i32
    %c0_i32_1 = arith.constant 0 : i32
    return %c0_i32, %c0_i32_0 : i32, i32
  }
  func.func @transform_18(%arg0: i32, %arg1: i32) -> (i32, i32) {
    %c0_i32 = arith.constant 0 : i32
    %c0_i32_0 = arith.constant 0 : i32
    %c0_i32_1 = arith.constant 0 : i32
    return %c0_i32, %c0_i32_0 : i32, i32
  }
  func.func @transform_19(%arg0: i32, %arg1: i32) -> (i32, i32) {
    %c0_i32 = arith.constant 0 : i32
    %c0_i32_0 = arith.constant 0 : i32
    return %arg0, %c0_i32 : i32, i32
  }
}

</mosaic_0001>

<bundles_post_ra>
// kernel: tpu_custom_call.1
= control target key start
LH: loop header
LB: loop body
LE: loop exit
PB: predicated region body
PF: predicated region fallthrough
CT: control target
= control target key end

     0   :  { %s9357_s0 = inlined_call_operand.hbm [shape: bf16[8,16,128], index: 0, kind: input, shape index: {}]   ;;  %s9358_s1 = inlined_call_operand.hbm [shape: bf16[128,128], index: 1, kind: input, shape index: {}]   ;;  %s9359_s2 = inlined_call_operand.hbm [shape: f32[1,128], index: 2, kind: input, shape index: {}]   ;;  %s9360_s3 = inlined_call_operand.vmem [shape: f32[2,1,128], index: 3, kind: input, shape index: {}]   ;;  %s9361_s4 = inlined_call_operand.vmem [shape: f32[2,1,128], index: 4, kind: input, shape index: {}]   ;;  %s9362_s5 = inlined_call_operand.vmem [shape: bf16[2,16,128], index: 5, kind: input, shape index: {}]   ;;  %s9363_s6 = inlined_call_operand.vmem [shape: f32[2,1,128], index: 6, kind: input, shape index: {}]   ;;  %s9364_s7 = inlined_call_operand.vmem [shape: bf16[2,128,16], index: 7, kind: input, shape index: {}]   ;;  %s9365_s8 = inlined_call_operand.vmem [shape: f32[2,1,16], index: 8, kind: input, shape index: {}]   ;;  %s9366_s9 = inlined_call_operand.vmem [shape: f32[2,1,128], index: 9, kind: input, shape index: {}]   ;;  %s9367_s10 = inlined_call_operand.vmem [shape: f32[2,1,128], index: 10, kind: input, shape index: {}]   ;;  %s9368_s11 = inlined_call_operand.vmem [shape: bf16[2,128,128], index: 11, kind: input, shape index: {}]   ;;  %s9369_s12 = inlined_call_operand.vmem [shape: f32[2,1,128], index: 12, kind: input, shape index: {}]   ;;  %s9370_s13 = inlined_call_operand.hbm [shape: bf16[2,128,128], index: 13, kind: input, shape index: {}]   ;;  %s9371_s14 = inlined_call_operand.vmem [shape: f32[2,1,128], index: 14, kind: input, shape index: {}]   ;;  %s9372_s15 = inlined_call_operand.vmem [shape: f32[1,128], index: 15, kind: input, shape index: {}]   ;;  %s9373_s16 = inlined_call_operand.vmem [shape: f32[1,128], index: 16, kind: input, shape index: {}]   ;;  %s9374_s17 = inlined_call_operand.hbm [shape: bf16[128,128], index: 17, kind: input, shape index: {}]   ;;  %s9375_s18 = inlined_call_operand.vmem [shape: f32[1,128], index: 18, kind: input, shape index: {}]   ;;  %s9376_s19 = inlined_call_operand.hbm [shape: f32[8,128], index: 19, kind: output, shape index: {}]  }
   0x1   :  { %9391 = sst [smem:[#allocation23_spill]] %s9357_s0 }
   0x2   :  { %9392 = sst [smem:[#allocation24_spill]] %s9358_s1 }
   0x3   :  { %9393 = sst [smem:[#allocation25_spill]] %s9359_s2 }
   0x4   :  { %9394 = sst [smem:[#allocation26_spill]] %s9360_s3 }
   0x5   :  { %9395 = sst [smem:[#allocation27_spill]] %s9362_s5 }
   0x6   :  { %9396 = sst [smem:[#allocation28_spill]] %s9363_s6 }
   0x7   :  { %9397 = sst [smem:[#allocation29_spill]] %s9364_s7 }
   0x8   :  { %9398 = sst [smem:[#allocation30_spill]] %s9365_s8 }
   0x9   :  { %9399 = sst [smem:[#allocation31_spill]] %s9366_s9 }
   0xa   :  { %9400 = sst [smem:[#allocation32_spill]] %s9367_s10 }
   0xb   :  { %9401 = sst [smem:[#allocation33_spill]] %s9368_s11 }
   0xc   :  { %9402 = sst [smem:[#allocation34_spill]] %s9369_s12 }
   0xd   :  { %9403 = sst [smem:[#allocation35_spill]] %s9370_s13 }
   0xe   :  { %9404 = sst [smem:[#allocation36_spill]] %s9371_s14 }
   0xf   :  { %9405 = sst [smem:[#allocation37_spill]] %s9372_s15 }
  0x10   :  { %9406 = sst [smem:[#allocation38_spill]] %s9373_s16 }
  0x11   :  { %9407 = sst [smem:[#allocation39_spill]] %s9374_s17 }
  0x12   :  { %9408 = sst [smem:[#allocation40_spill]] %s9375_s18 }
  0x13   :  { %9409 = sst [smem:[#allocation41_spill]] %s9376_s19 }
  0x14   :  { %24 = vsyncpa [#allocation4], 0 }
  0x15   :  { %25 = vsyncpa [#allocation7], 0 }
  0x16   :  { %26 = vsyncpa [#allocation10], 0 }
  0x17   :  { %28 = vsyncpa [#allocation10 + $0x1], 0 }
  0x18   :  { %29 = vsyncpa [#allocation5], 0  ;;  %s7343_s0 = smov 0   ;;  %s7345_s30 = smov 0  }
  0x19   :  { %s7347_s20 = smov 0   ;;  %s7349_s21 = smov 0  }
  0x1a   :  { %s7351_s1 = smov 0   ;;  %s7353_s22 = smov 0  }
  0x1b LB: > { %9410 = sst [smem:[#allocation18_spill]] %s7214_s30  ;;  %s7372_s2 = sadd.s32 4294967295, %s7230_s22   ;;  %s7230_s22 = sphi %s7353_s22, %s35_s22   ;;  %s7226_s1 = sphi %s7351_s1, %s9459_s1   ;;  %s7222_s21 = sphi %s7349_s21, %s9458_s21   ;;  %s7218_s20 = sphi %s7347_s20, %s9457_s20   ;;  %s7214_s30 = sphi %s7345_s30, %s9456_s30   ;;  %s7210_s0 = sphi %s7343_s0, %s9455_s0  }
  0x1c   : > { %9411 = sst [smem:[#allocation19_spill]] %s7218_s20  ;;  %p395_p0 = scmp.ne.s32.totalorder %s7214_s30, %s7210_s0 }
  0x1d   : > { %9412 = sst [smem:[#allocation20_spill]] %s7226_s1  ;;  %p9381_p1 = scmp.eq.s32.totalorder %s7372_s2, 0 }
  0x1e   : > { %p5495_p2 = scmp.ge.s32.totalorder %s7230_s22, 1  ;;  %p542_p3 = scmp.lt.s32.totalorder %s7230_s22, 3 }
  0x1f   : > { %p7380_p4 = por %p9381_p1, %p395_p0  ;;  %s7232_s25 = smov [#allocation6]  }
  0x20   : > { %p7384_p5 = pnand %p5495_p2, %p542_p3  ;;  %s571_s3 = sshll.u32 %s7232_s25, 4  ;;  %s572_s3 = int_to_ptr.vmem [resolvable:$true] %s571_s3 }
  0x21   : > { %s9413_s23 = scalar_select %p7380_p4, 1, 0 }
  0x22   : > { %s9414_s24 = scalar_select %p7384_p5, 1, 0 }
  0x23   : > { %p6290_p6 = pneg %p7384_p5  ;;  %s7233_s27 = smov [#allocation11]  }
  0x24   : > { %s601_s28 = sshll.u32 %s7233_s27, 4  ;;  %s9416_s19 = sld [smem:[#allocation24_spill]]  ;;  %s7396_s28 = int_to_ptr.vmem [resolvable:$true] %s601_s28 }
  0x25   : > { %p7392_p7 = pnand %p6290_p6, %p9381_p1 }
  0x27   : > { %p7406_p9 = pneg %p7392_p7 }
  0x2a   : > { %s6996_s18 = scalar_lea.hbm %s9416_s19, 1024 }
  0x2b   : > { %p6997_p8 = scmp.ne.s32.totalorder %s9416_s19, %s6996_s18  ;;  %p7003_p12 = scmp.lt.u32.totalorder %s6996_s18, %s9416_s19 }
  0x2d   : > { %p6999_p10 = pnand %p7406_p9, %p6997_p8 }
  0x2f   : > { %p7000_p11 = pneg %p6999_p10 }
  0x31   : > { %p7005_p13 = pnand %p7003_p12, %p7000_p11 }
  0x33   : > { %7008 = shalt.err (!%p7005_p13)
}
  0x34   : > { %s7009_s29 = scalar_lea.vmem %s572_s3, 1024  ;;  %p7017_p6 = scmp.lt.s32.totalorder %s572_s3, %s572_s3 }
  0x35   : > { %p7010_p0 = scmp.ne.s32.totalorder %s572_s3, %s7009_s29  ;;  %p7018_p1 = scmp.lt.s32.totalorder %s7009_s29, %s7009_s29 }
  0x37   : > { %p7012_p2 = pnand %p7010_p0, %p7406_p9  ;;  %p7019_p4 = por %p7018_p1, %p7017_p6 }
  0x39   : > { %p7013_p3 = pneg %p7012_p2 }
  0x3b   : > { %p7020_p5 = pnand %p7019_p4, %p7013_p3 }
  0x3d   : > { %7023 = shalt.err (!%p7020_p5)
}
  0x3e   : > { %s7234_s15 = smov 64   ;;  %s7235_s16 = smov 4  }
  0x3f   : > { %6296 = dma.hbm_to_vmem [thread:$0]  (!%p7392_p7), %s9416_s19, 1024, %s572_s3, [#allocation7], %s7234_s15, %s7234_s15, %s7235_s16  }
  0x40   : > { %s9418_s17 = sld [smem:[#allocation39_spill]] }
  0x46   : > { %s7024_s12 = scalar_lea.hbm %s9418_s17, 1024 }
  0x47   : > { %p7025_p1 = scmp.ne.s32.totalorder %s9418_s17, %s7024_s12  ;;  %p7031_p8 = scmp.lt.u32.totalorder %s7024_s12, %s9418_s17 }
  0x49   : > { %p7027_p4 = pnand %p7025_p1, %p7406_p9 }
  0x4b   : > { %p7028_p5 = pneg %p7027_p4 }
  0x4d   : > { %p7033_p10 = pnand %p7031_p8, %p7028_p5 }
  0x4f   : > { %7036 = shalt.err (!%p7033_p10)
}
  0x50   : > { %s7037_s3 = scalar_lea.vmem %s7396_s28, 1024  ;;  %p7045_p0 = scmp.lt.s32.totalorder %s7396_s28, %s7396_s28 }
  0x51   : > { %p7038_p11 = scmp.ne.s32.totalorder %s7396_s28, %s7037_s3  ;;  %p7046_p2 = scmp.lt.s32.totalorder %s7037_s3, %s7037_s3 }
  0x53   : > { %p7040_p12 = pnand %p7038_p11, %p7406_p9  ;;  %p7047_p3 = por %p7046_p2, %p7045_p0 }
  0x55   : > { %p7041_p13 = pneg %p7040_p12 }
  0x57   : > { %p7048_p6 = pnand %p7047_p3, %p7041_p13 }
  0x59   : > { %7051 = shalt.err (!%p7048_p6)
}
  0x5a   : > { %6302 = dma.hbm_to_vmem [thread:$0]  (!%p7392_p7), %s9418_s17, 1024, %s7396_s28, [#allocation10], %s7234_s15, %s7234_s15, %s7235_s16  }
  0x5b   : > { %s7236_s11 = smov [#allocation3]   ;;  %s7237_s14 = smov [#allocation8]  }
  0x5c   : > { %s558_s12 = sshll.u32 %s7236_s11, 4  ;;  %s585_s18 = sshll.u32 %s7237_s14, 4  ;;  %s559_s12 = int_to_ptr.vmem [resolvable:$true] %s558_s12  ;;  %s7451_s18 = int_to_ptr.vmem [resolvable:$true] %s585_s18 }
  0x5d   : > { %s9419_s29 = sld [smem:[#allocation23_spill]] }
  0x63   : > { %s7052_s3 = scalar_lea.hbm %s9419_s29, 1024 }
  0x64   : > { %p7053_p1 = scmp.ne.s32.totalorder %s9419_s29, %s7052_s3  ;;  %p7059_p8 = scmp.lt.u32.totalorder %s7052_s3, %s9419_s29 }
  0x66   : > { %p7055_p4 = pnand %p7053_p1, %p7406_p9 }
  0x68   : > { %p7056_p5 = pneg %p7055_p4 }
  0x6a   : > { %p7061_p10 = pnand %p7059_p8, %p7056_p5 }
  0x6c   : > { %7064 = shalt.err (!%p7061_p10)
}
  0x6d   : > { %s7065_s10 = scalar_lea.vmem %s559_s12, 1024  ;;  %p7073_p0 = scmp.lt.s32.totalorder %s559_s12, %s559_s12 }
  0x6e   : > { %p7066_p11 = scmp.ne.s32.totalorder %s559_s12, %s7065_s10  ;;  %p7074_p2 = scmp.lt.s32.totalorder %s7065_s10, %s7065_s10 }
  0x70   : > { %p7068_p12 = pnand %p7066_p11, %p7406_p9  ;;  %p7075_p3 = por %p7074_p2, %p7073_p0 }
  0x72   : > { %p7069_p13 = pneg %p7068_p12 }
  0x74   : > { %p7076_p6 = pnand %p7075_p3, %p7069_p13 }
  0x76   : > { %7079 = shalt.err (!%p7076_p6)
}
  0x77   : > { %6293 = dma.hbm_to_vmem [thread:$0]  (!%p7392_p7), %s9419_s29, 1024, %s559_s12, [#allocation4], %s7234_s15, %s7234_s15, %s7235_s16  }
  0x78   : > { %s9420_s0 = sld [smem:[#allocation25_spill]] }
  0x7e   : > { %s9421_s27 = smov %s9420_s0  ;;  %s7080_s3 = scalar_lea.hbm %s9420_s0, 16 }
  0x7f   : > { %p7081_p1 = scmp.ne.s32.totalorder %s9421_s27, %s7080_s3  ;;  %p7087_p8 = scmp.lt.u32.totalorder %s7080_s3, %s9421_s27 }
  0x81   : > { %p7083_p4 = pnand %p7081_p1, %p7406_p9 }
  0x83   : > { %p7084_p5 = pneg %p7083_p4 }
  0x85   : > { %p7089_p10 = pnand %p7087_p8, %p7084_p5 }
  0x87   : > { %7092 = shalt.err (!%p7089_p10)
}
  0x88   : > { %s7093_s12 = scalar_lea.vmem %s7451_s18, 16  ;;  %s7100_s8 = scalar_lea.vmem %s7451_s18, 32 }
  0x89   : > { %p7094_p11 = scmp.ne.s32.totalorder %s7451_s18, %s7093_s12  ;;  %p7101_p0 = scmp.lt.s32.totalorder %s7451_s18, %s7451_s18 }
  0x8a   : > { %p7102_p2 = scmp.lt.s32.totalorder %s7100_s8, %s7093_s12 }
  0x8b   : > { %p7096_p12 = pnand %p7094_p11, %p7406_p9 }
  0x8c   : > { %p7103_p3 = por %p7102_p2, %p7101_p0 }
  0x8d   : > { %p7097_p13 = pneg %p7096_p12 }
  0x8f   : > { %p7104_p6 = pnand %p7103_p3, %p7097_p13 }
  0x91   : > { %7107 = shalt.err (!%p7104_p6)
}
  0x92   : > { %6299 = dma.hbm_to_vmem [thread:$0]  (!%p7392_p7), %s9421_s27, 16, %s7451_s18, [#allocation7]  }
  0x93   : > { %s44_s25 = sadd.s32 1, %s7226_s1  ;;  %s382_s11 = sadd.s32 1, %s7218_s20 }
  0x94   : > { %p45_p9 = scmp.ge.s32.totalorder %s44_s25, 2  ;;  %p389_p1 = scmp.ne.s32.totalorder %s7218_s20, %s7214_s30 }
  0x95   : > { %p390_p4 = scmp.eq.s32.totalorder %s7230_s22, 0  ;;  %p6311_p5 = scmp.lt.s32.totalorder %s7230_s22, 2 }
  0x96   : > { %s9461_s25 = smov (%p45_p9, %s44_s25), 0  ;;  %s684_s26 = sand.u32 1, %s7230_s22  }
  0x97   : > { %9422 = sst [smem:[#allocation21_spill]] %s9461_s25  ;;  %p391_p8 = por %p390_p4, %p389_p1 }
  0x98   : > { %s379_s14 = ssub.s32 %s7226_s1, %s9461_s25  ;;  %s686_s0 = sand.u32 1, %s7218_s20  }
  0x99   : > { %p380_p10 = scmp.eq.s32.totalorder %s379_s14, 0  ;;  %s5501_s3 = sshll.u32 %s686_s0, 6 }
  0x9a   : > { %s5648_s9 = sshll.u32 %s7226_s1, 10  ;;  %s9424_s13 = sld [smem:[#allocation35_spill]] }
  0x9b   : > { %s7512_s28 = scalar_select %p380_p10, %s7218_s20, %s382_s11  }
  0x9c   : > { %s688_s8 = scalar_lea.vmem [#allocation9], %s5501_s3  ;;  %p7521_p7 = pnand %p6311_p5, %p391_p8 }
  0x9d   : > { %9423 = sst [smem:[#allocation22_spill]] %s7512_s28  ;;  %s695_s17 = sshll.u32 %s688_s8, 4  ;;  %s7525_s17 = int_to_ptr.vmem [resolvable:$true] %s695_s17 }
  0x9e   : > { %s7527_s11 = scalar_lea.sflag [#allocation10], %s684_s26  ;;  %p7110_p12 = pneg %p7521_p7 }
  0xa0   : > { %s7517_s12 = scalar_lea.hbm %s9424_s13, %s5648_s9  ;;  %s7113_s9 = scalar_lea.hbm %s9424_s13, 2048 }
  0xa1   : > { %s7108_s14 = scalar_lea.hbm %s7517_s12, 1024  ;;  %p7114_p2 = scmp.lt.u32.totalorder %s7517_s12, %s9424_s13 }
  0xa2   : > { %p7109_p11 = scmp.ne.s32.totalorder %s7517_s12, %s7108_s14  ;;  %p7115_p3 = scmp.lt.u32.totalorder %s7113_s9, %s7108_s14 }
  0xa3   : > { %p7117_p9 = scmp.lt.u32.totalorder %s7108_s14, %s7517_s12 }
  0xa4   : > { %p7111_p13 = pnand %p7110_p12, %p7109_p11  ;;  %p7116_p6 = por %p7115_p3, %p7114_p2 }
  0xa6   : > { %p7112_p0 = pneg %p7111_p13  ;;  %p7118_p1 = por %p7117_p9, %p7116_p6 }
  0xa8   : > { %p7119_p4 = pnand %p7118_p1, %p7112_p0 }
  0xaa   : > { %7122 = shalt.err (!%p7119_p4)
}
  0xab   : > { %s7123_s26 = scalar_lea.vmem %s7525_s17, 1024  ;;  %s7238_s8 = smov [#allocation9]  }
  0xac   : > { %p7124_p5 = scmp.ne.s32.totalorder %s7525_s17, %s7123_s26  ;;  %s7128_s0 = sshll.u32 %s7238_s8, 4  ;;  %s7129_s0 = int_to_ptr.vmem [resolvable:$false] %s7128_s0 }
  0xad   : > { %s7130_s3 = scalar_lea.vmem %s7129_s0, 2048  ;;  %p7131_p11 = scmp.lt.s32.totalorder %s7525_s17, %s7129_s0 }
  0xae   : > { %p7126_p8 = pnand %p7124_p5, %p7110_p12  ;;  %p7132_p13 = scmp.lt.s32.totalorder %s7130_s3, %s7123_s26 }
  0xb0   : > { %p7127_p10 = pneg %p7126_p8  ;;  %p7133_p2 = por %p7132_p13, %p7131_p11 }
  0xb2   : > { %p7134_p3 = pnand %p7133_p2, %p7127_p10 }
  0xb4   : > { %7137 = shalt.err (!%p7134_p3)
}
  0xb5   : > { %6306 = dma.hbm_to_vmem [thread:$0]  (!%p7521_p7), %s7517_s12, 1024, %s7525_s17, %s7527_s11, %s7234_s15, %s7234_s15, %s7235_s16  }
  0xb6   : > { %p9426_p12 = scmp.ne.s32.totalorder %s9414_s24, 0 }
  0xb7   : > { %p9427_p0 = scmp.eq.s32.totalorder (!%p9426_p12), %s7372_s2, 0 }
  0xb8   : > { %713 = sbr.rel (%p9426_p12) target bundleno = 3442 (0xd72), region = 96 }
  0xbf   : > { %7189 = dma.done.wait (%p9427_p0), [#allocation4], 1024   ;;  %p9428_p6 = pmov %p9427_p0 }
  0xc0   : > { %p9429_p9 = pmov %p9427_p0 }
  0xc1   : > { %7191 = vsyncadd (%p9428_p6), [#allocation4], 4294966272 }
  0xc2   : > { %7193 = dma.done.wait (%p9429_p9), [#allocation7], 1040   ;;  %p9430_p1 = pmov %p9427_p0 }
  0xc3   : > { %s727_s19 = sand.u32 1, %s7372_s2   ;;  %s729_s15 = sand.u32 1, %s7214_s30  }
  0xc4   : > { %7195 = vsyncadd (%p9430_p1), [#allocation7], 4294966256  ;;  %s5508_s16 = sshll.u32 %s729_s15, 6  ;;  %s728_s24 = scalar_lea.sflag [#allocation10], %s727_s19 }
  0xc5   : > { %s7570_s12 = scalar_lea.vmem [#allocation9], %s5508_s16  ;;  %p9431_p7 = scmp.ne.s32.totalorder %s9413_s23, 0 }
  0xc7   : > { %7197 = dma.done.wait (%p9431_p7), %s728_s24, 1024  }
  0xc8   : > { %7199 = vsyncadd (%p9431_p7), %s728_s24, 4294966272  ;;  %p9432_p4 = pmov %p9427_p0 }
  0xc9   : > { %p9433_p5 = pmov %p9427_p0 }
  0xca   : > { %7201 = dma.done.wait (%p9432_p4), [#allocation10], 1024  }
  0xcb   : > { %7203 = vsyncadd (%p9433_p5), [#allocation10], 4294966272  ;;  %p825_p8 = scmp.lt.s32.totalorder %s7222_s21, 1  ;;  %v865_v0 = vlaneseq  ;;  %s9435_s6 = sld [smem:[#allocation28_spill]]  ;;  %v7239_v2 = vmov 0.0  }
  0xcc   : > { %s9436_s5 = sld [smem:[#allocation27_spill]]  ;;  %s9437_s7 = sld [smem:[#allocation29_spill]] }
  0xcd   : > { %s7582_s17 = scalar_select %p825_p8, %s7222_s21, 1  ;;  %v866_v1 = vand.u32 127, %v865_v0 }
  0xce   : > { %s9438_s9 = sld [smem:[#allocation30_spill]]  ;;  %s9439_s13 = sld [smem:[#allocation31_spill]] }
  0xcf   : > { %vm867_vm0 = vcmp.lt.s32.totalorder %v866_v1, 32  ;;  %s5649_s8 = sshll.u32 %s7582_s17, 3  ;;  %s5650_s23 = sshll.u32 %s7582_s17, 6 }
  0xd0   : > { %v7599_v3 = vsel %vm867_vm0, 1.0, %v7239_v2  ;;  %s9440_s15 = sld [smem:[#allocation32_spill]]  ;;  %s9441_s1 = sld [smem:[#allocation33_spill]] }
  0xd1   : > { %s7597_s19 = scalar_lea.vmem %s9435_s6, %s7582_s17  ;;  %s9443_s10 = sld [smem:[#allocation36_spill]] }
  0xd2   : > { %s7604_s24 = scalar_lea.vmem %s9436_s5, %s5649_s8  ;;  %s7610_s18 = scalar_lea.vmem %s9437_s7, %s5650_s23 }
  0xd3   : > { %s9442_s7 = sld [smem:[#allocation34_spill]]  ;;  %p5517_p10 = scmp.ne.s32.totalorder %s7222_s21, 0 }
  0xd4   : > { %s7616_s0 = scalar_lea.vmem %s9438_s9, %s7582_s17  ;;  %s849_s27 = scalar_lea.vmem %s9439_s13, %s7582_s17  ;;  %v6376_v4 = vld [vmem:[#allocation6] sm:$0xff] (!%p5517_p10)   ;;  %v6377_v5 = vld [vmem:[#allocation6 + $0x8] sm:$0xff] (!%p5517_p10)   ;;  %v6378_v6 = vld [vmem:[#allocation6 + $0x10] sm:$0xff] (!%p5517_p10)  }
  0xd5   : > { %873 = sbr.rel (%p5517_p10) target bundleno = 471 (0x1d7), region = 120  ;;  %5846 = vmatprep.subr.bf16.mxu0 (!%p5517_p10), %v6376_v4  ;;  %6236 = vmatprep.subr.bf16.mxu1 (!%p5517_p10), %v6376_v4  ;;  %v6379_v7 = vld [vmem:[#allocation6 + $0x18] sm:$0xff] (!%p5517_p10)   ;;  %v6384_v8 = vld [vmem:[#allocation3] sm:$0xff] (!%p5517_p10)   ;;  %v6381_v11 = vld [vmem:[#allocation6 + $0x28] sm:$0xff] (!%p5517_p10)  }
  0xd6   : > { %s852_s8 = scalar_lea.vmem %s9440_s15, %s7582_s17  ;;  %s7629_s28 = scalar_lea.vmem %s9441_s1, %s5650_s23  ;;  %5847 = vmatpush3.bf16.msra.mxu0 (!%p5517_p10), %v6376_v4  ;;  %6244 = vmatpush3.bf16.msra.mxu1 (!%p5517_p10), %v6376_v4  ;;  %v6385_v9 = vld [vmem:[#allocation3 + $0x20] sm:$0xff] (!%p5517_p10)   ;;  %v6382_v12 = vld [vmem:[#allocation6 + $0x30] sm:$0xff] (!%p5517_p10)   ;;  %v6383_v13 = vld [vmem:[#allocation6 + $0x38] sm:$0xff] (!%p5517_p10)  }
  0xd7   : > { %s863_s30 = scalar_lea.vmem %s9443_s10, %s7582_s17  ;;  %5848 = vmatprep.subr.bf16.mxu0 (!%p5517_p10), %v6377_v5  ;;  %6237 = vmatprep.subr.bf16.mxu1 (!%p5517_p10), %v6377_v5  ;;  %v6380_v10 = vld [vmem:[#allocation6 + $0x20] sm:$0xff] (!%p5517_p10)   ;;  %v6386_v14 = vld [vmem:[#allocation3 + $0x8] sm:$0xff] (!%p5517_p10)   ;;  %v6388_v16 = vld [vmem:[#allocation3 + $0x10] sm:$0xff] (!%p5517_p10)  }
  0xd8   : > { %5862 = vmatprep.mubr.bf16.mxu0 (!%p5517_p10), %v6384_v8  ;;  %5870 = vmatprep.mubr.bf16.mxu1 (!%p5517_p10), %v6385_v9  ;;  %v6387_v15 = vld [vmem:[#allocation3 + $0x28] sm:$0xff] (!%p5517_p10)   ;;  %v6389_v17 = vld [vmem:[#allocation3 + $0x30] sm:$0xff] (!%p5517_p10)   ;;  %v6390_v18 = vld [vmem:[#allocation3 + $0x18] sm:$0xff] (!%p5517_p10)  }
  0xd9   : > { %s860_s20 = scalar_lea.vmem %s9442_s7, %s7582_s17  ;;  %v6391_v19 = vld [vmem:[#allocation3 + $0x38] sm:$0xff] (!%p5517_p10)   ;;  %v5518_v20 = vld [vmem:[#allocation8] ss:$0 sm:$0xff] (!%p5517_p10) }
  0xda   : > { %5849 = vmatpush3.bf16.msra.mxu0 (!%p5517_p10), %v6377_v5  ;;  %6245 = vmatpush3.bf16.msra.mxu1 (!%p5517_p10), %v6377_v5 }
  0xdb   : > { %5850 = vmatprep.subr.bf16.mxu0 (!%p5517_p10), %v6378_v6  ;;  %6238 = vmatprep.subr.bf16.mxu1 (!%p5517_p10), %v6378_v6 }
  0xde   : > { %5851 = vmatpush3.bf16.msra.mxu0 %v6378_v6  ;;  %6246 = vmatpush3.bf16.msra.mxu1 %v6378_v6 }
  0xdf   : > { %5852 = vmatprep.subr.bf16.mxu0 %v6379_v7  ;;  %6239 = vmatprep.subr.bf16.mxu1 %v6379_v7 }
  0xe2   : > { %5853 = vmatpush3.bf16.msra.mxu0 %v6379_v7  ;;  %6247 = vmatpush3.bf16.msra.mxu1 %v6379_v7 }
  0xe3   : > { %5854 = vmatprep.subr.bf16.mxu0 %v6380_v10  ;;  %6240 = vmatprep.subr.bf16.mxu1 %v6380_v10 }
  0xe6   : > { %5855 = vmatpush3.bf16.msra.mxu0 %v6380_v10  ;;  %6248 = vmatpush3.bf16.msra.mxu1 %v6380_v10 }
  0xe7   : > { %5856 = vmatprep.subr.bf16.mxu0 %v6381_v11  ;;  %6241 = vmatprep.subr.bf16.mxu1 %v6381_v11 }
  0xea   : > { %5857 = vmatpush3.bf16.msra.mxu0 %v6381_v11  ;;  %6249 = vmatpush3.bf16.msra.mxu1 %v6381_v11 }
  0xeb   : > { %5858 = vmatprep.subr.bf16.mxu0 %v6382_v12  ;;  %6242 = vmatprep.subr.bf16.mxu1 %v6382_v12 }
  0xee   : > { %5859 = vmatpush3.bf16.msra.mxu0 %v6382_v12  ;;  %6250 = vmatpush3.bf16.msra.mxu1 %v6382_v12 }
  0xef   : > { %5860 = vmatprep.subr.bf16.mxu0 %v6383_v13  ;;  %6243 = vmatprep.subr.bf16.mxu1 %v6383_v13 }
  0xf2   : > { %5861 = vmatpush3.bf16.msra.mxu0 %v6383_v13  ;;  %6251 = vmatpush3.bf16.msra.mxu1 %v6383_v13 }
  0xf5   : > { %5863 = vmatmul.mubr.bf16.vlgmr.msra.gmra.mrb[0].mxu0 %v6386_v14  ;;  %5871 = vmatmul.mubr.bf16.vlgmr.msra.gmra.mrb[0].mxu1 %v6387_v15 }
  0xf6   : > { %5866 = vmatprep.mubr.bf16.mxu0 %v6388_v16  ;;  %5874 = vmatprep.mubr.bf16.mxu1 %v6389_v17 }
  0xfd   : > { %5867 = vmatmul.mubr.bf16.gmra.mrb[4].mxu0 %v6390_v18  ;;  %5875 = vmatmul.mubr.bf16.gmra.mrb[4].mxu1 %v6391_v19 }
 0x1c8   : > { %v5864_v21 = vpop.f32.mrb[0].mxu0  ;;  %v5872_v22 = vpop.f32.mrb[0].mxu1 }
 0x1c9   : > { %v1052_v23 = vadd.f32 %v5864_v21, %v5518_v20  ;;  %v1084_v24 = vadd.f32 %v5872_v22, %v5518_v20  ;;  %v1043_v25 = vpop.f32.mrb[1].mxu0  ;;  %v1075_v26 = vpop.f32.mrb[1].mxu1 }
 0x1ca   : > { %v1044_v27 = vadd.f32 %v5518_v20, %v1043_v25  ;;  %v1076_v28 = vadd.f32 %v5518_v20, %v1075_v26  ;;  %v5865_v29 = vpop.f32.mrb[2].mxu0  ;;  %v5873_v30 = vpop.f32.mrb[2].mxu1 }
 0x1cb   : > { %1108 = vst [vmem:[#allocation2 + $0x10] sm:$0xff] %v1052_v23  ;;  %1116 = vst [vmem:[#allocation2 + $0x50] sm:$0xff] %v1084_v24  ;;  %v1055_v31 = vadd.f32 %v5865_v29, %v5518_v20  ;;  %v1087_v32 = vadd.f32 %v5873_v30, %v5518_v20  ;;  %v1046_v33 = vpop.f32.mrb[3].mxu0  ;;  %v1078_v34 = vpop.f32.mrb[3].mxu1 }
 0x1cc   : > { %1106 = vst [vmem:[#allocation2] sm:$0xff] %v1044_v27  ;;  %1114 = vst [vmem:[#allocation2 + $0x40] sm:$0xff] %v1076_v28  ;;  %v1047_v35 = vadd.f32 %v5518_v20, %v1046_v33  ;;  %v1079_v36 = vadd.f32 %v5518_v20, %v1078_v34 }
 0x1cd   : > { %1109 = vst [vmem:[#allocation2 + $0x18] sm:$0xff] %v1055_v31  ;;  %1117 = vst [vmem:[#allocation2 + $0x58] sm:$0xff] %v1087_v32 }
 0x1ce   : > { %1107 = vst [vmem:[#allocation2 + $0x8] sm:$0xff] %v1047_v35  ;;  %1115 = vst [vmem:[#allocation2 + $0x48] sm:$0xff] %v1079_v36 }
 0x1d0   : > { %v5868_v37 = vpop.f32.mrb[4].mxu0  ;;  %v5876_v38 = vpop.f32.mrb[4].mxu1 }
 0x1d1   : > { %v1068_v39 = vadd.f32 %v5868_v37, %v5518_v20  ;;  %v1100_v40 = vadd.f32 %v5876_v38, %v5518_v20  ;;  %v1059_v41 = vpop.f32.mrb[5].mxu0  ;;  %v1091_v42 = vpop.f32.mrb[5].mxu1 }
 0x1d2   : > { %v1060_v43 = vadd.f32 %v5518_v20, %v1059_v41  ;;  %v1092_v44 = vadd.f32 %v5518_v20, %v1091_v42  ;;  %v5869_v45 = vpop.f32.mrb[6].mxu0  ;;  %v5877_v46 = vpop.f32.mrb[6].mxu1 }
 0x1d3   : > { %1112 = vst [vmem:[#allocation2 + $0x30] sm:$0xff] %v1068_v39  ;;  %1120 = vst [vmem:[#allocation2 + $0x70] sm:$0xff] %v1100_v40  ;;  %v1071_v47 = vadd.f32 %v5869_v45, %v5518_v20  ;;  %v1103_v48 = vadd.f32 %v5877_v46, %v5518_v20  ;;  %v1062_v49 = vpop.f32.mrb[7].mxu0  ;;  %v1094_v50 = vpop.f32.mrb[7].mxu1 }
 0x1d4   : > { %1110 = vst [vmem:[#allocation2 + $0x20] sm:$0xff] %v1060_v43  ;;  %1118 = vst [vmem:[#allocation2 + $0x60] sm:$0xff] %v1092_v44  ;;  %v1063_v51 = vadd.f32 %v5518_v20, %v1062_v49  ;;  %v1095_v52 = vadd.f32 %v5518_v20, %v1094_v50 }
 0x1d5   : > { %1113 = vst [vmem:[#allocation2 + $0x38] sm:$0xff] %v1071_v47  ;;  %1121 = vst [vmem:[#allocation2 + $0x78] sm:$0xff] %v1103_v48 }
 0x1d6   : > { %1111 = vst [vmem:[#allocation2 + $0x28] sm:$0xff] %v1063_v51  ;;  %1119 = vst [vmem:[#allocation2 + $0x68] sm:$0xff] %v1095_v52 }
 0x1d7 PF: > { %v1122_v53 = vld [vmem:[#allocation2] sm:$0xff]  ;;  %v1124_v54 = vld [vmem:[#allocation2 + $0x10] sm:$0xff]  ;;  %v1123_v55 = vld [vmem:[#allocation2 + $0x8] sm:$0xff]  ;;  %s9444_s7 = sld [smem:[#allocation26_spill]]  ;;  %s9446_s25 = scalar_lea.vmem %s9361_s4, %s7582_s17  ;;  %vm1727_vm1 = vcmask 130048  }
 0x1d8   : > { %v1140_v56 = vmul.f32 %v7599_v3, %v1122_v53  ;;  %v1142_v57 = vmul.f32 %v7599_v3, %v1124_v54  ;;  %v7642_v58 = vld [vmem:[#allocation2 + $0x18] sm:$0xff]  ;;  %v1141_v59 = vmul.f32 %v7599_v3, %v1123_v55  ;;  %v7656_v4 = vld [vmem:[#allocation2 + $0x40] sm:$0xff]  ;;  %v7658_v5 = vld [vmem:[#allocation2 + $0x48] sm:$0xff]  ;;  %p5632_p11 = scmp.ne.s32.totalorder %s7222_s21, 1 }
 0x1d9   : > { %v1143_v61 = vmul.f32 %v7599_v3, %v7642_v58  ;;  %v1132_v8 = vld [vmem:[#allocation2 + $0x50] sm:$0xff]  ;;  %v7664_v9 = vld [vmem:[#allocation2 + $0x58] sm:$0xff]  ;;  %v1148_v10 = vmul.f32 %v7599_v3, %v7656_v4  ;;  %v1149_v11 = vmul.f32 %v7599_v3, %v7658_v5  ;;  %vm7241_vm2 = vmmov (!%p5632_p11), 0   ;;  %s9452_s14 = sld [smem:[#allocation38_spill]] (!%p5632_p11)  ;;  %s9453_s10 = sld [smem:[#allocation40_spill]] (!%p5632_p11) }
 0x1da   : > { %1156 = vadd.xlane.f32.xlu0 %v1140_v56  ;;  %1160 = vadd.xlane.f32.xlu1 %v1142_v57  ;;  %v7649_v63 = vld [vmem:[#allocation2 + $0x30] sm:$0xff]  ;;  %v1150_v12 = vmul.f32 %v7599_v3, %v1132_v8  ;;  %v1151_v13 = vmul.f32 %v7599_v3, %v7664_v9  ;;  %vm5169_vm3 = vcmask (!%p5632_p11), 1041409   ;;  %vm5171_vm4 = vcmask (!%p5632_p11), 1042434  }
 0x1db   : > { %v1126_v60 = vld [vmem:[#allocation2 + $0x20] sm:$0xff]  ;;  %v1146_v6 = vmul.f32 %v7599_v3, %v7649_v63  ;;  %v7701_v42 = vld [vmem:[#allocation2 + $0x70] sm:$0xff]  ;;  %vm5173_vm5 = vcmask (!%p5632_p11), 1043459   ;;  %vm5175_vm6 = vcmask (!%p5632_p11), 1044484   ;;  %vm5177_vm7 = vcmask (!%p5632_p11), 1045509  }
 0x1dc   : > { %v7651_v0 = vld [vmem:[#allocation2 + $0x38] sm:$0xff]  ;;  %v1144_v1 = vmul.f32 %v7599_v3, %v1126_v60  ;;  %v7686_v30 = vld [vmem:[#allocation2 + $0x60] sm:$0xff]  ;;  %v1154_v47 = vmul.f32 %v7599_v3, %v7701_v42  ;;  %vm5179_vm8 = vcmask (!%p5632_p11), 1046534   ;;  %vm5181_vm9 = vcmask (!%p5632_p11), 1047559  }
 0x1dd   : > { %v7647_v62 = vld [vmem:[#allocation2 + $0x28] sm:$0xff]  ;;  %v1147_v7 = vmul.f32 %v7599_v3, %v7651_v0  ;;  %v1152_v36 = vmul.f32 %v7599_v3, %v7686_v30  ;;  %v7706_v49 = vld [vmem:[#allocation2 + $0x78] sm:$0xff]  ;;  %s9445_s13 = scalar_lea.vmem %s9444_s7, %s7582_s17  ;;  %s9451_s17 = sld [smem:[#allocation37_spill]] (!%p5632_p11) }
 0x1de   : > { %1158 = vadd.xlane.f32.xlu0 %v1141_v59  ;;  %1162 = vadd.xlane.f32.xlu1 %v1143_v61  ;;  %v1145_v2 = vmul.f32 %v7599_v3, %v7647_v62  ;;  %v7695_v37 = vld [vmem:[#allocation2 + $0x68] sm:$0xff]  ;;  %v1155_v51 = vmul.f32 %v7599_v3, %v7706_v49 }
 0x1df   : > { %v1153_v40 = vmul.f32 %v7599_v3, %v7695_v37 }
 0x1e2   : > { %1164 = vadd.xlane.f32.xlu0 %v1144_v1  ;;  %1166 = vadd.xlane.f32.xlu1 %v1145_v2 }
 0x1e6   : > { %1168 = vadd.xlane.f32.xlu0 %v1146_v6  ;;  %1170 = vadd.xlane.f32.xlu1 %v1147_v7 }
 0x1ea   : > { %1172 = vadd.xlane.f32.xlu0 %v1148_v10  ;;  %1174 = vadd.xlane.f32.xlu1 %v1149_v11 }
 0x1ee   : > { %1176 = vadd.xlane.f32.xlu0 %v1150_v12  ;;  %1178 = vadd.xlane.f32.xlu1 %v1151_v13 }
 0x267   : > { %v1157_v14 = vpop.xlane.xlu0 %1156  ;;  %v1161_v15 = vpop.xlane.xlu1 %1160 }
 0x268   : > { %v1188_v16 = vmul.f32 0.03125, %v1157_v14  ;;  %v1190_v17 = vmul.f32 0.03125, %v1161_v15 }
 0x26a   : > { %v1204_v18 = vsub.f32 %v1122_v53, %v1188_v16  ;;  %v1206_v19 = vsub.f32 %v1124_v54, %v1190_v17 }
 0x26b   : > { %v1159_v20 = vpop.xlane.xlu0 %1158  ;;  %v1163_v34 = vpop.xlane.xlu1 %1162 }
 0x26c   : > { %v7674_v21 = vmul.f32 %v7599_v3, %v1204_v18  ;;  %v7677_v22 = vmul.f32 %v7599_v3, %v1206_v19  ;;  %v1189_v23 = vmul.f32 0.03125, %v1159_v20  ;;  %v1191_v41 = vmul.f32 0.03125, %v1163_v34 }
 0x26e   : > { %v1205_v24 = vsub.f32 %v1123_v55, %v1189_v23  ;;  %v1236_v25 = vmul.f32 %v7674_v21, %v7674_v21  ;;  %v1238_v29 = vmul.f32 %v7677_v22, %v7677_v22  ;;  %v1207_v46 = vsub.f32 %v7642_v58, %v1191_v41 }
 0x26f   : > { %v1165_v26 = vpop.xlane.xlu0 %1164  ;;  %v1167_v43 = vpop.xlane.xlu1 %1166 }
 0x270   : > { %v7682_v27 = vmul.f32 %v7599_v3, %v1205_v24  ;;  %v1192_v28 = vmul.f32 0.03125, %v1165_v26  ;;  %1252 = vadd.xlane.f32.xlu0 %v1236_v25  ;;  %v1193_v48 = vmul.f32 0.03125, %v1167_v43  ;;  %v7714_v54 = vmul.f32 %v7599_v3, %v1207_v46 }
 0x272   : > { %v1208_v31 = vsub.f32 %v1126_v60, %v1192_v28  ;;  %v1237_v32 = vmul.f32 %v7682_v27, %v7682_v27  ;;  %v1209_v55 = vsub.f32 %v7647_v62, %v1193_v48  ;;  %v1239_v59 = vmul.f32 %v7714_v54, %v7714_v54 }
 0x273   : > { %v1169_v33 = vpop.xlane.xlu0 %1168  ;;  %v1171_v56 = vpop.xlane.xlu1 %1170 }
 0x274   : > { %v7691_v35 = vmul.f32 %v7599_v3, %v1208_v31  ;;  %1256 = vadd.xlane.f32.xlu0 %v1238_v29  ;;  %1254 = vadd.xlane.f32.xlu1 %v1237_v32  ;;  %v1194_v52 = vmul.f32 0.03125, %v1169_v33  ;;  %v1195_v60 = vmul.f32 0.03125, %v1171_v56  ;;  %v7723_v61 = vmul.f32 %v7599_v3, %v1209_v55 }
 0x276   : > { %v1240_v38 = vmul.f32 %v7691_v35, %v7691_v35  ;;  %v1210_v58 = vsub.f32 %v7649_v63, %v1194_v52  ;;  %v1211_v6 = vsub.f32 %v7651_v0, %v1195_v60  ;;  %v1241_v63 = vmul.f32 %v7723_v61, %v7723_v61 }
 0x277   : > { %v1173_v39 = vpop.xlane.xlu0 %1172  ;;  %v1175_v1 = vpop.xlane.xlu1 %1174 }
 0x278   : > { %1180 = vadd.xlane.f32.xlu1 %v1152_v36  ;;  %1260 = vadd.xlane.f32.xlu0 %v1240_v38  ;;  %v7726_v2 = vmul.f32 %v7599_v3, %v1210_v58  ;;  %v1196_v62 = vmul.f32 0.03125, %v1173_v39  ;;  %v1197_v11 = vmul.f32 0.03125, %v1175_v1 }
 0x27a   : > { %v1212_v7 = vsub.f32 %v7656_v4, %v1196_v62  ;;  %v1242_v10 = vmul.f32 %v7726_v2, %v7726_v2  ;;  %v1213_v0 = vsub.f32 %v7658_v5, %v1197_v11 }
 0x27b   : > { %v1177_v44 = vpop.xlane.xlu0 %1176  ;;  %v1179_v12 = vpop.xlane.xlu1 %1178 }
 0x27c   : > { %v1198_v45 = vmul.f32 0.03125, %v1177_v44  ;;  %1182 = vadd.xlane.f32.xlu1 %v1153_v40  ;;  %v7738_v13 = vmul.f32 %v7599_v3, %v1212_v7  ;;  %v1199_v15 = vmul.f32 0.03125, %v1179_v12  ;;  %v7744_v4 = vmul.f32 %v7599_v3, %v1213_v0  ;;  %v7779_v0 = vld [vmem:[%s9445_s13] ss:$0 sm:$0xff] }
 0x27e   : > { %v1214_v50 = vsub.f32 %v1132_v8, %v1198_v45  ;;  %v7733_v8 = vmul.f32 %v7599_v3, %v1211_v6  ;;  %v1215_v16 = vsub.f32 %v7664_v9, %v1199_v15  ;;  %v1244_v17 = vmul.f32 %v7738_v13, %v7738_v13 }
 0x27f   : > { %v1245_v5 = vmul.f32 %v7744_v4, %v7744_v4 }
 0x280   : > { %v7711_v53 = vmul.f32 %v7599_v3, %v1214_v50  ;;  %1184 = vadd.xlane.f32.xlu1 %v1154_v47  ;;  %v1243_v14 = vmul.f32 %v7733_v8, %v7733_v8  ;;  %v7750_v18 = vmul.f32 %v7599_v3, %v1215_v16 }
 0x282   : > { %v1246_v57 = vmul.f32 %v7711_v53, %v7711_v53  ;;  %v1247_v19 = vmul.f32 %v7750_v18, %v7750_v18 }
 0x284   : > { %1186 = vadd.xlane.f32.xlu1 %v1155_v51  ;;  %1272 = vadd.xlane.f32.xlu0 %v1246_v57 }
 0x288   : > { %1258 = vadd.xlane.f32.xlu1 %v1239_v59 }
 0x28c   : > { %1262 = vadd.xlane.f32.xlu1 %v1241_v63 }
 0x290   : > { %1264 = vadd.xlane.f32.xlu1 %v1242_v10 }
 0x294   : > { %1266 = vadd.xlane.f32.xlu1 %v1243_v14 }
 0x298   : > { %1268 = vadd.xlane.f32.xlu1 %v1244_v17 }
 0x29c   : > { %1270 = vadd.xlane.f32.xlu1 %v1245_v5 }
 0x2a0   : > { %1274 = vadd.xlane.f32.xlu1 %v1247_v19 }
 0x2fd   : > { %v1253_v32 = vpop.xlane.xlu0 %1252 }
 0x2fe   : > { %v1284_v41 = vmul.f32 0.03125, %v1253_v32 }
 0x300   : > { %v1300_v46 = vadd.f32 1e-05, %v1284_v41 }
 0x301   : > { %v1255_v20 = vpop.xlane.xlu1 %1254  ;;  %v1257_v38 = vpop.xlane.xlu0 %1256 }
 0x302   : > { %v1286_v40 = vmul.f32 0.03125, %v1257_v38  ;;  %v1285_v47 = vmul.f32 0.03125, %v1255_v20 }
 0x304   : > { %v1302_v44 = vadd.f32 1e-05, %v1286_v40  ;;  %v1301_v50 = vadd.f32 1e-05, %v1285_v47 }
 0x305   : > { %v1181_v23 = vpop.xlane.xlu1 %1180  ;;  %v1261_v51 = vpop.xlane.xlu0 %1260 }
 0x306   : > { %v1200_v24 = vmul.f32 0.03125, %v1181_v23  ;;  %6585 = vrsqrt.f32 %v1302_v44  ;;  %v1288_v56 = vmul.f32 0.03125, %v1261_v51 }
 0x307   : > { %6587 = vrsqrt.f32 %v1300_v46  ;;  %v6560_v46 = vld [vmem:[%s7604_s24] sm:$0xff]  }
 0x308   : > { %v1216_v9 = vsub.f32 %v7686_v30, %v1200_v24  ;;  %v1304_v1 = vadd.f32 1e-05, %v1288_v56  ;;  %5878 = vmatprep.subr.bf16.mxu0 %v6560_v46 }
 0x309   : > { %v7757_v25 = vpop.xlane.xlu1 %1182  ;;  %5879 = vmatpush3.bf16.msra.mxu0 %v6560_v46 }
 0x30a   : > { %v7760_v26 = vmul.f32 %v7599_v3, %v1216_v9 }
 0x30c   : > { %v1248_v28 = vmul.f32 %v7760_v26, %v7760_v26 }
 0x30d   : > { %v1185_v29 = vpop.xlane.xlu1 %1184 }
 0x30e   : > { %v1202_v31 = vmul.f32 0.03125, %v1185_v29  ;;  %1276 = vadd.xlane.f32.xlu0 %v1248_v28 }
 0x310   : > { %v1218_v33 = vsub.f32 %v7701_v42, %v1202_v31  ;;  %v6586_v57 = vpop.eup %6585 }
 0x311   : > { %v7765_v34 = vpop.xlane.xlu1 %1186  ;;  %v6588_v60 = vpop.eup %6587  ;;  %v1334_v6 = vmul.f32 %v6586_v57, %v7677_v22 }
 0x312   : > { %v7768_v36 = vmul.f32 %v7599_v3, %v1218_v33  ;;  %v1332_v10 = vmul.f32 %v6588_v60, %v7674_v21  ;;  %v7790_v21 = vld [vmem:[%s9446_s25] ss:$0 sm:$0xff]  ;;  %v1273_v57 = vpop.xlane.xlu0 %1272 }
 0x313   : > { %v1356_v14 = vmul.f32 %v7779_v0, %v1334_v6 }
 0x314   : > { %v1250_v30 = vmul.f32 %v7768_v36, %v7768_v36  ;;  %v1354_v22 = vmul.f32 %v7779_v0, %v1332_v10 }
 0x315   : > { %v1259_v39 = vpop.xlane.xlu1 %1258  ;;  %v1378_v17 = vadd.f32 %v7790_v21, %v1356_v14 }
 0x316   : > { %1280 = vadd.xlane.f32.xlu1 %v1250_v30  ;;  %v1287_v45 = vmul.f32 0.03125, %v1259_v39  ;;  %v1376_v19 = vadd.f32 %v7790_v21, %v1354_v22 }
 0x318   : > { %v1303_v42 = vadd.f32 1e-05, %v1287_v45  ;;  %v6392_v23 = vpack.i.bf16 %v1378_v17, %v1376_v19 }
 0x319   : > { %v1263_v43 = vpop.xlane.xlu1 %1262 }
 0x31a   : > { %6589 = vrsqrt.f32 %v1303_v42  ;;  %v1289_v62 = vmul.f32 0.03125, %v1263_v43 }
 0x31b   : > { %6591 = vrsqrt.f32 %v1301_v50  ;;  %v1203_v50 = vmul.f32 0.03125, %v7765_v34 }
 0x31c   : > { %v1305_v12 = vadd.f32 1e-05, %v1289_v62  ;;  %v1294_v62 = vmul.f32 0.03125, %v1273_v57 }
 0x31d   : > { %v1265_v48 = vpop.xlane.xlu1 %1264  ;;  %v1219_v51 = vsub.f32 %v7706_v49, %v1203_v50 }
 0x31e   : > { %v1290_v52 = vmul.f32 0.03125, %v1265_v48 }
 0x320   : > { %v1306_v58 = vadd.f32 1e-05, %v1290_v52 }
 0x321   : > { %v1267_v55 = vpop.xlane.xlu1 %1266 }
 0x322   : > { %v1291_v59 = vmul.f32 0.03125, %v1267_v55  ;;  %6593 = vrsqrt.f32 %v1306_v58  ;;  %v7821_v55 = vmul.f32 %v7599_v3, %v1219_v51 }
 0x323   : > { %6595 = vrsqrt.f32 %v1304_v1 }
 0x324   : > { %v6590_v63 = vpop.eup %6589  ;;  %v1307_v7 = vadd.f32 1e-05, %v1291_v59  ;;  %v1251_v56 = vmul.f32 %v7821_v55, %v7821_v55 }
 0x325   : > { %v6592_v11 = vpop.eup %6591  ;;  %v1335_v15 = vmul.f32 %v6590_v63, %v7714_v54 }
 0x326   : > { %6597 = vrsqrt.f32 %v1307_v7  ;;  %v1333_v16 = vmul.f32 %v6592_v11, %v7682_v27 }
 0x327   : > { %6599 = vrsqrt.f32 %v1305_v12  ;;  %v1357_v5 = vmul.f32 %v7779_v0, %v1335_v15  ;;  %v1310_v12 = vadd.f32 1e-05, %v1294_v62 }
 0x328   : > { %v1355_v54 = vmul.f32 %v7779_v0, %v1333_v16 }
 0x329   : > { %v1379_v24 = vadd.f32 %v7790_v21, %v1357_v5 }
 0x32a   : > { %v1377_v9 = vadd.f32 %v7790_v21, %v1355_v54 }
 0x32c   : > { %v6594_v20 = vpop.eup %6593  ;;  %v6394_v31 = vpack.i.bf16 %v1379_v24, %v1377_v9 }
 0x32d   : > { %v6596_v27 = vpop.eup %6595  ;;  %v1338_v28 = vmul.f32 %v6594_v20, %v7726_v2 }
 0x32e   : > { %v1336_v32 = vmul.f32 %v6596_v27, %v7691_v35 }
 0x32f   : > { %v1360_v30 = vmul.f32 %v7779_v0, %v1338_v28 }
 0x330   : > { %v6598_v29 = vpop.eup %6597  ;;  %v1358_v39 = vmul.f32 %v7779_v0, %v1336_v32 }
 0x331   : > { %v6600_v33 = vpop.eup %6599  ;;  %v1339_v38 = vmul.f32 %v6598_v29, %v7733_v8  ;;  %v1382_v41 = vadd.f32 %v7790_v21, %v1360_v30 }
 0x332   : > { %v1337_v40 = vmul.f32 %v6600_v33, %v7723_v61  ;;  %v1380_v2 = vadd.f32 %v7790_v21, %v1358_v39  ;;  %v1201_v61 = vmul.f32 0.03125, %v7757_v25  ;;  %v1269_v25 = vpop.xlane.xlu1 %1268 }
 0x333   : > { %v1361_v43 = vmul.f32 %v7779_v0, %v1339_v38 }
 0x334   : > { %v1359_v44 = vmul.f32 %v7779_v0, %v1337_v40  ;;  %v6476_v45 = vpack.i.bf16 %v1382_v41, %v1380_v2  ;;  %v1217_v42 = vsub.f32 %v7695_v37, %v1201_v61  ;;  %v1292_v37 = vmul.f32 0.03125, %v1269_v25 }
 0x335   : > { %v1383_v35 = vadd.f32 %v7790_v21, %v1361_v43 }
 0x336   : > { %v1381_v47 = vadd.f32 %v7790_v21, %v1359_v44  ;;  %v7814_v48 = vmul.f32 %v7599_v3, %v1217_v42  ;;  %v1271_v58 = vpop.xlane.xlu1 %1270  ;;  %v1308_v59 = vadd.f32 1e-05, %v1292_v37 }
 0x337   : > { %v1293_v60 = vmul.f32 0.03125, %v1271_v58 }
 0x338   : > { %v6478_v8 = vpack.i.bf16 %v1383_v35, %v1381_v47  ;;  %v1249_v52 = vmul.f32 %v7814_v48, %v7814_v48  ;;  %6601 = vrsqrt.f32 %v1308_v59 }
 0x339   : > { %v1309_v49 = vadd.f32 1e-05, %v1293_v60 }
 0x33a   : > { %v1275_v63 = vpop.xlane.xlu1 %1274 }
 0x33b   : > { %6393 = vxpose.xlu0.b32.start [1/2] (short) %v6392_v23, 128  ;;  %6603 = vrsqrt.f32 %v1309_v49  ;;  %v1295_v14 = vmul.f32 0.03125, %v1275_v63 }
 0x33c   : > { %6605 = vrsqrt.f32 %v1310_v12 }
 0x33d   : > { %v1311_v17 = vadd.f32 1e-05, %v1295_v14 }
 0x33f   : > { %6395 = vxpose.xlu0.b32.end [2/2] (short) %v6394_v31, 128  ;;  %6607 = vrsqrt.f32 %v1311_v17 }
 0x342   : > { %v6602_v22 = vpop.eup %6601 }
 0x343   : > { %v1340_v19 = vmul.f32 %v6602_v22, %v7738_v13 }
 0x345   : > { %v6604_v54 = vpop.eup %6603  ;;  %v1362_v28 = vmul.f32 %v7779_v0, %v1340_v19 }
 0x346   : > { %v1341_v29 = vmul.f32 %v6604_v54, %v7744_v4  ;;  %v6606_v39 = vpop.eup %6605 }
 0x347   : > { %v1384_v32 = vadd.f32 %v7790_v21, %v1362_v28  ;;  %v1342_v2 = vmul.f32 %v6606_v39, %v7711_v53  ;;  %v6561_v53 = vld [vmem:[%s7610_s18] sm:$0xff]  }
 0x348   : > { %v1363_v33 = vmul.f32 %v7779_v0, %v1341_v29  ;;  %6008 = vmatprep.subr.bf16.mxu1 %v6561_v53 }
 0x349   : > { %6477 = vxpose.xlu1.b32.start [1/2] (short) %v6476_v45, 128  ;;  %v6608_v45 = vpop.eup %6607  ;;  %6009 = vmatpush3.bf16.msra.mxu1 %v6561_v53 }
 0x34a   : > { %v1385_v43 = vadd.f32 %v7790_v21, %v1363_v33  ;;  %v1343_v61 = vmul.f32 %v6608_v45, %v7750_v18 }
 0x34c   : > { %v1365_v25 = vmul.f32 %v7779_v0, %v1343_v61 }
 0x34d   : > { %6479 = vxpose.xlu1.b32.end [2/2] (short) %v6478_v8, 128  ;;  %v1364_v8 = vmul.f32 %v7779_v0, %v1342_v2 }
 0x34e   : > { %v1387_v59 = vadd.f32 %v7790_v21, %v1365_v25 }
 0x39b   : > { %v7825_v34 = vpop.xlane.xlu0 %1276 }
 0x39c   : > { %v1296_v19 = vmul.f32 0.03125, %v7825_v34 }
 0x39e   : > { %v1312_v29 = vadd.f32 1e-05, %v1296_v19 }
 0x3a0   : > { %6609 = vrsqrt.f32 %v1312_v29 }
 0x3a3   : > { %v7836_v16 = vpop.xlane.xlu1 %1280 }
 0x3a4   : > { %1278 = vadd.xlane.f32.xlu0 %v1249_v52  ;;  %v6562_v52 = vld [vmem:[%s7610_s18 + $0x8] sm:$0xff]  }
 0x3a5   : > { %6010 = vmatprep.subr.bf16.mxu1 %v6562_v52 }
 0x3a6   : > { %6011 = vmatpush3.bf16.msra.mxu1 %v6562_v52 }
 0x3ac   : > { %1282 = vadd.xlane.f32.xlu1 %v1251_v56  ;;  %v1386_v56 = vadd.f32 %v7790_v21, %v1364_v8 }
 0x3bb   : > { %v7827_v1 = vpop.trf.xlu0 }
 0x3bc   : > { %v6397_v10 = vunpack.i.l.bf16 %v7827_v1  ;;  %v6400_v34 = vunpack.i.h.bf16 %v7827_v1 }
 0x3bf   : > { %v7829_v6 = vpop.trf.xlu0 }
 0x3c0   : > { %v6402_v7 = vunpack.i.l.bf16 %v7829_v6 }
 0x3c2   : > { %v1648_v11 = vpack.c.bf16 %v6402_v7, %v6397_v10 }
 0x3c3   : > { %v7833_v15 = vpop.trf.xlu0 }
 0x3c4   : > { %5880 = vmatprep.mubr.msk.bf16.mxu0 %vm1727_vm1, %v1648_v11  ;;  %v6407_v20 = vunpack.i.l.bf16 %v7833_v15  ;;  %v6410_v61 = vunpack.i.h.bf16 %v7833_v15 }
 0x3c7   : > { %v7838_v5 = vpop.trf.xlu0 }
 0x3c8   : > { %v6412_v23 = vunpack.i.l.bf16 %v7838_v5  ;;  %v6415_v8 = vunpack.i.h.bf16 %v7838_v5 }
 0x3c9   : > { %v7843_v24 = vpop.trf.xlu1 }
 0x3ca   : > { %v1649_v27 = vpack.c.bf16 %v6412_v23, %v6407_v20 }
 0x3cb   : > { %v7845_v9 = vpop.trf.xlu0 }
 0x3cc   : > { %5881 = vmatmul.mubr.msk.bf16.vlgmr.msra.gmra.mrb[0].mxu0 %vm1727_vm1, %v1649_v27  ;;  %v6417_v30 = vunpack.i.l.bf16 %v7845_v9  ;;  %v6420_v53 = vunpack.i.h.bf16 %v7845_v9 }
 0x3cd   : > { %v7850_v31 = vpop.trf.xlu1 }
 0x3cf   : > { %v7852_v13 = vpop.trf.xlu0 }
 0x3d0   : > { %v6422_v38 = vunpack.i.l.bf16 %v7852_v13 }
 0x3d1   : > { %1520 = vxpose.xlu0.b32.start [1/2] (short) %v1384_v32, 128  ;;  %v7858_v40 = vpop.trf.xlu1 }
 0x3d2   : > { %v1650_v4 = vpack.c.bf16 %v6422_v38, %v6417_v30  ;;  %v6405_v30 = vunpack.i.h.bf16 %v7829_v6  ;;  %v6425_v6 = vunpack.i.h.bf16 %v7852_v13 }
 0x3d3   : > { %v7860_v41 = vpop.trf.xlu0 }
 0x3d4   : > { %5884 = vmatprep.mubr.msk.bf16.mxu0 %vm1727_vm1, %v1650_v4  ;;  %v6427_v46 = vunpack.i.l.bf16 %v7860_v41  ;;  %v1656_v45 = vpack.c.bf16 %v6405_v30, %v6400_v34  ;;  %v1658_v25 = vpack.c.bf16 %v6425_v6, %v6420_v53 }
 0x3d5   : > { %1521 = vxpose.xlu0.b32.end [2/2] (short) %v1385_v43, 128  ;;  %v7865_v44 = vpop.trf.xlu1 }
 0x3d6   : > { %v6496_v30 = vunpack.i.l.bf16 %v7865_v44 }
 0x3d7   : > { %v7867_v35 = vpop.trf.xlu0 }
 0x3d8   : > { %v6432_v47 = vunpack.i.l.bf16 %v7867_v35  ;;  %v6435_v13 = vunpack.i.h.bf16 %v7867_v35 }
 0x3d9   : > { %v7873_v42 = vpop.trf.xlu1 }
 0x3da   : > { %v1651_v50 = vpack.c.bf16 %v6432_v47, %v6427_v46  ;;  %v1298_v46 = vmul.f32 0.03125, %v7836_v16 }
 0x3db   : > { %v7875_v51 = vpop.trf.xlu0 }
 0x3dc   : > { %5885 = vmatmul.mubr.msk.bf16.gmra.mrb[4].mxu0 %vm1727_vm1, %v1651_v50  ;;  %v6437_v18 = vunpack.i.l.bf16 %v7875_v51  ;;  %v6610_v50 = vpop.eup %6609  ;;  %v1314_v1 = vadd.f32 1e-05, %v1298_v46  ;;  %v6564_v46 = vld [vmem:[%s7610_s18 + $0x18] sm:$0xff]  }
 0x3dd   : > { %v7882_v37 = vpop.trf.xlu1  ;;  %v1344_v16 = vmul.f32 %v6610_v50, %v7760_v26  ;;  %v6565_v50 = vld [vmem:[%s7610_s18 + $0x20] sm:$0xff]  }
 0x3de   : > { %6611 = vrsqrt.f32 %v1314_v1 }
 0x3df   : > { %1552 = vxpose.xlu1.b32.start [1/2] (short) %v1386_v56, 128  ;;  %v7884_v57 = vpop.trf.xlu0  ;;  %v1657_v56 = vpack.c.bf16 %v6415_v8, %v6410_v61  ;;  %v1366_v9 = vmul.f32 %v7779_v0, %v1344_v16 }
 0x3e0   : > { %v6442_v58 = vunpack.i.l.bf16 %v7884_v57  ;;  %v6445_v15 = vunpack.i.h.bf16 %v7884_v57 }
 0x3e1   : > { %v7889_v60 = vpop.trf.xlu1  ;;  %v1388_v26 = vadd.f32 %v7790_v21, %v1366_v9 }
 0x3e2   : > { %v1652_v49 = vpack.c.bf16 %v6442_v58, %v6437_v18  ;;  %v6430_v18 = vunpack.i.h.bf16 %v7860_v41  ;;  %v6440_v58 = vunpack.i.h.bf16 %v7875_v51  ;;  %v6481_v51 = vunpack.i.l.bf16 %v7843_v24 }
 0x3e3   : > { %1553 = vxpose.xlu1.b32.end [2/2] (short) %v1387_v59, 128  ;;  %v7891_v62 = vpop.trf.xlu0 }
 0x3e4   : > { %5888 = vmatprep.mubr.msk.bf16.mxu0 %vm1727_vm1, %v1652_v49  ;;  %v6447_v10 = vunpack.i.l.bf16 %v7891_v62  ;;  %v1659_v59 = vpack.c.bf16 %v6435_v13, %v6430_v18  ;;  %v1660_v49 = vpack.c.bf16 %v6445_v15, %v6440_v58  ;;  %v6450_v57 = vunpack.i.h.bf16 %v7891_v62  ;;  %v6567_v18 = vld [vmem:[%s7610_s18 + $0x30] sm:$0xff]  }
 0x3e5   : > { %v7894_v63 = vpop.trf.xlu1 }
 0x3e7   : > { %v6451_v7 = vpop.trf.xlu0 }
 0x3e8   : > { %v6452_v11 = vunpack.i.l.bf16 %v6451_v7 }
 0x3e9   : > { %v7897_v12 = vpop.trf.xlu1 }
 0x3ea   : > { %v1653_v14 = vpack.c.bf16 %v6452_v11, %v6447_v10  ;;  %v6455_v10 = vunpack.i.h.bf16 %v6451_v7  ;;  %v6612_v11 = vpop.eup %6611  ;;  %v6521_v8 = vunpack.i.l.bf16 %v7897_v12 }
 0x3eb   : > { %v6456_v22 = vpop.trf.xlu0  ;;  %v1346_v19 = vmul.f32 %v6612_v11, %v7768_v36  ;;  %v6491_v36 = vunpack.i.l.bf16 %v7858_v40  ;;  %v6568_v11 = vld [vmem:[%s7610_s18 + $0x38] sm:$0xff]  }
 0x3ec   : > { %5889 = vmatmul.mubr.msk.bf16.gmra.mrb[8].mxu0 %vm1727_vm1, %v1653_v14  ;;  %v6457_v20 = vunpack.i.l.bf16 %v6456_v22  ;;  %v6460_v14 = vunpack.i.h.bf16 %v6456_v22  ;;  %v1661_v41 = vpack.c.bf16 %v6455_v10, %v6450_v57  ;;  %v6489_v57 = vunpack.i.h.bf16 %v7850_v31 }
 0x3ed   : > { %v7900_v17 = vpop.trf.xlu1 }
 0x3ee   : > { %v6526_v6 = vunpack.i.l.bf16 %v7900_v17 }
 0x3ef   : > { %v6461_v54 = vpop.trf.xlu0 }
 0x3f0   : > { %v6462_v23 = vunpack.i.l.bf16 %v6461_v54  ;;  %v6465_v35 = vunpack.i.h.bf16 %v6461_v54  ;;  %v1668_v1 = vpack.c.bf16 %v6526_v6, %v6521_v8 }
 0x3f1   : > { %v7903_v27 = vpop.trf.xlu1 }
 0x3f2   : > { %v1654_v28 = vpack.c.bf16 %v6462_v23, %v6457_v20  ;;  %v1662_v20 = vpack.c.bf16 %v6465_v35, %v6460_v14  ;;  %v6486_v23 = vunpack.i.l.bf16 %v7850_v31  ;;  %v6531_v53 = vunpack.i.l.bf16 %v7903_v27 }
 0x3f3   : > { %v6466_v32 = vpop.trf.xlu0  ;;  %v6484_v35 = vunpack.i.h.bf16 %v7843_v24  ;;  %v6504_v24 = vunpack.i.h.bf16 %v7873_v42  ;;  %v6509_v31 = vunpack.i.h.bf16 %v7882_v37 }
 0x3f4   : > { %5892 = vmatprep.mubr.msk.bf16.mxu0 %vm1727_vm1, %v1654_v28  ;;  %v6467_v39 = vunpack.i.l.bf16 %v6466_v32  ;;  %v1368_v28 = vmul.f32 %v7779_v0, %v1346_v19  ;;  %v6470_v54 = vunpack.i.h.bf16 %v6466_v32  ;;  %v1664_v29 = vpack.c.bf16 %v6486_v23, %v6481_v51 }
 0x3f5   : > { %v7906_v33 = vpop.trf.xlu1  ;;  %v1665_v32 = vpack.c.bf16 %v6496_v30, %v6491_v36  ;;  %v1672_v19 = vpack.c.bf16 %v6489_v57, %v6484_v35  ;;  %v6494_v51 = vunpack.i.h.bf16 %v7858_v40  ;;  %v6499_v23 = vunpack.i.h.bf16 %v7865_v44 }
 0x3f6   : > { %v1390_v62 = vadd.f32 %v7790_v21, %v1368_v28  ;;  %v6514_v40 = vunpack.i.h.bf16 %v7889_v60  ;;  %v6519_v44 = vunpack.i.h.bf16 %v7894_v63 }
 0x3f7   : > { %v6471_v38 = vpop.trf.xlu0 }
 0x3f8   : > { %v6472_v4 = vunpack.i.l.bf16 %v6471_v38  ;;  %v6475_v7 = vunpack.i.h.bf16 %v6471_v38  ;;  %v6563_v38 = vld [vmem:[%s7610_s18 + $0x10] sm:$0xff]  }
 0x3f9   : > { %v7910_v43 = vpop.trf.xlu1  ;;  %6012 = vmatprep.subr.bf16.mxu1 %v6563_v38 }
 0x3fa   : > { %v1655_v2 = vpack.c.bf16 %v6472_v4, %v6467_v39  ;;  %v1663_v22 = vpack.c.bf16 %v6475_v7, %v6470_v54  ;;  %v6501_v39 = vunpack.i.l.bf16 %v7873_v42  ;;  %v6506_v4 = vunpack.i.l.bf16 %v7882_v37  ;;  %6013 = vmatpush3.bf16.msra.mxu1 %v6563_v38 }
 0x3fb   : > { %6014 = vmatprep.subr.bf16.mxu1 %v6564_v46  ;;  %v6541_v16 = vunpack.i.l.bf16 %v7910_v43  ;;  %v1673_v54 = vpack.c.bf16 %v6499_v23, %v6494_v51  ;;  %v6524_v42 = vunpack.i.h.bf16 %v7897_v12  ;;  %v6529_v37 = vunpack.i.h.bf16 %v7900_v17 }
 0x3fc   : > { %5893 = vmatmul.mubr.msk.bf16.gmra.mrb[12].mxu0 %vm1727_vm1, %v1655_v2  ;;  %v1666_v34 = vpack.c.bf16 %v6506_v4, %v6501_v39  ;;  %v6511_v2 = vunpack.i.l.bf16 %v7889_v60  ;;  %v6544_v12 = vunpack.i.h.bf16 %v7910_v43 }
 0x3fd   : > { %5896 = vmatprep.mubr.msk.bf16.mxu0 %vm1727_vm1, %v1656_v45  ;;  %v7915_v47 = vpop.trf.xlu1  ;;  %v6516_v45 = vunpack.i.l.bf16 %v7894_v63  ;;  %v1676_v4 = vpack.c.bf16 %v6529_v37, %v6524_v42  ;;  %v6534_v63 = vunpack.i.h.bf16 %v7903_v27 }
 0x3fe   : > { %6015 = vmatpush3.bf16.msra.mxu1 %v6564_v46  ;;  %v6546_v13 = vunpack.i.l.bf16 %v7915_v47  ;;  %v6549_v17 = vunpack.i.h.bf16 %v7915_v47 }
 0x3ff   : > { %v1667_v61 = vpack.c.bf16 %v6516_v45, %v6511_v2  ;;  %6016 = vmatprep.subr.bf16.mxu1 %v6565_v50 }
 0x400   : > { %v1670_v58 = vpack.c.bf16 %v6546_v13, %v6541_v16 }
 0x401   : > { %v7921_v52 = vpop.trf.xlu1 }
 0x402   : > { %6017 = vmatpush3.bf16.msra.mxu1 %v6565_v50 }
 0x404   : > { %5897 = vmatmul.mubr.msk.bf16.gmra.mrb[16].mxu0 %vm1727_vm1, %v1657_v56  ;;  %v6536_v56 = vunpack.i.l.bf16 %v7906_v33 }
 0x405   : > { %5900 = vmatprep.mubr.msk.bf16.mxu0 %vm1727_vm1, %v1658_v25  ;;  %v7926_v5 = vpop.trf.xlu1  ;;  %v6566_v25 = vld [vmem:[%s7610_s18 + $0x28] sm:$0xff]  }
 0x406   : > { %6018 = vmatprep.subr.bf16.mxu1 %v6566_v25  ;;  %v1669_v15 = vpack.c.bf16 %v6536_v56, %v6531_v53  ;;  %v6556_v10 = vunpack.i.l.bf16 %v7926_v5  ;;  %v6559_v27 = vunpack.i.h.bf16 %v7926_v5 }
 0x407   : > { %6019 = vmatpush3.bf16.msra.mxu1 %v6566_v25 }
 0x408   : > { %6020 = vmatprep.subr.bf16.mxu1 %v6567_v18 }
 0x40b   : > { %6021 = vmatpush3.bf16.msra.mxu1 %v6567_v18 }
 0x40c   : > { %5901 = vmatmul.mubr.msk.bf16.gmra.mrb[20].mxu0 %vm1727_vm1, %v1659_v59  ;;  %6022 = vmatprep.subr.bf16.mxu1 %v6568_v11 }
 0x40d   : > { %5904 = vmatprep.mubr.msk.bf16.mxu0 %vm1727_vm1, %v1660_v49  ;;  %v6551_v49 = vunpack.i.l.bf16 %v7921_v52 }
 0x40e   : > { %1584 = vxpose.xlu0.b32.start [1/2] (short) %v1388_v26, 128 }
 0x40f   : > { %6023 = vmatpush3.bf16.msra.mxu1 %v6568_v11  ;;  %v1671_v14 = vpack.c.bf16 %v6556_v10, %v6551_v49 }
 0x414   : > { %5905 = vmatmul.mubr.msk.bf16.gmra.mrb[24].mxu0 %vm1727_vm1, %v1661_v41 }
 0x415   : > { %5908 = vmatprep.mubr.msk.bf16.mxu0 %vm1727_vm1, %v1662_v20 }
 0x41c   : > { %1616 = vxpose.xlu1.b32.start [1/2] (short) %v1390_v62, 128  ;;  %5909 = vmatmul.mubr.msk.bf16.gmra.mrb[28].mxu0 %vm1727_vm1, %v1663_v22  ;;  %v1674_v62 = vpack.c.bf16 %v6509_v31, %v6504_v24 }
 0x41d   : > { %5912 = vmatprep.mubr.msk.bf16.mxu0 %vm1727_vm1, %v1664_v29 }
 0x424   : > { %5913 = vmatmul.mubr.msk.bf16.gmra.mrb[32].mxu0 %vm1727_vm1, %v1665_v32  ;;  %v6539_v32 = vunpack.i.h.bf16 %v7906_v33 }
 0x425   : > { %5916 = vmatprep.mubr.msk.bf16.mxu0 %vm1727_vm1, %v1666_v34 }
 0x426   : > { %v1677_v34 = vpack.c.bf16 %v6539_v32, %v6534_v63 }
 0x42c   : > { %5917 = vmatmul.mubr.msk.bf16.gmra.mrb[36].mxu0 %vm1727_vm1, %v1667_v61 }
 0x42d   : > { %5920 = vmatprep.mubr.msk.bf16.mxu0 %vm1727_vm1, %v1668_v1 }
 0x431   : > { %v1279_v9 = vpop.xlane.xlu0 %1278 }
 0x432   : > { %v1297_v59 = vmul.f32 0.03125, %v1279_v9 }
 0x434   : > { %v1313_v26 = vadd.f32 1e-05, %v1297_v59  ;;  %5921 = vmatmul.mubr.msk.bf16.gmra.mrb[40].mxu0 %vm1727_vm1, %v1669_v15 }
 0x435   : > { %5924 = vmatprep.mubr.msk.bf16.mxu0 %vm1727_vm1, %v1670_v58 }
 0x436   : > { %6613 = vrsqrt.f32 %v1313_v26 }
 0x439   : > { %v1283_v41 = vpop.xlane.xlu1 %1282 }
 0x43a   : > { %v1299_v20 = vmul.f32 0.03125, %v1283_v41 }
 0x43c   : > { %v1315_v7 = vadd.f32 1e-05, %v1299_v20  ;;  %5925 = vmatmul.mubr.msk.bf16.gmra.mrb[44].mxu0 %vm1727_vm1, %v1671_v14 }
 0x43d   : > { %5928 = vmatprep.mubr.msk.bf16.mxu0 %vm1727_vm1, %v1672_v19 }
 0x43e   : > { %6615 = vrsqrt.f32 %v1315_v7 }
 0x440   : > { %v6614_v28 = vpop.eup %6613 }
 0x441   : > { %v1345_v29 = vmul.f32 %v6614_v28, %v7814_v48  ;;  %v1675_v48 = vpack.c.bf16 %v6519_v44, %v6514_v40 }
 0x443   : > { %v1367_v22 = vmul.f32 %v7779_v0, %v1345_v29 }
 0x444   : > { %5929 = vmatmul.mubr.msk.bf16.gmra.mrb[48].mxu0 %vm1727_vm1, %v1673_v54 }
 0x445   : > { %v1389_v36 = vadd.f32 %v7790_v21, %v1367_v22  ;;  %5932 = vmatprep.mubr.msk.bf16.mxu0 %vm1727_vm1, %v1674_v62  ;;  %v8015_v62 = vld [vmem:[%s7597_s19] ss:$0 sm:$0xff] }
 0x447   : > { %1585 = vxpose.xlu0.b32.end [2/2] (short) %v1389_v36, 128 }
 0x448   : > { %v6616_v30 = vpop.eup %6615 }
 0x449   : > { %v1347_v39 = vmul.f32 %v6616_v30, %v7821_v55  ;;  %v1678_v55 = vpack.c.bf16 %v6549_v17, %v6544_v12 }
 0x44b   : > { %v1369_v60 = vmul.f32 %v7779_v0, %v1347_v39  ;;  %v6554_v0 = vunpack.i.h.bf16 %v7921_v52 }
 0x44c   : > { %5933 = vmatmul.mubr.msk.bf16.gmra.mrb[52].mxu0 %vm1727_vm1, %v1675_v48 }
 0x44d   : > { %v1391_v38 = vadd.f32 %v7790_v21, %v1369_v60  ;;  %5936 = vmatprep.mubr.msk.bf16.mxu0 %vm1727_vm1, %v1676_v4  ;;  %v1679_v43 = vpack.c.bf16 %v6559_v27, %v6554_v0 }
 0x44f   : > { %1617 = vxpose.xlu1.b32.end [2/2] (short) %v1391_v38, 128 }
 0x451   : > { %v1536_v2 = vpop.trf.xlu0 }
 0x454   : > { %5937 = vmatmul.mubr.msk.bf16.gmra.mrb[56].mxu0 %vm1727_vm1, %v1677_v34 }
 0x455   : > { %5940 = vmatprep.mubr.msk.bf16.mxu0 %vm1727_vm1, %v1678_v55  ;;  %v1537_v33 = vpop.trf.xlu0 }
 0x456   : > { %v1680_v45 = vpack.c.bf16 %v1537_v33, %v1536_v2 }
 0x459   : > { %v1538_v47 = vpop.trf.xlu0 }
 0x45c   : > { %5941 = vmatmul.mubr.msk.bf16.gmra.mrb[60].mxu0 %vm1727_vm1, %v1679_v43 }
 0x45d   : > { %v1539_v21 = vpop.trf.xlu0  ;;  %5944 = vmatprep.mubr.msk.bf16.mxu0 %vm1727_vm1, %v1680_v45 }
 0x45e   : > { %v1681_v46 = vpack.c.bf16 %v1539_v21, %v1538_v47 }
 0x45f   : > { %v1568_v6 = vpop.trf.xlu1 }
 0x461   : > { %v1540_v8 = vpop.trf.xlu0 }
 0x463   : > { %v1569_v50 = vpop.trf.xlu1 }
 0x464   : > { %5945 = vmatmul.mubr.msk.bf16.gmra.mrb[64].mxu0 %vm1727_vm1, %v1681_v46  ;;  %v1688_v20 = vpack.c.bf16 %v1569_v50, %v1568_v6 }
 0x465   : > { %v1541_v52 = vpop.trf.xlu0 }
 0x466   : > { %v1682_v5 = vpack.c.bf16 %v1541_v52, %v1540_v8 }
 0x467   : > { %v1570_v53 = vpop.trf.xlu1 }
 0x468   : > { %5948 = vmatprep.mubr.msk.bf16.mxu0 %vm1727_vm1, %v1682_v5 }
 0x469   : > { %v1542_v61 = vpop.trf.xlu0 }
 0x46b   : > { %v1571_v16 = vpop.trf.xlu1 }
 0x46c   : > { %v1689_v31 = vpack.c.bf16 %v1571_v16, %v1570_v53 }
 0x46d   : > { %v1543_v1 = vpop.trf.xlu0 }
 0x46e   : > { %v1683_v56 = vpack.c.bf16 %v1543_v1, %v1542_v61 }
 0x46f   : > { %v1572_v15 = vpop.trf.xlu1 }
 0x470   : > { %5949 = vmatmul.mubr.msk.bf16.gmra.mrb[68].mxu0 %vm1727_vm1, %v1683_v56 }
 0x471   : > { %v1544_v25 = vpop.trf.xlu0 }
 0x473   : > { %v1573_v58 = vpop.trf.xlu1 }
 0x474   : > { %v1690_v28 = vpack.c.bf16 %v1573_v58, %v1572_v15 }
 0x475   : > { %v1545_v13 = vpop.trf.xlu0 }
 0x476   : > { %v1684_v18 = vpack.c.bf16 %v1545_v13, %v1544_v25 }
 0x477   : > { %v1574_v49 = vpop.trf.xlu1 }
 0x478   : > { %5952 = vmatprep.mubr.msk.bf16.mxu0 %vm1727_vm1, %v1684_v18 }
 0x479   : > { %v1546_v9 = vpop.trf.xlu0 }
 0x47b   : > { %v1575_v11 = vpop.trf.xlu1 }
 0x47c   : > { %v1691_v29 = vpack.c.bf16 %v1575_v11, %v1574_v49 }
 0x47d   : > { %v1547_v59 = vpop.trf.xlu0 }
 0x47e   : > { %v1685_v26 = vpack.c.bf16 %v1547_v59, %v1546_v9 }
 0x47f   : > { %v1576_v57 = vpop.trf.xlu1 }
 0x480   : > { %5953 = vmatmul.mubr.msk.bf16.gmra.mrb[72].mxu0 %vm1727_vm1, %v1685_v26 }
 0x481   : > { %v1548_v10 = vpop.trf.xlu0 }
 0x483   : > { %v1577_v19 = vpop.trf.xlu1 }
 0x484   : > { %v1692_v22 = vpack.c.bf16 %v1577_v19, %v1576_v57 }
 0x485   : > { %v1549_v35 = vpop.trf.xlu0 }
 0x486   : > { %v1686_v14 = vpack.c.bf16 %v1549_v35, %v1548_v10 }
 0x487   : > { %v1578_v23 = vpop.trf.xlu1 }
 0x488   : > { %5956 = vmatprep.mubr.msk.bf16.mxu0 %vm1727_vm1, %v1686_v14 }
 0x489   : > { %v1550_v41 = vpop.trf.xlu0 }
 0x48b   : > { %v1579_v24 = vpop.trf.xlu1 }
 0x48c   : > { %v1693_v17 = vpack.c.bf16 %v1579_v24, %v1578_v23 }
 0x48d   : > { %v1551_v51 = vpop.trf.xlu0 }
 0x48e   : > { %v1687_v7 = vpack.c.bf16 %v1551_v51, %v1550_v41 }
 0x48f   : > { %v1580_v54 = vpop.trf.xlu1 }
 0x490   : > { %5957 = vmatmul.mubr.msk.bf16.gmra.mrb[76].mxu0 %vm1727_vm1, %v1687_v7 }
 0x491   : > { %5960 = vmatprep.mubr.msk.bf16.mxu0 %vm1727_vm1, %v1688_v20 }
 0x493   : > { %v1581_v40 = vpop.trf.xlu1 }
 0x494   : > { %v1694_v34 = vpack.c.bf16 %v1581_v40, %v1580_v54 }
 0x497   : > { %v1582_v32 = vpop.trf.xlu1 }
 0x498   : > { %5961 = vmatmul.mubr.msk.bf16.gmra.mrb[80].mxu0 %vm1727_vm1, %v1689_v31 }
 0x499   : > { %5964 = vmatprep.mubr.msk.bf16.mxu0 %vm1727_vm1, %v1690_v28 }
 0x49b   : > { %v1583_v55 = vpop.trf.xlu1 }
 0x49c   : > { %v1695_v2 = vpack.c.bf16 %v1583_v55, %v1582_v32 }
 0x49f   : > { %v5882_v44 = vpop.f32.mrb[0].mxu0 }
 0x4a0   : > { %v1963_v42 = vadd.f32 %v5882_v44, %v8015_v62  ;;  %v1954_v37 = vpop.f32.mrb[1].mxu0  ;;  %5965 = vmatmul.mubr.msk.bf16.gmra.mrb[84].mxu0 %vm1727_vm1, %v1691_v29 }
 0x4a1   : > { %v1955_v36 = vadd.f32 %v8015_v62, %v1954_v37  ;;  %v5883_v30 = vpop.f32.mrb[2].mxu0  ;;  %5968 = vmatprep.mubr.msk.bf16.mxu0 %vm1727_vm1, %v1692_v22 }
 0x4a2   : > { %v2595_v48 = vmul.f32 0.70710677, %v1963_v42  ;;  %v1966_v39 = vadd.f32 %v5883_v30, %v8015_v62  ;;  %v1957_v4 = vpop.f32.mrb[3].mxu0  ;;  %v2467_v45 = vmul.f32 0.5, %v1963_v42 }
 0x4a3   : > { %v2593_v60 = vmul.f32 0.70710677, %v1955_v36  ;;  %v1958_v63 = vadd.f32 %v8015_v62, %v1957_v4  ;;  %v2465_v1 = vmul.f32 0.5, %v1955_v36 }
 0x4a4   : > { %6617 = verf.f32 %v2595_v48  ;;  %v2596_v12 = vmul.f32 0.70710677, %v1966_v39  ;;  %v2468_v52 = vmul.f32 0.5, %v1966_v39 }
 0x4a5   : > { %6619 = verf.f32 %v2593_v60  ;;  %v2594_v38 = vmul.f32 0.70710677, %v1958_v63  ;;  %v2466_v15 = vmul.f32 0.5, %v1958_v63 }
 0x4a6   : > { %6621 = verf.f32 %v2596_v12 }
 0x4a7   : > { %6623 = verf.f32 %v2594_v38 }
 0x4a8   : > { %5969 = vmatmul.mubr.msk.bf16.gmra.mrb[88].mxu0 %vm1727_vm1, %v1693_v17 }
 0x4a9   : > { %5972 = vmatprep.mubr.msk.bf16.mxu0 %vm1727_vm1, %v1694_v34 }
 0x4ae   : > { %v6618_v0 = vpop.eup %6617 }
 0x4af   : > { %v6620_v27 = vpop.eup %6619  ;;  %v5886_v33 = vpop.f32.mrb[4].mxu0  ;;  %v2851_v47 = vadd.f32 1.0, %v6618_v0 }
 0x4b0   : > { %v6622_v43 = vpop.eup %6621  ;;  %v1979_v21 = vadd.f32 %v5886_v33, %v8015_v62  ;;  %v1970_v46 = vpop.f32.mrb[5].mxu0  ;;  %5973 = vmatmul.mubr.msk.bf16.gmra.mrb[92].mxu0 %vm1727_vm1, %v1695_v2  ;;  %v2849_v50 = vadd.f32 1.0, %v6620_v27 }
 0x4b1   : > { %v6624_v8 = vpop.eup %6623  ;;  %v2852_v6 = vadd.f32 1.0, %v6622_v43  ;;  %v1971_v5 = vadd.f32 %v8015_v62, %v1970_v46  ;;  %v5887_v61 = vpop.f32.mrb[6].mxu0  ;;  %v2979_v58 = vmul.f32 %v2851_v47, %v2467_v45 }
 0x4b2   : > { %v2599_v53 = vmul.f32 0.70710677, %v1979_v21  ;;  %v1982_v56 = vadd.f32 %v5887_v61, %v8015_v62  ;;  %v1973_v25 = vpop.f32.mrb[7].mxu0  ;;  %v2850_v16 = vadd.f32 1.0, %v6624_v8  ;;  %v2977_v26 = vmul.f32 %v2849_v50, %v2465_v1 }
 0x4b3   : > { %v2980_v13 = vmul.f32 %v2852_v6, %v2468_v52  ;;  %v2597_v18 = vmul.f32 0.70710677, %v1971_v5  ;;  %v1974_v9 = vadd.f32 %v8015_v62, %v1973_v25  ;;  %v2471_v31 = vmul.f32 0.5, %v1979_v21 }
 0x4b4   : > { %6625 = verf.f32 %v2599_v53  ;;  %v2600_v59 = vmul.f32 0.70710677, %v1982_v56  ;;  %v2978_v10 = vmul.f32 %v2850_v16, %v2466_v15  ;;  %v2472_v28 = vmul.f32 0.5, %v1982_v56 }
 0x4b5   : > { %6627 = verf.f32 %v2597_v18  ;;  %v2598_v49 = vmul.f32 0.70710677, %v1974_v9  ;;  %v3106_v11 = vpack.c.bf16 %v2980_v13, %v2979_v58  ;;  %v2469_v40 = vmul.f32 0.5, %v1971_v5 }
 0x4b6   : > { %6629 = verf.f32 %v2600_v59  ;;  %v3105_v35 = vpack.c.bf16 %v2978_v10, %v2977_v26  ;;  %v2470_v44 = vmul.f32 0.5, %v1974_v9 }
 0x4b7   : > { %6631 = verf.f32 %v2598_v49 }
 0x4b8   : > { %6024 = vmatprep.mubr.bf16.mxu1 %v3105_v35 }
 0x4b9   : > { %6025 = vmatmul.mubr.bf16.vlgmr.msra.gmra.mrb[0].mxu1 %v3106_v11 }
 0x4be   : > { %v6626_v57 = vpop.eup %6625 }
 0x4bf   : > { %v6628_v14 = vpop.eup %6627  ;;  %v2855_v41 = vadd.f32 1.0, %v6626_v57  ;;  %v5890_v19 = vpop.f32.mrb[8].mxu0 }
 0x4c0   : > { %v6630_v20 = vpop.eup %6629  ;;  %v2853_v51 = vadd.f32 1.0, %v6628_v14  ;;  %v1995_v23 = vadd.f32 %v5890_v19, %v8015_v62  ;;  %v1986_v7 = vpop.f32.mrb[9].mxu0 }
 0x4c1   : > { %v6632_v24 = vpop.eup %6631  ;;  %v2856_v54 = vadd.f32 1.0, %v6630_v20  ;;  %v1987_v29 = vadd.f32 %v8015_v62, %v1986_v7  ;;  %v5891_v22 = vpop.f32.mrb[10].mxu0  ;;  %v2983_v30 = vmul.f32 %v2855_v41, %v2471_v31 }
 0x4c2   : > { %v2854_v42 = vadd.f32 1.0, %v6632_v24  ;;  %v2603_v37 = vmul.f32 0.70710677, %v1995_v23  ;;  %v1989_v36 = vpop.f32.mrb[11].mxu0  ;;  %v1998_v4 = vadd.f32 %v5891_v22, %v8015_v62  ;;  %v2981_v63 = vmul.f32 %v2853_v51, %v2469_v40 }
 0x4c3   : > { %v2984_v48 = vmul.f32 %v2856_v54, %v2472_v28  ;;  %v2601_v39 = vmul.f32 0.70710677, %v1987_v29  ;;  %v1600_v60 = vpop.trf.xlu0  ;;  %v1990_v12 = vadd.f32 %v8015_v62, %v1989_v36  ;;  %v2475_v50 = vmul.f32 0.5, %v1995_v23 }
 0x4c4   : > { %v2982_v32 = vmul.f32 %v2854_v42, %v2470_v44  ;;  %6633 = verf.f32 %v2603_v37  ;;  %v2604_v17 = vmul.f32 0.70710677, %v1998_v4  ;;  %v2473_v16 = vmul.f32 0.5, %v1987_v29 }
 0x4c5   : > { %6635 = verf.f32 %v2601_v39  ;;  %v3108_v38 = vpack.c.bf16 %v2984_v48, %v2983_v30  ;;  %v2602_v34 = vmul.f32 0.70710677, %v1990_v12  ;;  %v2476_v13 = vmul.f32 0.5, %v1998_v4 }
 0x4c6   : > { %v3107_v55 = vpack.c.bf16 %v2982_v32, %v2981_v63  ;;  %6637 = verf.f32 %v2604_v17  ;;  %v2474_v58 = vmul.f32 0.5, %v1990_v12 }
 0x4c7   : > { %v1601_v2 = vpop.trf.xlu0  ;;  %6639 = verf.f32 %v2602_v34 }
 0x4c8   : > { %6028 = vmatprep.mubr.bf16.mxu1 %v3107_v55  ;;  %v1696_v0 = vpack.c.bf16 %v1601_v2, %v1600_v60 }
 0x4c9   : > { %6029 = vmatmul.mubr.bf16.gmra.mrb[4].mxu1 %v3108_v38 }
 0x4ca   : > { %5976 = vmatprep.mubr.msk.bf16.mxu0 %vm1727_vm1, %v1696_v0 }
 0x4cb   : > { %v1602_v27 = vpop.trf.xlu0  ;;  %v8035_v33 = vpop.trf.xlu1 }
 0x4ce   : > { %v6634_v43 = vpop.eup %6633 }
 0x4cf   : > { %v6636_v45 = vpop.eup %6635  ;;  %v5894_v47 = vpop.f32.mrb[12].mxu0  ;;  %v2859_v46 = vadd.f32 1.0, %v6634_v43 }
 0x4d0   : > { %v1603_v21 = vpop.trf.xlu0  ;;  %v8038_v8 = vadd.f32 %v5894_v47, %v8015_v62  ;;  %v2002_v52 = vpop.f32.mrb[13].mxu0  ;;  %v2857_v1 = vadd.f32 1.0, %v6636_v45 }
 0x4d1   : > { %v1697_v6 = vpack.c.bf16 %v1603_v21, %v1602_v27  ;;  %v8040_v5 = vpop.trf.xlu1  ;;  %v6638_v61 = vpop.eup %6637  ;;  %v8043_v53 = vadd.f32 %v8015_v62, %v2002_v52  ;;  %v2987_v11 = vmul.f32 %v2859_v46, %v2475_v50 }
 0x4d2   : > { %v5895_v56 = vpop.f32.mrb[14].mxu0  ;;  %v6640_v25 = vpop.eup %6639  ;;  %v2860_v15 = vadd.f32 1.0, %v6638_v61  ;;  %v2607_v18 = vmul.f32 0.70710677, %v8038_v8  ;;  %v2985_v41 = vmul.f32 %v2857_v1, %v2473_v16  ;;  %v2479_v45 = vmul.f32 0.5, %v8038_v8 }
 0x4d3   : > { %v2005_v9 = vpop.f32.mrb[15].mxu0  ;;  %5977 = vmatmul.mubr.msk.bf16.gmra.mrb[96].mxu0 %vm1727_vm1, %v1697_v6  ;;  %v2858_v59 = vadd.f32 1.0, %v6640_v25  ;;  %v2605_v49 = vmul.f32 0.70710677, %v8043_v53  ;;  %v2014_v26 = vadd.f32 %v5895_v56, %v8015_v62  ;;  %v2477_v6 = vmul.f32 0.5, %v8043_v53 }
 0x4d4   : > { %v1604_v10 = vpop.trf.xlu0  ;;  %v2988_v35 = vmul.f32 %v2860_v15, %v2476_v13  ;;  %6641 = verf.f32 %v2607_v18  ;;  %v2006_v57 = vadd.f32 %v8015_v62, %v2005_v9 }
 0x4d5   : > { %v8050_v14 = vpop.trf.xlu1  ;;  %v2986_v19 = vmul.f32 %v2858_v59, %v2474_v58  ;;  %6643 = verf.f32 %v2605_v49  ;;  %v2608_v20 = vmul.f32 0.70710677, %v2014_v26  ;;  %v2480_v61 = vmul.f32 0.5, %v2014_v26 }
 0x4d6   : > { %v2606_v51 = vmul.f32 0.70710677, %v2006_v57  ;;  %v3110_v23 = vpack.c.bf16 %v2988_v35, %v2987_v11  ;;  %v2478_v25 = vmul.f32 0.5, %v2006_v57 }
 0x4d7   : > { %6645 = verf.f32 %v2608_v20  ;;  %v5898_v7 = vpop.f32.mrb[16].mxu0  ;;  %v3109_v24 = vpack.c.bf16 %v2986_v19, %v2985_v41 }
 0x4d8   : > { %v1605_v31 = vpop.trf.xlu0  ;;  %6647 = verf.f32 %v2606_v51  ;;  %v8053_v28 = vadd.f32 %v5898_v7, %v8015_v62  ;;  %v2018_v54 = vpop.f32.mrb[17].mxu0 }
 0x4d9   : > { %v1698_v29 = vpack.c.bf16 %v1605_v31, %v1604_v10  ;;  %v8055_v22 = vpop.trf.xlu1  ;;  %v8058_v40 = vadd.f32 %v8015_v62, %v2018_v54  ;;  %6032 = vmatprep.mubr.bf16.mxu1 %v3109_v24  ;;  %v5899_v44 = vpop.f32.mrb[18].mxu0 }
 0x4da   : > { %v2611_v42 = vmul.f32 0.70710677, %v8053_v28  ;;  %v8062_v37 = vadd.f32 %v5899_v44, %v8015_v62  ;;  %6033 = vmatmul.mubr.bf16.gmra.mrb[8].mxu1 %v3110_v23  ;;  %v2021_v36 = vpop.f32.mrb[19].mxu0  ;;  %v2483_v44 = vmul.f32 0.5, %v8053_v28 }
 0x4db   : > { %5980 = vmatprep.mubr.msk.bf16.mxu0 %vm1727_vm1, %v1698_v29  ;;  %v2609_v30 = vmul.f32 0.70710677, %v8058_v40  ;;  %v8067_v48 = vadd.f32 %v8015_v62, %v2021_v36 }
 0x4dc   : > { %v1606_v39 = vpop.trf.xlu0  ;;  %6649 = verf.f32 %v2611_v42  ;;  %v2612_v4 = vmul.f32 0.70710677, %v8062_v37  ;;  %v2484_v42 = vmul.f32 0.5, %v8062_v37 }
 0x4dd   : > { %v8070_v60 = vpop.trf.xlu1  ;;  %6651 = verf.f32 %v2609_v30  ;;  %v2610_v63 = vmul.f32 0.70710677, %v8067_v48 }
 0x4de   : > { %v6642_v32 = vpop.eup %6641  ;;  %6653 = verf.f32 %v2612_v4  ;;  %v2481_v4 = vmul.f32 0.5, %v8058_v40 }
 0x4df   : > { %v6644_v12 = vpop.eup %6643  ;;  %6655 = verf.f32 %v2610_v63  ;;  %v5902_v17 = vpop.f32.mrb[20].mxu0  ;;  %v2863_v34 = vadd.f32 1.0, %v6642_v32  ;;  %v2482_v63 = vmul.f32 0.5, %v8067_v48 }
 0x4e0   : > { %v1607_v38 = vpop.trf.xlu0  ;;  %v8074_v55 = vadd.f32 %v5902_v17, %v8015_v62  ;;  %v2034_v2 = vpop.f32.mrb[21].mxu0  ;;  %v2861_v47 = vadd.f32 1.0, %v6644_v12 }
 0x4e1   : > { %v1699_v0 = vpack.c.bf16 %v1607_v38, %v1606_v39  ;;  %v8076_v27 = vpop.trf.xlu1  ;;  %v6646_v43 = vpop.eup %6645  ;;  %v8080_v21 = vadd.f32 %v8015_v62, %v2034_v2  ;;  %v2991_v18 = vmul.f32 %v2863_v34, %v2479_v45 }
 0x4e2   : > { %v5903_v46 = vpop.f32.mrb[22].mxu0  ;;  %v6648_v52 = vpop.eup %6647  ;;  %v2864_v50 = vadd.f32 1.0, %v6646_v43  ;;  %v2615_v1 = vmul.f32 0.70710677, %v8074_v55  ;;  %v2989_v59 = vmul.f32 %v2861_v47, %v2477_v6 }
 0x4e3   : > { %v2037_v56 = vpop.f32.mrb[23].mxu0  ;;  %5981 = vmatmul.mubr.msk.bf16.gmra.mrb[100].mxu0 %vm1727_vm1, %v1699_v0  ;;  %v2862_v16 = vadd.f32 1.0, %v6648_v52  ;;  %v2613_v13 = vmul.f32 0.70710677, %v8080_v21  ;;  %v8087_v8 = vadd.f32 %v5903_v46, %v8015_v62 }
 0x4e4   : > { %v1608_v15 = vpop.trf.xlu0  ;;  %v2992_v9 = vmul.f32 %v2864_v50, %v2480_v61  ;;  %6657 = verf.f32 %v2615_v1  ;;  %v8090_v53 = vadd.f32 %v8015_v62, %v2037_v56 }
 0x4e5   : > { %v8092_v58 = vpop.trf.xlu1  ;;  %v2990_v49 = vmul.f32 %v2862_v16, %v2478_v25  ;;  %6659 = verf.f32 %v2613_v13  ;;  %v2616_v26 = vmul.f32 0.70710677, %v8087_v8 }
 0x4e6   : > { %v6650_v10 = vpop.eup %6649  ;;  %v2614_v11 = vmul.f32 0.70710677, %v8090_v53  ;;  %v3112_v35 = vpack.c.bf16 %v2992_v9, %v2991_v18  ;;  %v2487_v9 = vmul.f32 0.5, %v8074_v55 }
 0x4e7   : > { %v6652_v57 = vpop.eup %6651  ;;  %v2867_v41 = vadd.f32 1.0, %v6650_v10  ;;  %6661 = verf.f32 %v2616_v26  ;;  %v5906_v19 = vpop.f32.mrb[24].mxu0  ;;  %v3111_v20 = vpack.c.bf16 %v2990_v49, %v2989_v59 }
 0x4e8   : > { %v1609_v51 = vpop.trf.xlu0  ;;  %v6654_v23 = vpop.eup %6653  ;;  %v2865_v7 = vadd.f32 1.0, %v6652_v57  ;;  %6663 = verf.f32 %v2614_v11  ;;  %v8097_v24 = vadd.f32 %v5906_v19, %v8015_v62  ;;  %v2485_v11 = vmul.f32 0.5, %v8080_v21 }
 0x4e9   : > { %v2050_v31 = vpop.f32.mrb[25].mxu0  ;;  %v1700_v54 = vpack.c.bf16 %v1609_v51, %v1608_v15  ;;  %v6656_v29 = vpop.eup %6655  ;;  %v2868_v36 = vadd.f32 1.0, %v6654_v23  ;;  %6036 = vmatprep.mubr.bf16.mxu1 %v3111_v20  ;;  %v2995_v37 = vmul.f32 %v2867_v41, %v2483_v44  ;;  %v2486_v20 = vmul.f32 0.5, %v8090_v53 }
 0x4ea   : > { %v8102_v30 = vadd.f32 %v8015_v62, %v2050_v31  ;;  %v5907_v39 = vpop.f32.mrb[26].mxu0  ;;  %v2866_v32 = vadd.f32 1.0, %v6656_v29  ;;  %v2619_v12 = vmul.f32 0.70710677, %v8097_v24  ;;  %6037 = vmatmul.mubr.bf16.gmra.mrb[12].mxu1 %v3112_v35  ;;  %v8108_v28 = vpop.trf.xlu1  ;;  %v2993_v40 = vmul.f32 %v2865_v7, %v2481_v4 }
 0x4eb   : > { %v2053_v17 = vpop.f32.mrb[27].mxu0  ;;  %5984 = vmatprep.mubr.msk.bf16.mxu0 %vm1727_vm1, %v1700_v54  ;;  %v2996_v38 = vmul.f32 %v2868_v36, %v2484_v42  ;;  %v8112_v2 = vadd.f32 %v5907_v39, %v8015_v62  ;;  %v2488_v35 = vmul.f32 0.5, %v8087_v8 }
 0x4ec   : > { %v2617_v34 = vmul.f32 0.70710677, %v8102_v30  ;;  %v1610_v0 = vpop.trf.xlu0  ;;  %v2994_v43 = vmul.f32 %v2866_v32, %v2482_v63  ;;  %6665 = verf.f32 %v2619_v12  ;;  %v8115_v48 = vadd.f32 %v8015_v62, %v2053_v17 }
 0x4ed   : > { %v2620_v45 = vmul.f32 0.70710677, %v8112_v2  ;;  %v3114_v47 = vpack.c.bf16 %v2996_v38, %v2995_v37 }
 0x4ee   : > { %6667 = verf.f32 %v2617_v34  ;;  %v6658_v46 = vpop.eup %6657  ;;  %v2618_v52 = vmul.f32 0.70710677, %v8115_v48  ;;  %v3113_v6 = vpack.c.bf16 %v2994_v43, %v2993_v40  ;;  %v8122_v15 = vpop.trf.xlu1  ;;  %v2491_v40 = vmul.f32 0.5, %v8097_v24 }
 0x4ef   : > { %v6660_v61 = vpop.eup %6659  ;;  %6669 = verf.f32 %v2620_v45  ;;  %v5910_v50 = vpop.f32.mrb[28].mxu0  ;;  %v2871_v56 = vadd.f32 1.0, %v6658_v46  ;;  %v2490_v24 = vmul.f32 0.5, %v8115_v48 }
 0x4f0   : > { %v1611_v1 = vpop.trf.xlu0  ;;  %6671 = verf.f32 %v2618_v52  ;;  %v8120_v25 = vadd.f32 %v5910_v50, %v8015_v62  ;;  %v2066_v16 = vpop.f32.mrb[29].mxu0  ;;  %6040 = vmatprep.mubr.bf16.mxu1 %v3113_v6  ;;  %v2869_v59 = vadd.f32 1.0, %v6660_v61  ;;  %v2489_v52 = vmul.f32 0.5, %v8102_v30 }
 0x4f1   : > { %v1701_v13 = vpack.c.bf16 %v1611_v1, %v1610_v0  ;;  %v6662_v18 = vpop.eup %6661  ;;  %v8126_v49 = vadd.f32 %v8015_v62, %v2066_v16  ;;  %v5911_v26 = vpop.f32.mrb[30].mxu0  ;;  %v2999_v31 = vmul.f32 %v2871_v56, %v2487_v9  ;;  %v2492_v6 = vmul.f32 0.5, %v8112_v2 }
 0x4f2   : > { %v6664_v10 = vpop.eup %6663  ;;  %v2872_v57 = vadd.f32 1.0, %v6662_v18  ;;  %v2623_v41 = vmul.f32 0.70710677, %v8120_v25  ;;  %6041 = vmatmul.mubr.bf16.gmra.mrb[16].mxu1 %v3114_v47  ;;  %v2069_v19 = vpop.f32.mrb[31].mxu0  ;;  %v8135_v23 = vadd.f32 %v5911_v26, %v8015_v62  ;;  %v2997_v54 = vmul.f32 %v2869_v59, %v2485_v11 }
 0x4f3   : > { %5985 = vmatmul.mubr.msk.bf16.gmra.mrb[104].mxu0 %vm1727_vm1, %v1701_v13  ;;  %v2870_v55 = vadd.f32 1.0, %v6664_v10  ;;  %v2621_v51 = vmul.f32 0.70710677, %v8126_v49  ;;  %v8138_v8 = vadd.f32 %v8015_v62, %v2069_v19  ;;  %v8142_v39 = vpop.trf.xlu1 }
 0x4f4   : > { %v1612_v7 = vpop.trf.xlu0  ;;  %v3000_v21 = vmul.f32 %v2872_v57, %v2488_v35  ;;  %6673 = verf.f32 %v2623_v41  ;;  %v2624_v44 = vmul.f32 0.70710677, %v8135_v23 }
 0x4f5   : > { %v2998_v29 = vmul.f32 %v2870_v55, %v2486_v20  ;;  %6675 = verf.f32 %v2621_v51  ;;  %v2622_v53 = vmul.f32 0.70710677, %v8138_v8  ;;  %v1704_v55 = vpack.c.bf16 %v8040_v5, %v8035_v33 }
 0x4f6   : > { %v6666_v42 = vpop.eup %6665  ;;  %v3116_v36 = vpack.c.bf16 %v3000_v21, %v2999_v31  ;;  %6677 = verf.f32 %v2624_v44  ;;  %v2495_v44 = vmul.f32 0.5, %v8120_v25  ;;  %v1705_v33 = vpack.c.bf16 %v8055_v22, %v8050_v14 }
 0x4f7   : > { %v3115_v63 = vpack.c.bf16 %v2998_v29, %v2997_v54  ;;  %v5914_v32 = vpop.f32.mrb[32].mxu0  ;;  %v2875_v17 = vadd.f32 1.0, %v6666_v42  ;;  %6679 = verf.f32 %v2622_v53  ;;  %v8164_v11 = vpop.trf.xlu1  ;;  %v2494_v25 = vmul.f32 0.5, %v8138_v8 }
 0x4f8   : > { %v6668_v4 = vpop.eup %6667  ;;  %v1613_v12 = vpop.trf.xlu0  ;;  %v8145_v37 = vadd.f32 %v5914_v32, %v8015_v62 }
 0x4f9   : > { %v2082_v38 = vpop.f32.mrb[33].mxu0  ;;  %v1702_v34 = vpack.c.bf16 %v1613_v12, %v1612_v7  ;;  %v6670_v0 = vpop.eup %6669  ;;  %v2873_v43 = vadd.f32 1.0, %v6668_v4  ;;  %6044 = vmatprep.mubr.bf16.mxu1 %v3115_v63  ;;  %v3003_v9 = vmul.f32 %v2875_v17, %v2491_v40  ;;  %v2493_v4 = vmul.f32 0.5, %v8126_v49 }
 0x4fa   : > { %v8149_v45 = vadd.f32 %v8015_v62, %v2082_v38  ;;  %v5915_v47 = vpop.f32.mrb[34].mxu0  ;;  %v6672_v46 = vpop.eup %6671  ;;  %v2876_v61 = vadd.f32 1.0, %v6670_v0  ;;  %6045 = vmatmul.mubr.bf16.gmra.mrb[20].mxu1 %v3116_v36  ;;  %v2627_v50 = vmul.f32 0.70710677, %v8145_v37  ;;  %v2496_v63 = vmul.f32 0.5, %v8135_v23 }
 0x4fb   : > { %v2085_v1 = vpop.f32.mrb[35].mxu0  ;;  %5988 = vmatprep.mubr.msk.bf16.mxu0 %vm1727_vm1, %v1702_v34  ;;  %v2874_v56 = vadd.f32 1.0, %v6672_v46  ;;  %v8158_v13 = vadd.f32 %v5915_v47, %v8015_v62  ;;  %v3001_v59 = vmul.f32 %v2873_v43, %v2489_v52  ;;  %v8188_v14 = vpop.trf.xlu1  ;;  %v2499_v52 = vmul.f32 0.5, %v8145_v37 }
 0x4fc   : > { %v2625_v16 = vmul.f32 0.70710677, %v8149_v45  ;;  %v1614_v18 = vpop.trf.xlu0  ;;  %v3004_v30 = vmul.f32 %v2876_v61, %v2492_v6  ;;  %6681 = verf.f32 %v2627_v50  ;;  %v8161_v2 = vadd.f32 %v8015_v62, %v2085_v1 }
 0x4fd   : > { %v3002_v26 = vmul.f32 %v2874_v56, %v2490_v24  ;;  %v2628_v10 = vmul.f32 0.70710677, %v8158_v13  ;;  %v1706_v61 = vpack.c.bf16 %v8076_v27, %v8070_v60  ;;  %v2497_v56 = vmul.f32 0.5, %v8149_v45 }
 0x4fe   : > { %6683 = verf.f32 %v2625_v16  ;;  %v6674_v48 = vpop.eup %6673  ;;  %v3118_v35 = vpack.c.bf16 %v3004_v30, %v3003_v9  ;;  %v2626_v57 = vmul.f32 0.70710677, %v8161_v2  ;;  %v2500_v9 = vmul.f32 0.5, %v8158_v13 }
 0x4ff   : > { %v6676_v41 = vpop.eup %6675  ;;  %v3117_v19 = vpack.c.bf16 %v3002_v26, %v3001_v59  ;;  %6685 = verf.f32 %v2628_v10  ;;  %v5918_v20 = vpop.f32.mrb[36].mxu0  ;;  %v2879_v7 = vadd.f32 1.0, %v6674_v48  ;;  %v2498_v26 = vmul.f32 0.5, %v8161_v2 }
 0x500   : > { %v1615_v51 = vpop.trf.xlu0  ;;  %6687 = verf.f32 %v2626_v57  ;;  %v8170_v31 = vadd.f32 %v5918_v20, %v8015_v62  ;;  %v2098_v21 = vpop.f32.mrb[37].mxu0  ;;  %v2877_v42 = vadd.f32 1.0, %v6676_v41 }
 0x501   : > { %v1703_v54 = vpack.c.bf16 %v1615_v51, %v1614_v18  ;;  %v6678_v29 = vpop.eup %6677  ;;  %6048 = vmatprep.mubr.bf16.mxu1 %v3117_v19  ;;  %v8174_v53 = vadd.f32 %v8015_v62, %v2098_v21  ;;  %v5919_v36 = vpop.f32.mrb[38].mxu0  ;;  %v3007_v22 = vmul.f32 %v2879_v7, %v2495_v44 }
 0x502   : > { %v6680_v5 = vpop.eup %6679  ;;  %v2880_v32 = vadd.f32 1.0, %v6678_v29  ;;  %6049 = vmatmul.mubr.bf16.gmra.mrb[24].mxu1 %v3118_v35  ;;  %v2631_v12 = vmul.f32 0.70710677, %v8170_v31  ;;  %v2101_v17 = vpop.f32.mrb[39].mxu0  ;;  %v8185_v0 = vadd.f32 %v5919_v36, %v8015_v62  ;;  %v3005_v40 = vmul.f32 %v2877_v42, %v2493_v4 }
 0x503   : > { %5989 = vmatmul.mubr.msk.bf16.gmra.mrb[108].mxu0 %vm1727_vm1, %v1703_v54  ;;  %v2878_v38 = vadd.f32 1.0, %v6680_v5  ;;  %v2629_v34 = vmul.f32 0.70710677, %v8174_v53  ;;  %v8191_v23 = vadd.f32 %v8015_v62, %v2101_v17  ;;  %v8207_v10 = vpop.trf.xlu1  ;;  %v1707_v54 = vpack.c.bf16 %v8108_v28, %v8092_v58 }
 0x504   : > { %5992 = vmatprep.mubr.msk.bf16.mxu0 %vm1727_vm1, %v1704_v55  ;;  %v3008_v49 = vmul.f32 %v2880_v32, %v2496_v63  ;;  %6689 = verf.f32 %v2631_v12  ;;  %v2632_v8 = vmul.f32 0.70710677, %v8185_v0  ;;  %v2503_v44 = vmul.f32 0.5, %v8170_v31 }
 0x505   : > { %v3006_v43 = vmul.f32 %v2878_v38, %v2494_v25  ;;  %6691 = verf.f32 %v2629_v34  ;;  %v2630_v6 = vmul.f32 0.70710677, %v8191_v23  ;;  %v2501_v63 = vmul.f32 0.5, %v8174_v53 }
 0x506   : > { %v6682_v47 = vpop.eup %6681  ;;  %v3120_v46 = vpack.c.bf16 %v3008_v49, %v3007_v22  ;;  %6693 = verf.f32 %v2632_v8  ;;  %v2504_v58 = vmul.f32 0.5, %v8185_v0 }
 0x507   : > { %v3119_v1 = vpack.c.bf16 %v3006_v43, %v3005_v40  ;;  %v2883_v24 = vadd.f32 1.0, %v6682_v47  ;;  %v5922_v16 = vpop.f32.mrb[40].mxu0  ;;  %6695 = verf.f32 %v2630_v6  ;;  %v8224_v17 = vpop.trf.xlu1 }
 0x508   : > { %v6684_v50 = vpop.eup %6683  ;;  %v8201_v30 = vadd.f32 %v5922_v16, %v8015_v62  ;;  %v2114_v37 = vpop.f32.mrb[41].mxu0 }
 0x509   : > { %v2881_v18 = vadd.f32 1.0, %v6684_v50  ;;  %v6686_v59 = vpop.eup %6685  ;;  %6052 = vmatprep.mubr.bf16.mxu1 %v3119_v1  ;;  %v8205_v60 = vadd.f32 %v8015_v62, %v2114_v37  ;;  %v5923_v27 = vpop.f32.mrb[42].mxu0  ;;  %v3011_v48 = vmul.f32 %v2883_v24, %v2499_v52  ;;  %v1709_v50 = vpack.c.bf16 %v8188_v14, %v8164_v11 }
 0x50a   : > { %v6688_v45 = vpop.eup %6687  ;;  %6053 = vmatmul.mubr.bf16.gmra.mrb[28].mxu1 %v3120_v46  ;;  %v2884_v35 = vadd.f32 1.0, %v6686_v59  ;;  %v2635_v13 = vmul.f32 0.70710677, %v8201_v30  ;;  %v2117_v57 = vpop.f32.mrb[43].mxu0  ;;  %v2126_v2 = vadd.f32 %v5923_v27, %v8015_v62 }
 0x50b   : > { %5993 = vmatmul.mubr.msk.bf16.gmra.mrb[112].mxu0 %vm1727_vm1, %v1705_v33  ;;  %v3009_v41 = vmul.f32 %v2881_v18, %v2497_v56  ;;  %v2882_v19 = vadd.f32 1.0, %v6688_v45  ;;  %v2633_v20 = vmul.f32 0.70710677, %v8205_v60  ;;  %v8215_v51 = vadd.f32 %v8015_v62, %v2117_v57  ;;  %v8242_v1 = vpop.trf.xlu1 }
 0x50c   : > { %5996 = vmatprep.mubr.msk.bf16.mxu0 %vm1727_vm1, %v1706_v61  ;;  %v3012_v55 = vmul.f32 %v2884_v35, %v2500_v9  ;;  %6697 = verf.f32 %v2635_v13  ;;  %v2636_v21 = vmul.f32 0.70710677, %v2126_v2  ;;  %v1708_v33 = vpack.c.bf16 %v8142_v39, %v8122_v15 }
 0x50d   : > { %v3010_v7 = vmul.f32 %v2882_v19, %v2498_v26  ;;  %6699 = verf.f32 %v2633_v20  ;;  %v2634_v42 = vmul.f32 0.70710677, %v8215_v51  ;;  %v2502_v15 = vmul.f32 0.5, %v8191_v23 }
 0x50e   : > { %v6690_v29 = vpop.eup %6689  ;;  %v3122_v36 = vpack.c.bf16 %v3012_v55, %v3011_v48  ;;  %6701 = verf.f32 %v2636_v21  ;;  %v2507_v56 = vmul.f32 0.5, %v8201_v30  ;;  %v1710_v9 = vpack.c.bf16 %v8224_v17, %v8207_v10 }
 0x50f   : > { %v6692_v5 = vpop.eup %6691  ;;  %v2887_v4 = vadd.f32 1.0, %v6690_v29  ;;  %v5926_v32 = vpop.f32.mrb[44].mxu0  ;;  %v3121_v12 = vpack.c.bf16 %v3010_v7, %v3009_v41  ;;  %6703 = verf.f32 %v2634_v42  ;;  %v2505_v26 = vmul.f32 0.5, %v8205_v60 }
 0x510   : > { %v2885_v25 = vadd.f32 1.0, %v6692_v5  ;;  %v8228_v28 = vadd.f32 %v5926_v32, %v8015_v62  ;;  %v2130_v31 = vpop.f32.mrb[45].mxu0  ;;  %v6694_v38 = vpop.eup %6693  ;;  %v2508_v35 = vmul.f32 0.5, %v2126_v2  ;;  %v2506_v13 = vmul.f32 0.5, %v8215_v51 }
 0x511   : > { %v8232_v39 = vadd.f32 %v8015_v62, %v2130_v31  ;;  %6056 = vmatprep.mubr.bf16.mxu1 %v3121_v12  ;;  %v5927_v53 = vpop.f32.mrb[46].mxu0  ;;  %v6696_v34 = vpop.eup %6695  ;;  %v3015_v22 = vmul.f32 %v2887_v4, %v2503_v44  ;;  %v2888_v49 = vadd.f32 1.0, %v6694_v38 }
 0x512   : > { %v2639_v40 = vmul.f32 0.70710677, %v8228_v28  ;;  %6057 = vmatmul.mubr.bf16.gmra.mrb[32].mxu1 %v3122_v36  ;;  %v2133_v0 = vpop.f32.mrb[47].mxu0  ;;  %v3013_v43 = vmul.f32 %v2885_v25, %v2501_v63  ;;  %v2886_v8 = vadd.f32 1.0, %v6696_v34  ;;  %v2142_v23 = vadd.f32 %v5927_v53, %v8015_v62 }
 0x513   : > { %5997 = vmatmul.mubr.msk.bf16.gmra.mrb[116].mxu0 %vm1727_vm1, %v1707_v54  ;;  %v2637_v47 = vmul.f32 0.70710677, %v8232_v39  ;;  %v3016_v46 = vmul.f32 %v2888_v49, %v2504_v58  ;;  %v2134_v52 = vadd.f32 %v8015_v62, %v2133_v0  ;;  %v1647_v54 = vpop.trf.xlu1  ;;  %v2511_v5 = vmul.f32 0.5, %v8228_v28  ;;  %v8266_v49 = vld [vmem:[%s7597_s19] ss:$0 sm:$0xff] }
 0x514   : > { %6000 = vmatprep.mubr.msk.bf16.mxu0 %vm1727_vm1, %v1708_v33  ;;  %6705 = verf.f32 %v2639_v40  ;;  %v3014_v6 = vmul.f32 %v2886_v8, %v2502_v15  ;;  %v2640_v61 = vmul.f32 0.70710677, %v2142_v23  ;;  %v1711_v32 = vpack.c.bf16 %v1647_v54, %v8242_v1 }
 0x515   : > { %6707 = verf.f32 %v2637_v47  ;;  %v2638_v16 = vmul.f32 0.70710677, %v2134_v52  ;;  %v3124_v18 = vpack.c.bf16 %v3016_v46, %v3015_v22  ;;  %v2509_v25 = vmul.f32 0.5, %v8232_v39 }
 0x516   : > { %v6698_v24 = vpop.eup %6697  ;;  %6709 = verf.f32 %v2640_v61  ;;  %v3123_v45 = vpack.c.bf16 %v3014_v6, %v3013_v43  ;;  %v2512_v15 = vmul.f32 0.5, %v2142_v23  ;;  %v2510_v28 = vmul.f32 0.5, %v2134_v52 }
 0x517   : > { %v6700_v37 = vpop.eup %6699  ;;  %v2891_v59 = vadd.f32 1.0, %v6698_v24  ;;  %v5930_v27 = vpop.f32.mrb[48].mxu0  ;;  %6711 = verf.f32 %v2638_v16 }
 0x518   : > { %v2889_v48 = vadd.f32 1.0, %v6700_v37  ;;  %v8249_v11 = vadd.f32 %v5930_v27, %v8015_v62  ;;  %v2146_v14 = vpop.f32.mrb[49].mxu0  ;;  %v6702_v30 = vpop.eup %6701  ;;  %6060 = vmatprep.mubr.bf16.mxu1 %v3123_v45 }
 0x519   : > { %v8253_v57 = vadd.f32 %v8015_v62, %v2146_v14  ;;  %v5931_v10 = vpop.f32.mrb[50].mxu0  ;;  %v6704_v41 = vpop.eup %6703  ;;  %v3019_v60 = vmul.f32 %v2891_v59, %v2507_v56  ;;  %v2892_v19 = vadd.f32 1.0, %v6702_v30 }
 0x51a   : > { %v2643_v20 = vmul.f32 0.70710677, %v8249_v11  ;;  %6061 = vmatmul.mubr.bf16.gmra.mrb[36].mxu1 %v3124_v18  ;;  %v2149_v2 = vpop.f32.mrb[51].mxu0  ;;  %v3017_v55 = vmul.f32 %v2889_v48, %v2505_v26  ;;  %v2890_v7 = vadd.f32 1.0, %v6704_v41  ;;  %v2158_v51 = vadd.f32 %v5931_v10, %v8015_v62 }
 0x51b   : > { %6001 = vmatmul.mubr.msk.bf16.gmra.mrb[120].mxu0 %vm1727_vm1, %v1709_v50  ;;  %v2641_v21 = vmul.f32 0.70710677, %v8253_v57  ;;  %v3020_v29 = vmul.f32 %v2892_v19, %v2508_v35  ;;  %v2150_v44 = vadd.f32 %v8015_v62, %v2149_v2  ;;  %v2515_v16 = vmul.f32 0.5, %v8249_v11 }
 0x51c   : > { %6004 = vmatprep.mubr.msk.bf16.mxu0 %vm1727_vm1, %v1710_v9  ;;  %6713 = verf.f32 %v2643_v20  ;;  %v3018_v42 = vmul.f32 %v2890_v7, %v2506_v13  ;;  %v2644_v36 = vmul.f32 0.70710677, %v2158_v51  ;;  %v2513_v26 = vmul.f32 0.5, %v8253_v57 }
 0x51d   : > { %6715 = verf.f32 %v2641_v21  ;;  %v2642_v4 = vmul.f32 0.70710677, %v2150_v44  ;;  %v3126_v63 = vpack.c.bf16 %v3020_v29, %v3019_v60  ;;  %v2516_v35 = vmul.f32 0.5, %v2158_v51 }
 0x51e   : > { %v6706_v33 = vpop.eup %6705  ;;  %6717 = verf.f32 %v2644_v36  ;;  %v3125_v58 = vpack.c.bf16 %v3018_v42, %v3017_v55  ;;  %v2514_v10 = vmul.f32 0.5, %v2150_v44 }
 0x51f   : > { %v6708_v12 = vpop.eup %6707  ;;  %v2895_v17 = vadd.f32 1.0, %v6706_v33  ;;  %v5934_v31 = vpop.f32.mrb[52].mxu0  ;;  %6719 = verf.f32 %v2642_v4 }
 0x520   : > { %v2893_v38 = vadd.f32 1.0, %v6708_v12  ;;  %v2171_v53 = vadd.f32 %v5934_v31, %v8015_v62  ;;  %v2162_v34 = vpop.f32.mrb[53].mxu0  ;;  %v6710_v22 = vpop.eup %6709  ;;  %6064 = vmatprep.mubr.bf16.mxu1 %v3125_v58 }
 0x521   : > { %v2163_v40 = vadd.f32 %v8266_v49, %v2162_v34  ;;  %v5935_v0 = vpop.f32.mrb[54].mxu0  ;;  %v6712_v43 = vpop.eup %6711  ;;  %v3023_v8 = vmul.f32 %v2895_v17, %v2511_v5  ;;  %v2896_v39 = vadd.f32 1.0, %v6710_v22 }
 0x522   : > { %6065 = vmatmul.mubr.bf16.gmra.mrb[40].mxu1 %v3126_v63  ;;  %v2647_v47 = vmul.f32 0.70710677, %v2171_v53  ;;  %v2165_v46 = vpop.f32.mrb[55].mxu0  ;;  %v3021_v23 = vmul.f32 %v2893_v38, %v2509_v25  ;;  %v2894_v6 = vadd.f32 1.0, %v6712_v43  ;;  %v2174_v61 = vadd.f32 %v8266_v49, %v5935_v0 }
 0x523   : > { %6005 = vmatmul.mubr.msk.bf16.gmra.mrb[124].mxu0 %vm1727_vm1, %v1711_v32  ;;  %v2645_v62 = vmul.f32 0.70710677, %v2163_v40  ;;  %v3024_v52 = vmul.f32 %v2896_v39, %v2512_v15  ;;  %v2166_v50 = vadd.f32 %v8266_v49, %v2165_v46  ;;  %v2519_v33 = vmul.f32 0.5, %v2171_v53 }
 0x524   : > { %6721 = verf.f32 %v2647_v47  ;;  %v3022_v1 = vmul.f32 %v2894_v6, %v2510_v28  ;;  %v2648_v24 = vmul.f32 0.70710677, %v2174_v61  ;;  %v2517_v12 = vmul.f32 0.5, %v2163_v40 }
 0x525   : > { %6723 = verf.f32 %v2645_v62  ;;  %v3128_v18 = vpack.c.bf16 %v3024_v52, %v3023_v8  ;;  %v2646_v9 = vmul.f32 0.70710677, %v2166_v50  ;;  %v2520_v31 = vmul.f32 0.5, %v2174_v61 }
 0x526   : > { %v6714_v56 = vpop.eup %6713  ;;  %v3127_v27 = vpack.c.bf16 %v3022_v1, %v3021_v23  ;;  %6725 = verf.f32 %v2648_v24  ;;  %v2518_v22 = vmul.f32 0.5, %v2166_v50 }
 0x527   : > { %v6716_v37 = vpop.eup %6715  ;;  %v2899_v59 = vadd.f32 1.0, %v6714_v56  ;;  %v5938_v45 = vpop.f32.mrb[56].mxu0  ;;  %6727 = verf.f32 %v2646_v9 }
 0x528   : > { %v2897_v48 = vadd.f32 1.0, %v6716_v37  ;;  %v2187_v14 = vadd.f32 %v8266_v49, %v5938_v45  ;;  %v2178_v30 = vpop.f32.mrb[57].mxu0  ;;  %v6718_v13 = vpop.eup %6717  ;;  %6068 = vmatprep.mubr.bf16.mxu1 %v3127_v27 }
 0x529   : > { %v2179_v11 = vadd.f32 %v8266_v49, %v2178_v30  ;;  %v5939_v41 = vpop.f32.mrb[58].mxu0  ;;  %v6720_v60 = vpop.eup %6719  ;;  %v3027_v19 = vmul.f32 %v2899_v59, %v2515_v16  ;;  %v2900_v20 = vadd.f32 1.0, %v6718_v13 }
 0x52a   : > { %6069 = vmatmul.mubr.bf16.gmra.mrb[44].mxu1 %v3128_v18  ;;  %v2651_v57 = vmul.f32 0.70710677, %v2187_v14  ;;  %v2181_v2 = vpop.f32.mrb[59].mxu0  ;;  %v3025_v55 = vmul.f32 %v2897_v48, %v2513_v26  ;;  %v2898_v7 = vadd.f32 1.0, %v6720_v60  ;;  %v2190_v51 = vadd.f32 %v8266_v49, %v5939_v41 }
 0x52b   : > { %v2649_v21 = vmul.f32 0.70710677, %v2179_v11  ;;  %v3028_v54 = vmul.f32 %v2900_v20, %v2516_v35  ;;  %v2182_v29 = vadd.f32 %v8266_v49, %v2181_v2  ;;  %v2523_v24 = vmul.f32 0.5, %v2187_v14 }
 0x52c   : > { %6729 = verf.f32 %v2651_v57  ;;  %v3026_v44 = vmul.f32 %v2898_v7, %v2514_v10  ;;  %v2652_v42 = vmul.f32 0.70710677, %v2190_v51  ;;  %v2521_v37 = vmul.f32 0.5, %v2179_v11 }
 0x52d   : > { %6731 = verf.f32 %v2649_v21  ;;  %v3130_v5 = vpack.c.bf16 %v3028_v54, %v3027_v19  ;;  %v2650_v4 = vmul.f32 0.70710677, %v2182_v29  ;;  %v2524_v27 = vmul.f32 0.5, %v2190_v51 }
 0x52e   : > { %v6722_v36 = vpop.eup %6721  ;;  %v3129_v17 = vpack.c.bf16 %v3026_v44, %v3025_v55  ;;  %6733 = verf.f32 %v2652_v42  ;;  %v2522_v48 = vmul.f32 0.5, %v2182_v29 }
 0x52f   : > { %v6724_v63 = vpop.eup %6723  ;;  %v2903_v32 = vadd.f32 1.0, %v6722_v36  ;;  %v5942_v25 = vpop.f32.mrb[60].mxu0  ;;  %6735 = verf.f32 %v2650_v4 }
 0x530   : > { %v2901_v58 = vadd.f32 1.0, %v6724_v63  ;;  %v2203_v38 = vadd.f32 %v8266_v49, %v5942_v25  ;;  %v2194_v15 = vpop.f32.mrb[61].mxu0  ;;  %v6726_v34 = vpop.eup %6725  ;;  %6072 = vmatprep.mubr.bf16.mxu1 %v3129_v17 }
 0x531   : > { %v2195_v28 = vadd.f32 %v8266_v49, %v2194_v15  ;;  %v5943_v53 = vpop.f32.mrb[62].mxu0  ;;  %v6728_v0 = vpop.eup %6727  ;;  %v3031_v43 = vmul.f32 %v2903_v32, %v2519_v33  ;;  %v2904_v8 = vadd.f32 1.0, %v6726_v34 }
 0x532   : > { %6073 = vmatmul.mubr.bf16.gmra.mrb[48].mxu1 %v3130_v5  ;;  %v2655_v40 = vmul.f32 0.70710677, %v2203_v38  ;;  %v2197_v39 = vpop.f32.mrb[63].mxu0  ;;  %v3029_v47 = vmul.f32 %v2901_v58, %v2517_v12  ;;  %v2902_v46 = vadd.f32 1.0, %v6728_v0  ;;  %v2206_v6 = vadd.f32 %v8266_v49, %v5943_v53 }
 0x533   : > { %v2653_v23 = vmul.f32 0.70710677, %v2195_v28  ;;  %v3032_v62 = vmul.f32 %v2904_v8, %v2520_v31  ;;  %v2198_v61 = vadd.f32 %v8266_v49, %v2197_v39  ;;  %v2527_v20 = vmul.f32 0.5, %v2203_v38 }
 0x534   : > { %6737 = verf.f32 %v2655_v40  ;;  %v3030_v52 = vmul.f32 %v2902_v46, %v2518_v22  ;;  %v2656_v50 = vmul.f32 0.70710677, %v2206_v6  ;;  %v2525_v7 = vmul.f32 0.5, %v2195_v28 }
 0x535   : > { %6739 = verf.f32 %v2653_v23  ;;  %v3132_v56 = vpack.c.bf16 %v3032_v62, %v3031_v43  ;;  %v2654_v16 = vmul.f32 0.70710677, %v2198_v61  ;;  %v2528_v44 = vmul.f32 0.5, %v2206_v6 }
 0x536   : > { %v6730_v1 = vpop.eup %6729  ;;  %v3131_v59 = vpack.c.bf16 %v3030_v52, %v3029_v47  ;;  %6741 = verf.f32 %v2656_v50  ;;  %v2526_v5 = vmul.f32 0.5, %v2198_v61 }
 0x537   : > { %v6732_v18 = vpop.eup %6731  ;;  %v2907_v9 = vadd.f32 1.0, %v6730_v1  ;;  %6743 = verf.f32 %v2654_v16  ;;  %v5946_v11 = vpop.f32.mrb[64].mxu0 }
 0x538   : > { %v2905_v26 = vadd.f32 1.0, %v6732_v18  ;;  %v6734_v45 = vpop.eup %6733  ;;  %6076 = vmatprep.mubr.bf16.mxu1 %v3131_v59  ;;  %v2219_v51 = vadd.f32 %v8266_v49, %v5946_v11  ;;  %v2210_v54 = vpop.f32.mrb[65].mxu0 }
 0x539   : > { %v6736_v35 = vpop.eup %6735  ;;  %v3035_v30 = vmul.f32 %v2907_v9, %v2523_v24  ;;  %v2908_v13 = vadd.f32 1.0, %v6734_v45  ;;  %v2211_v42 = vadd.f32 %v8266_v49, %v2210_v54  ;;  %v5947_v36 = vpop.f32.mrb[66].mxu0 }
 0x53a   : > { %6077 = vmatmul.mubr.bf16.gmra.mrb[52].mxu1 %v3132_v56  ;;  %v3033_v10 = vmul.f32 %v2905_v26, %v2521_v37  ;;  %v2906_v41 = vadd.f32 1.0, %v6736_v35  ;;  %v2659_v4 = vmul.f32 0.70710677, %v2219_v51  ;;  %v2222_v63 = vadd.f32 %v8266_v49, %v5947_v36  ;;  %v2213_v32 = vpop.f32.mrb[67].mxu0 }
 0x53b   : > { %v3036_v14 = vmul.f32 %v2908_v13, %v2524_v27  ;;  %v2657_v58 = vmul.f32 0.70710677, %v2211_v42  ;;  %v2214_v22 = vadd.f32 %v8266_v49, %v2213_v32  ;;  %v2531_v18 = vmul.f32 0.5, %v2219_v51 }
 0x53c   : > { %v3034_v60 = vmul.f32 %v2906_v41, %v2522_v48  ;;  %6745 = verf.f32 %v2659_v4  ;;  %v2660_v15 = vmul.f32 0.70710677, %v2222_v63  ;;  %v2529_v37 = vmul.f32 0.5, %v2211_v42 }
 0x53d   : > { %v3134_v57 = vpack.c.bf16 %v3036_v14, %v3035_v30  ;;  %6747 = verf.f32 %v2657_v58  ;;  %v2658_v0 = vmul.f32 0.70710677, %v2214_v22  ;;  %v2530_v27 = vmul.f32 0.5, %v2214_v22 }
 0x53e   : > { %v6738_v19 = vpop.eup %6737  ;;  %v3133_v21 = vpack.c.bf16 %v3034_v60, %v3033_v10  ;;  %6749 = verf.f32 %v2660_v15  ;;  %v2532_v45 = vmul.f32 0.5, %v2222_v63 }
 0x53f   : > { %v6740_v2 = vpop.eup %6739  ;;  %v2911_v55 = vadd.f32 1.0, %v6738_v19  ;;  %6751 = verf.f32 %v2658_v0 }
 0x540   : > { %v2909_v29 = vadd.f32 1.0, %v6740_v2  ;;  %v6742_v33 = vpop.eup %6741  ;;  %6080 = vmatprep.mubr.bf16.mxu1 %v3133_v21 }
 0x541   : > { %v6744_v12 = vpop.eup %6743  ;;  %v3039_v17 = vmul.f32 %v2911_v55, %v2527_v20  ;;  %v2912_v25 = vadd.f32 1.0, %v6742_v33 }
 0x542   : > { %6081 = vmatmul.mubr.bf16.gmra.mrb[56].mxu1 %v3134_v57  ;;  %v3037_v31 = vmul.f32 %v2909_v29, %v2525_v7  ;;  %v2910_v38 = vadd.f32 1.0, %v6744_v12 }
 0x543   : > { %v3040_v34 = vmul.f32 %v2912_v25, %v2528_v44  ;;  %v5950_v43 = vpop.f32.mrb[68].mxu0 }
 0x544   : > { %v3038_v28 = vmul.f32 %v2910_v38, %v2526_v5  ;;  %v2235_v40 = vadd.f32 %v8266_v49, %v5950_v43  ;;  %v2226_v39 = vpop.f32.mrb[69].mxu0 }
 0x545   : > { %v3136_v53 = vpack.c.bf16 %v3040_v34, %v3039_v17  ;;  %v2227_v47 = vadd.f32 %v8266_v49, %v2226_v39  ;;  %v5951_v46 = vpop.f32.mrb[70].mxu0 }
 0x546   : > { %v3135_v8 = vpack.c.bf16 %v3038_v28, %v3037_v31  ;;  %v2663_v23 = vmul.f32 0.70710677, %v2235_v40  ;;  %v2238_v6 = vadd.f32 %v8266_v49, %v5951_v46  ;;  %v2229_v62 = vpop.f32.mrb[71].mxu0  ;;  %v6746_v24 = vpop.eup %6745  ;;  %v2535_v13 = vmul.f32 0.5, %v2235_v40 }
 0x547   : > { %v2661_v61 = vmul.f32 0.70710677, %v2227_v47  ;;  %v2230_v52 = vadd.f32 %v8266_v49, %v2229_v62  ;;  %v6748_v56 = vpop.eup %6747  ;;  %v2915_v9 = vadd.f32 1.0, %v6746_v24  ;;  %v2533_v10 = vmul.f32 0.5, %v2227_v47 }
 0x548   : > { %6084 = vmatprep.mubr.bf16.mxu1 %v3135_v8  ;;  %6753 = verf.f32 %v2663_v23  ;;  %v2664_v50 = vmul.f32 0.70710677, %v2238_v6  ;;  %v6750_v16 = vpop.eup %6749  ;;  %v2913_v59 = vadd.f32 1.0, %v6748_v56  ;;  %v2536_v41 = vmul.f32 0.5, %v2238_v6 }
 0x549   : > { %6755 = verf.f32 %v2661_v61  ;;  %v2662_v1 = vmul.f32 0.70710677, %v2230_v52  ;;  %v6752_v26 = vpop.eup %6751  ;;  %v2916_v48 = vadd.f32 1.0, %v6750_v16  ;;  %v3043_v20 = vmul.f32 %v2915_v9, %v2531_v18 }
 0x54a   : > { %6085 = vmatmul.mubr.bf16.gmra.mrb[60].mxu1 %v3136_v53  ;;  %6757 = verf.f32 %v2664_v50  ;;  %v2914_v35 = vadd.f32 1.0, %v6752_v26  ;;  %v3041_v57 = vmul.f32 %v2913_v59, %v2529_v37  ;;  %v2534_v11 = vmul.f32 0.5, %v2230_v52 }
 0x54b   : > { %6759 = verf.f32 %v2662_v1  ;;  %v3044_v36 = vmul.f32 %v2916_v48, %v2532_v45 }
 0x54c   : > { %v3042_v21 = vmul.f32 %v2914_v35, %v2530_v27 }
 0x54d   : > { %v3138_v22 = vpack.c.bf16 %v3044_v36, %v3043_v20 }
 0x54e   : > { %v3137_v38 = vpack.c.bf16 %v3042_v21, %v3041_v57 }
 0x550   : > { %6088 = vmatprep.mubr.bf16.mxu1 %v3137_v38 }
 0x552   : > { %v6754_v19 = vpop.eup %6753  ;;  %6089 = vmatmul.mubr.bf16.gmra.mrb[64].mxu1 %v3138_v22 }
 0x553   : > { %v5954_v30 = vpop.f32.mrb[72].mxu0  ;;  %v6756_v7 = vpop.eup %6755  ;;  %v2919_v51 = vadd.f32 1.0, %v6754_v19 }
 0x554   : > { %v2251_v14 = vadd.f32 %v8266_v49, %v5954_v30  ;;  %v2242_v60 = vpop.f32.mrb[73].mxu0  ;;  %v6758_v42 = vpop.eup %6757  ;;  %v2917_v33 = vadd.f32 1.0, %v6756_v7 }
 0x555   : > { %v2243_v2 = vadd.f32 %v8266_v49, %v2242_v60  ;;  %v5955_v55 = vpop.f32.mrb[74].mxu0  ;;  %v6760_v63 = vpop.eup %6759  ;;  %v2920_v32 = vadd.f32 1.0, %v6758_v42  ;;  %v3047_v25 = vmul.f32 %v2919_v51, %v2535_v13 }
 0x556   : > { %v2667_v54 = vmul.f32 0.70710677, %v2251_v14  ;;  %v2254_v29 = vadd.f32 %v8266_v49, %v5955_v55  ;;  %v2245_v44 = vpop.f32.mrb[75].mxu0  ;;  %v2918_v12 = vadd.f32 1.0, %v6760_v63  ;;  %v3045_v58 = vmul.f32 %v2917_v33, %v2533_v10 }
 0x557   : > { %v2665_v5 = vmul.f32 0.70710677, %v2243_v2  ;;  %v2246_v4 = vadd.f32 %v8266_v49, %v2245_v44  ;;  %v3048_v15 = vmul.f32 %v2920_v32, %v2536_v41  ;;  %v2539_v43 = vmul.f32 0.5, %v2251_v14 }
 0x558   : > { %6761 = verf.f32 %v2667_v54  ;;  %v2668_v17 = vmul.f32 0.70710677, %v2254_v29  ;;  %v3046_v34 = vmul.f32 %v2918_v12, %v2534_v11  ;;  %v2537_v39 = vmul.f32 0.5, %v2243_v2 }
 0x559   : > { %6763 = verf.f32 %v2665_v5  ;;  %v2666_v31 = vmul.f32 0.70710677, %v2246_v4  ;;  %v3140_v53 = vpack.c.bf16 %v3048_v15, %v3047_v25  ;;  %v2540_v23 = vmul.f32 0.5, %v2254_v29 }
 0x55a   : > { %6765 = verf.f32 %v2668_v17  ;;  %v3139_v28 = vpack.c.bf16 %v3046_v34, %v3045_v58  ;;  %v2538_v52 = vmul.f32 0.5, %v2246_v4 }
 0x55b   : > { %6767 = verf.f32 %v2666_v31 }
 0x55c   : > { %6092 = vmatprep.mubr.bf16.mxu1 %v3139_v28 }
 0x55d   : > { %6093 = vmatmul.mubr.bf16.gmra.mrb[68].mxu1 %v3140_v53 }
 0x562   : > { %v6762_v0 = vpop.eup %6761 }
 0x563   : > { %v6764_v8 = vpop.eup %6763  ;;  %v2923_v40 = vadd.f32 1.0, %v6762_v0  ;;  %v5958_v47 = vpop.f32.mrb[76].mxu0 }
 0x564   : > { %v2921_v46 = vadd.f32 1.0, %v6764_v8  ;;  %v2267_v6 = vadd.f32 %v8266_v49, %v5958_v47  ;;  %v2258_v62 = vpop.f32.mrb[77].mxu0  ;;  %v6766_v61 = vpop.eup %6765 }
 0x565   : > { %v2259_v50 = vadd.f32 %v8266_v49, %v2258_v62  ;;  %v5959_v1 = vpop.f32.mrb[78].mxu0  ;;  %v6768_v24 = vpop.eup %6767  ;;  %v3051_v56 = vmul.f32 %v2923_v40, %v2539_v43  ;;  %v2924_v16 = vadd.f32 1.0, %v6766_v61 }
 0x566   : > { %v2671_v18 = vmul.f32 0.70710677, %v2267_v6  ;;  %v2261_v9 = vpop.f32.mrb[79].mxu0  ;;  %v3049_v37 = vmul.f32 %v2921_v46, %v2537_v39  ;;  %v2922_v59 = vadd.f32 1.0, %v6768_v24  ;;  %v2270_v27 = vadd.f32 %v8266_v49, %v5959_v1 }
 0x567   : > { %v2669_v26 = vmul.f32 0.70710677, %v2259_v50  ;;  %v3052_v45 = vmul.f32 %v2924_v16, %v2540_v23  ;;  %v2262_v48 = vadd.f32 %v8266_v49, %v2261_v9  ;;  %v2543_v44 = vmul.f32 0.5, %v2267_v6 }
 0x568   : > { %6769 = verf.f32 %v2671_v18  ;;  %v3050_v35 = vmul.f32 %v2922_v59, %v2538_v52  ;;  %v2672_v30 = vmul.f32 0.70710677, %v2270_v27  ;;  %v2541_v33 = vmul.f32 0.5, %v2259_v50 }
 0x569   : > { %6771 = verf.f32 %v2669_v26  ;;  %v2670_v13 = vmul.f32 0.70710677, %v2262_v48  ;;  %v3142_v10 = vpack.c.bf16 %v3052_v45, %v3051_v56  ;;  %v2544_v63 = vmul.f32 0.5, %v2270_v27 }
 0x56a   : > { %6773 = verf.f32 %v2672_v30  ;;  %v3141_v14 = vpack.c.bf16 %v3050_v35, %v3049_v37  ;;  %v2542_v25 = vmul.f32 0.5, %v2262_v48 }
 0x56b   : > { %v5962_v41 = vpop.f32.mrb[80].mxu0  ;;  %6775 = verf.f32 %v2670_v13 }
 0x56c   : > { %v2283_v60 = vadd.f32 %v8266_v49, %v5962_v41  ;;  %v2274_v19 = vpop.f32.mrb[81].mxu0  ;;  %6096 = vmatprep.mubr.bf16.mxu1 %v3141_v14 }
 0x56d   : > { %v2275_v20 = vadd.f32 %v8266_v49, %v2274_v19  ;;  %v5963_v57 = vpop.f32.mrb[82].mxu0  ;;  %6097 = vmatmul.mubr.bf16.gmra.mrb[72].mxu1 %v3142_v10 }
 0x56e   : > { %v2675_v11 = vmul.f32 0.70710677, %v2283_v60  ;;  %v2286_v2 = vadd.f32 %v8266_v49, %v5963_v57  ;;  %v2277_v55 = vpop.f32.mrb[83].mxu0  ;;  %v2547_v46 = vmul.f32 0.5, %v2283_v60 }
 0x56f   : > { %v2673_v7 = vmul.f32 0.70710677, %v2275_v20  ;;  %v2278_v21 = vadd.f32 %v8266_v49, %v2277_v55  ;;  %v2545_v62 = vmul.f32 0.5, %v2275_v20 }
 0x570   : > { %6777 = verf.f32 %v2675_v11  ;;  %v2676_v51 = vmul.f32 0.70710677, %v2286_v2  ;;  %v2548_v24 = vmul.f32 0.5, %v2286_v2 }
 0x571   : > { %6779 = verf.f32 %v2673_v7  ;;  %v2674_v54 = vmul.f32 0.70710677, %v2278_v21  ;;  %v2546_v37 = vmul.f32 0.5, %v2278_v21 }
 0x572   : > { %v6770_v29 = vpop.eup %6769  ;;  %6781 = verf.f32 %v2676_v51 }
 0x573   : > { %v6772_v42 = vpop.eup %6771  ;;  %v2927_v36 = vadd.f32 1.0, %v6770_v29  ;;  %6783 = verf.f32 %v2674_v54  ;;  %v5966_v5 = vpop.f32.mrb[84].mxu0 }
 0x574   : > { %v2925_v4 = vadd.f32 1.0, %v6772_v42  ;;  %v2299_v32 = vadd.f32 %v8266_v49, %v5966_v5  ;;  %v2290_v12 = vpop.f32.mrb[85].mxu0  ;;  %v6774_v17 = vpop.eup %6773 }
 0x575   : > { %v2291_v58 = vadd.f32 %v8266_v49, %v2290_v12  ;;  %v5967_v31 = vpop.f32.mrb[86].mxu0  ;;  %v6776_v38 = vpop.eup %6775  ;;  %v3055_v15 = vmul.f32 %v2927_v36, %v2543_v44  ;;  %v2928_v34 = vadd.f32 1.0, %v6774_v17 }
 0x576   : > { %v2679_v22 = vmul.f32 0.70710677, %v2299_v32  ;;  %v2293_v28 = vpop.f32.mrb[87].mxu0  ;;  %v3053_v53 = vmul.f32 %v2925_v4, %v2541_v33  ;;  %v2926_v0 = vadd.f32 1.0, %v6776_v38  ;;  %v2302_v8 = vadd.f32 %v8266_v49, %v5967_v31 }
 0x577   : > { %v2677_v43 = vmul.f32 0.70710677, %v2291_v58  ;;  %v3056_v40 = vmul.f32 %v2928_v34, %v2544_v63  ;;  %v2294_v39 = vadd.f32 %v8266_v49, %v2293_v28  ;;  %v2551_v21 = vmul.f32 0.5, %v2299_v32 }
 0x578   : > { %6785 = verf.f32 %v2679_v22  ;;  %v3054_v47 = vmul.f32 %v2926_v0, %v2542_v25  ;;  %v2680_v23 = vmul.f32 0.70710677, %v2302_v8  ;;  %v2549_v42 = vmul.f32 0.5, %v2291_v58 }
 0x579   : > { %6787 = verf.f32 %v2677_v43  ;;  %v2678_v61 = vmul.f32 0.70710677, %v2294_v39  ;;  %v3144_v52 = vpack.c.bf16 %v3056_v40, %v3055_v15  ;;  %v2552_v5 = vmul.f32 0.5, %v2302_v8 }
 0x57a   : > { %v6778_v6 = vpop.eup %6777  ;;  %6789 = verf.f32 %v2680_v23  ;;  %v3143_v16 = vpack.c.bf16 %v3054_v47, %v3053_v53  ;;  %v2550_v17 = vmul.f32 0.5, %v2294_v39 }
 0x57b   : > { %v6780_v50 = vpop.eup %6779  ;;  %v2931_v1 = vadd.f32 1.0, %v6778_v6  ;;  %v5970_v56 = vpop.f32.mrb[88].mxu0  ;;  %6791 = verf.f32 %v2678_v61 }
 0x57c   : > { %v6782_v18 = vpop.eup %6781  ;;  %v2929_v9 = vadd.f32 1.0, %v6780_v50  ;;  %v2315_v59 = vadd.f32 %v8266_v49, %v5970_v56  ;;  %v2306_v26 = vpop.f32.mrb[89].mxu0  ;;  %6100 = vmatprep.mubr.bf16.mxu1 %v3143_v16 }
 0x57d   : > { %v6784_v27 = vpop.eup %6783  ;;  %v3059_v45 = vmul.f32 %v2931_v1, %v2547_v46  ;;  %v2932_v48 = vadd.f32 1.0, %v6782_v18  ;;  %v2307_v35 = vadd.f32 %v8266_v49, %v2306_v26  ;;  %v5971_v30 = vpop.f32.mrb[90].mxu0  ;;  %6101 = vmatmul.mubr.bf16.gmra.mrb[76].mxu1 %v3144_v52  ;;  %v8315_v1 = vld [vmem:[%s7616_s0] ss:$0 sm:$0xff] }
 0x57e   : > { %v3057_v13 = vmul.f32 %v2929_v9, %v2545_v62  ;;  %v2930_v10 = vadd.f32 1.0, %v6784_v27  ;;  %v2683_v41 = vmul.f32 0.70710677, %v2315_v59  ;;  %v2309_v14 = vpop.f32.mrb[91].mxu0  ;;  %v2318_v20 = vadd.f32 %v8266_v49, %v5971_v30 }
 0x57f   : > { %v3060_v60 = vmul.f32 %v2932_v48, %v2548_v24  ;;  %v2681_v19 = vmul.f32 0.70710677, %v2307_v35  ;;  %v2310_v11 = vadd.f32 %v8266_v49, %v2309_v14  ;;  %v2555_v46 = vmul.f32 0.5, %v2315_v59 }
 0x580   : > { %v3058_v57 = vmul.f32 %v2930_v10, %v2546_v37  ;;  %6793 = verf.f32 %v2683_v41  ;;  %v2684_v2 = vmul.f32 0.70710677, %v2318_v20  ;;  %v2553_v52 = vmul.f32 0.5, %v2307_v35 }
 0x581   : > { %6795 = verf.f32 %v2681_v19  ;;  %v3146_v55 = vpack.c.bf16 %v3060_v60, %v3059_v45  ;;  %v2682_v51 = vmul.f32 0.70710677, %v2310_v11  ;;  %v2556_v56 = vmul.f32 0.5, %v2318_v20 }
 0x582   : > { %v6786_v7 = vpop.eup %6785  ;;  %v3145_v54 = vpack.c.bf16 %v3058_v57, %v3057_v13  ;;  %6797 = verf.f32 %v2684_v2  ;;  %v2554_v9 = vmul.f32 0.5, %v2310_v11 }
 0x583   : > { %v6788_v29 = vpop.eup %6787  ;;  %v2935_v44 = vadd.f32 1.0, %v6786_v7  ;;  %v5974_v36 = vpop.f32.mrb[92].mxu0  ;;  %6799 = verf.f32 %v2682_v51 }
 0x584   : > { %v2933_v33 = vadd.f32 1.0, %v6788_v29  ;;  %v2331_v4 = vadd.f32 %v8266_v49, %v5974_v36  ;;  %v2322_v63 = vpop.f32.mrb[93].mxu0  ;;  %6104 = vmatprep.mubr.bf16.mxu1 %v3145_v54  ;;  %v6790_v12 = vpop.eup %6789 }
 0x585   : > { %v2323_v25 = vadd.f32 %v8266_v49, %v2322_v63  ;;  %v5975_v31 = vpop.f32.mrb[94].mxu0  ;;  %v6792_v32 = vpop.eup %6791  ;;  %v3063_v38 = vmul.f32 %v2935_v44, %v2551_v21  ;;  %v2936_v15 = vadd.f32 1.0, %v6790_v12  ;;  %6105 = vmatmul.mubr.bf16.gmra.mrb[80].mxu1 %v3146_v55 }
 0x586   : > { %v2687_v34 = vmul.f32 0.70710677, %v2331_v4  ;;  %v2325_v58 = vpop.f32.mrb[95].mxu0  ;;  %v3061_v22 = vmul.f32 %v2933_v33, %v2549_v42  ;;  %v2934_v28 = vadd.f32 1.0, %v6792_v32  ;;  %v2334_v0 = vadd.f32 %v8266_v49, %v5975_v31 }
 0x587   : > { %v2685_v53 = vmul.f32 0.70710677, %v2323_v25  ;;  %v3064_v43 = vmul.f32 %v2936_v15, %v2552_v5  ;;  %v2326_v8 = vadd.f32 %v8266_v49, %v2325_v58  ;;  %v2559_v60 = vmul.f32 0.5, %v2331_v4 }
 0x588   : > { %6801 = verf.f32 %v2687_v34  ;;  %v3062_v40 = vmul.f32 %v2934_v28, %v2550_v17  ;;  %v2688_v39 = vmul.f32 0.70710677, %v2334_v0  ;;  %v2557_v2 = vmul.f32 0.5, %v2323_v25 }
 0x589   : > { %6803 = verf.f32 %v2685_v53  ;;  %v2686_v23 = vmul.f32 0.70710677, %v2326_v8  ;;  %v3148_v6 = vpack.c.bf16 %v3064_v43, %v3063_v38  ;;  %v2560_v21 = vmul.f32 0.5, %v2334_v0 }
 0x58a   : > { %v6794_v47 = vpop.eup %6793  ;;  %6805 = verf.f32 %v2688_v39  ;;  %v3147_v50 = vpack.c.bf16 %v3062_v40, %v3061_v22  ;;  %v2558_v54 = vmul.f32 0.5, %v2326_v8 }
 0x58b   : > { %v6796_v62 = vpop.eup %6795  ;;  %v2939_v61 = vadd.f32 1.0, %v6794_v47  ;;  %6807 = verf.f32 %v2686_v23 }
 0x58c   : > { %v2937_v24 = vadd.f32 1.0, %v6796_v62  ;;  %v6798_v16 = vpop.eup %6797  ;;  %v6026_v18 = vpop.f32.mrb[0].mxu1  ;;  %6108 = vmatprep.mubr.bf16.mxu1 %v3147_v50 }
 0x58d   : > { %v6800_v37 = vpop.eup %6799  ;;  %v3274_v26 = vpop.f32.mrb[1].mxu1  ;;  %v3067_v27 = vmul.f32 %v2939_v61, %v2555_v46  ;;  %v2940_v59 = vadd.f32 1.0, %v6798_v16  ;;  %6109 = vmatmul.mubr.bf16.gmra.mrb[84].mxu1 %v3148_v6  ;;  %v3283_v36 = vadd.f32 %v6026_v18, %v8315_v1 }
 0x58e   : > { %v3275_v45 = vadd.f32 %v8315_v1, %v3274_v26  ;;  %v6027_v48 = vpop.f32.mrb[2].mxu1  ;;  %v3065_v35 = vmul.f32 %v2937_v24, %v2553_v52  ;;  %v2938_v30 = vadd.f32 1.0, %v6800_v37 }
 0x58f   : > { %v3277_v13 = vpop.f32.mrb[3].mxu1  ;;  %v3068_v10 = vmul.f32 %v2940_v59, %v2556_v56  ;;  %v3286_v17 = vadd.f32 %v6027_v48, %v8315_v1 }
 0x590   : > { %3785 = vxpose.xlu0.b32.start [1/16] (narrow) %v3275_v45, 16  ;;  %v3066_v41 = vmul.f32 %v2938_v30, %v2554_v9  ;;  %v3278_v57 = vadd.f32 %v8315_v1, %v3277_v13 }
 0x591   : > { %v3150_v19 = vpack.c.bf16 %v3068_v10, %v3067_v27 }
 0x592   : > { %v6802_v14 = vpop.eup %6801  ;;  %v3149_v55 = vpack.c.bf16 %v3066_v41, %v3065_v35 }
 0x593   : > { %v6804_v20 = vpop.eup %6803  ;;  %v2943_v11 = vadd.f32 1.0, %v6802_v14 }
 0x594   : > { %v2941_v7 = vadd.f32 1.0, %v6804_v20  ;;  %v6806_v51 = vpop.eup %6805  ;;  %3786 = vxpose.xlu0.b32.cont [2/16] (narrow) %v3278_v57, 16  ;;  %6112 = vmatprep.mubr.bf16.mxu1 %v3149_v55 }
 0x595   : > { %v6808_v29 = vpop.eup %6807  ;;  %v3071_v44 = vmul.f32 %v2943_v11, %v2559_v60  ;;  %v2944_v42 = vadd.f32 1.0, %v6806_v51  ;;  %6113 = vmatmul.mubr.bf16.gmra.mrb[88].mxu1 %v3150_v19 }
 0x596   : > { %v3069_v33 = vmul.f32 %v2941_v7, %v2557_v2  ;;  %v2942_v5 = vadd.f32 1.0, %v6808_v29 }
 0x597   : > { %v3072_v4 = vmul.f32 %v2944_v42, %v2560_v21 }
 0x598   : > { %3787 = vxpose.xlu0.b32.cont [3/16] (narrow) %v3283_v36, 16  ;;  %v3070_v63 = vmul.f32 %v2942_v5, %v2558_v54 }
 0x599   : > { %v3152_v12 = vpack.c.bf16 %v3072_v4, %v3071_v44 }
 0x59a   : > { %v3151_v25 = vpack.c.bf16 %v3070_v63, %v3069_v33 }
 0x59c   : > { %v6030_v31 = vpop.f32.mrb[4].mxu1  ;;  %3788 = vxpose.xlu0.b32.cont [4/16] (narrow) %v3286_v17, 16  ;;  %6116 = vmatprep.mubr.bf16.mxu1 %v3151_v25 }
 0x59d   : > { %v3290_v32 = vpop.f32.mrb[5].mxu1  ;;  %6117 = vmatmul.mubr.bf16.gmra.mrb[92].mxu1 %v3152_v12  ;;  %v3299_v0 = vadd.f32 %v6030_v31, %v8315_v1 }
 0x59e   : > { %v3291_v38 = vadd.f32 %v8315_v1, %v3290_v32  ;;  %v6031_v15 = vpop.f32.mrb[6].mxu1 }
 0x59f   : > { %v3293_v34 = vpop.f32.mrb[7].mxu1  ;;  %v3302_v62 = vadd.f32 %v6031_v15, %v8315_v1 }
 0x5a0   : > { %3789 = vxpose.xlu0.b32.cont [5/16] (narrow) %v3291_v38, 16  ;;  %v3294_v58 = vadd.f32 %v8315_v1, %v3293_v34 }
 0x5a4   : > { %3790 = vxpose.xlu0.b32.cont [6/16] (narrow) %v3294_v58, 16 }
 0x5a6   : > { %v5978_v22 = vpop.f32.mrb[96].mxu0 }
 0x5a7   : > { %v2347_v28 = vadd.f32 %v8266_v49, %v5978_v22  ;;  %v2338_v53 = vpop.f32.mrb[97].mxu0 }
 0x5a8   : > { %v2339_v43 = vadd.f32 %v8266_v49, %v2338_v53  ;;  %v5979_v8 = vpop.f32.mrb[98].mxu0  ;;  %3791 = vxpose.xlu0.b32.cont [7/16] (narrow) %v3299_v0, 16 }
 0x5a9   : > { %v2691_v40 = vmul.f32 0.70710677, %v2347_v28  ;;  %v2350_v39 = vadd.f32 %v8266_v49, %v5979_v8  ;;  %v2341_v47 = vpop.f32.mrb[99].mxu0  ;;  %v2563_v9 = vmul.f32 0.5, %v2347_v28 }
 0x5aa   : > { %v2689_v46 = vmul.f32 0.70710677, %v2339_v43  ;;  %v2342_v23 = vadd.f32 %v8266_v49, %v2341_v47  ;;  %v2561_v26 = vmul.f32 0.5, %v2339_v43 }
 0x5ab   : > { %6809 = verf.f32 %v2691_v40  ;;  %v2692_v6 = vmul.f32 0.70710677, %v2350_v39  ;;  %v2564_v45 = vmul.f32 0.5, %v2350_v39  ;;  %v8340_v40 = vld [vmem:[%s7597_s19] ss:$0 sm:$0xff] }
 0x5ac   : > { %6811 = verf.f32 %v2689_v46  ;;  %v2690_v61 = vmul.f32 0.70710677, %v2342_v23  ;;  %3792 = vxpose.xlu0.b32.cont [8/16] (narrow) %v3302_v62, 16  ;;  %v2562_v13 = vmul.f32 0.5, %v2342_v23 }
 0x5ad   : > { %6813 = verf.f32 %v2692_v6  ;;  %v6034_v52 = vpop.f32.mrb[8].mxu1 }
 0x5ae   : > { %6815 = verf.f32 %v2690_v61  ;;  %v3306_v50 = vpop.f32.mrb[9].mxu1  ;;  %v3315_v60 = vadd.f32 %v6034_v52, %v8315_v1 }
 0x5af   : > { %v3307_v24 = vadd.f32 %v8315_v1, %v3306_v50  ;;  %v6035_v56 = vpop.f32.mrb[10].mxu1 }
 0x5b0   : > { %v3309_v16 = vpop.f32.mrb[11].mxu1  ;;  %v3318_v36 = vadd.f32 %v6035_v56, %v8315_v1 }
 0x5b1   : > { %3793 = vxpose.xlu0.b32.cont [9/16] (narrow) %v3307_v24, 16  ;;  %v3310_v18 = vadd.f32 %v8315_v1, %v3309_v16 }
 0x5b5   : > { %v6810_v37 = vpop.eup %6809  ;;  %3794 = vxpose.xlu0.b32.cont [10/16] (narrow) %v3310_v18, 16 }
 0x5b6   : > { %v6812_v27 = vpop.eup %6811  ;;  %v2947_v59 = vadd.f32 1.0, %v6810_v37  ;;  %v5982_v48 = vpop.f32.mrb[100].mxu0 }
 0x5b7   : > { %v6814_v35 = vpop.eup %6813  ;;  %v2945_v30 = vadd.f32 1.0, %v6812_v27  ;;  %v2363_v10 = vadd.f32 %v8266_v49, %v5982_v48  ;;  %v2354_v41 = vpop.f32.mrb[101].mxu0 }
 0x5b8   : > { %v6816_v14 = vpop.eup %6815  ;;  %v3075_v19 = vmul.f32 %v2947_v59, %v2563_v9  ;;  %v2948_v20 = vadd.f32 1.0, %v6814_v35  ;;  %v2355_v57 = vadd.f32 %v8266_v49, %v2354_v41  ;;  %v5983_v11 = vpop.f32.mrb[102].mxu0 }
 0x5b9   : > { %v3073_v2 = vmul.f32 %v2945_v30, %v2561_v26  ;;  %v2946_v55 = vadd.f32 1.0, %v6816_v14  ;;  %v2695_v7 = vmul.f32 0.70710677, %v2363_v10  ;;  %v2357_v21 = vpop.f32.mrb[103].mxu0  ;;  %3795 = vxpose.xlu0.b32.cont [11/16] (narrow) %v3315_v60, 16  ;;  %v2366_v29 = vadd.f32 %v8266_v49, %v5983_v11 }
 0x5ba   : > { %v3076_v51 = vmul.f32 %v2948_v20, %v2564_v45  ;;  %v2693_v54 = vmul.f32 0.70710677, %v2355_v57  ;;  %v2358_v42 = vadd.f32 %v8266_v49, %v2357_v21  ;;  %v2567_v58 = vmul.f32 0.5, %v2363_v10 }
 0x5bb   : > { %v3074_v44 = vmul.f32 %v2946_v55, %v2562_v13  ;;  %6817 = verf.f32 %v2695_v7  ;;  %v2696_v33 = vmul.f32 0.70710677, %v2366_v29  ;;  %v2565_v28 = vmul.f32 0.5, %v2355_v57 }
 0x5bc   : > { %6819 = verf.f32 %v2693_v54  ;;  %v3154_v5 = vpack.c.bf16 %v3076_v51, %v3075_v19  ;;  %v2694_v4 = vmul.f32 0.70710677, %v2358_v42  ;;  %v2568_v8 = vmul.f32 0.5, %v2366_v29 }
 0x5bd   : > { %v3153_v63 = vpack.c.bf16 %v3074_v44, %v3073_v2  ;;  %v6038_v12 = vpop.f32.mrb[12].mxu1  ;;  %3796 = vxpose.xlu0.b32.cont [12/16] (narrow) %v3318_v36, 16  ;;  %6821 = verf.f32 %v2696_v33  ;;  %v2566_v61 = vmul.f32 0.5, %v2358_v42 }
 0x5be   : > { %v3322_v17 = vpop.f32.mrb[13].mxu1  ;;  %6823 = verf.f32 %v2694_v4  ;;  %v3331_v23 = vadd.f32 %v6038_v12, %v8315_v1 }
 0x5bf   : > { %6120 = vmatprep.mubr.bf16.mxu1 %v3153_v63  ;;  %v3323_v25 = vadd.f32 %v8315_v1, %v3322_v17  ;;  %v6039_v31 = vpop.f32.mrb[14].mxu1 }
 0x5c0   : > { %6121 = vmatmul.mubr.bf16.gmra.mrb[96].mxu1 %v3154_v5  ;;  %v3325_v32 = vpop.f32.mrb[15].mxu1  ;;  %v3334_v30 = vadd.f32 %v6039_v31, %v8315_v1 }
 0x5c1   : > { %3797 = vxpose.xlu0.b32.cont [13/16] (narrow) %v3323_v25, 16  ;;  %v3326_v49 = vadd.f32 %v8315_v1, %v3325_v32 }
 0x5c5   : > { %v6818_v38 = vpop.eup %6817  ;;  %v6042_v34 = vpop.f32.mrb[16].mxu1  ;;  %3798 = vxpose.xlu0.b32.cont [14/16] (narrow) %v3326_v49, 16 }
 0x5c6   : > { %v6820_v15 = vpop.eup %6819  ;;  %v2951_v22 = vadd.f32 1.0, %v6818_v38  ;;  %v5986_v53 = vpop.f32.mrb[104].mxu0  ;;  %v3347_v11 = vadd.f32 %v6042_v34, %v8315_v1 }
 0x5c7   : > { %v3338_v0 = vpop.f32.mrb[17].mxu1  ;;  %v2949_v43 = vadd.f32 1.0, %v6820_v15  ;;  %v2379_v39 = vadd.f32 %v8340_v40, %v5986_v53  ;;  %v2370_v47 = vpop.f32.mrb[105].mxu0 }
 0x5c8   : > { %v6822_v46 = vpop.eup %6821  ;;  %v3339_v6 = vadd.f32 %v8315_v1, %v3338_v0  ;;  %v6043_v62 = vpop.f32.mrb[18].mxu1  ;;  %v2371_v52 = vadd.f32 %v8340_v40, %v2370_v47  ;;  %v3079_v9 = vmul.f32 %v2951_v22, %v2567_v58 }
 0x5c9   : > { %v5987_v50 = vpop.f32.mrb[106].mxu0  ;;  %v6824_v24 = vpop.eup %6823  ;;  %v2952_v16 = vadd.f32 1.0, %v6822_v46  ;;  %3799 = vxpose.xlu0.b32.cont [15/16] (narrow) %v3331_v23, 16  ;;  %v3077_v37 = vmul.f32 %v2949_v43, %v2565_v28  ;;  %v2699_v27 = vmul.f32 0.70710677, %v2379_v39  ;;  %v3350_v7 = vadd.f32 %v6043_v62, %v8315_v1 }
 0x5ca   : > { %v3341_v56 = vpop.f32.mrb[19].mxu1  ;;  %v2373_v18 = vpop.f32.mrb[107].mxu0  ;;  %3817 = vxpose.xlu1.b32.start [1/16] (narrow) %v3339_v6, 16  ;;  %v2950_v26 = vadd.f32 1.0, %v6824_v24  ;;  %v2697_v45 = vmul.f32 0.70710677, %v2371_v52  ;;  %v2382_v48 = vadd.f32 %v8340_v40, %v5987_v50 }
 0x5cb   : > { %v3080_v59 = vmul.f32 %v2952_v16, %v2568_v8  ;;  %v2374_v35 = vadd.f32 %v8340_v40, %v2373_v18  ;;  %v3342_v13 = vadd.f32 %v8315_v1, %v3341_v56  ;;  %6825 = verf.f32 %v2699_v27 }
 0x5cc   : > { %v3078_v10 = vmul.f32 %v2950_v26, %v2566_v61  ;;  %6827 = verf.f32 %v2697_v45  ;;  %v2700_v41 = vmul.f32 0.70710677, %v2382_v48  ;;  %v2571_v54 = vmul.f32 0.5, %v2379_v39 }
 0x5cd   : > { %v8350_v14 = vpop.f32.mrb[20].mxu1  ;;  %3800 = vxpose.xlu0.b32.end [16/16] (narrow) %v3334_v30, 16  ;;  %v2698_v60 = vmul.f32 0.70710677, %v2374_v35  ;;  %v3156_v20 = vpack.c.bf16 %v3080_v59, %v3079_v9  ;;  %v2569_v29 = vmul.f32 0.5, %v2371_v52  ;;  %v2572_v25 = vmul.f32 0.5, %v2382_v48 }
 0x5ce   : > { %3818 = vxpose.xlu1.b32.cont [2/16] (narrow) %v3342_v13, 16  ;;  %v3155_v19 = vpack.c.bf16 %v3078_v10, %v3077_v37  ;;  %v3354_v57 = vpop.f32.mrb[21].mxu1  ;;  %6829 = verf.f32 %v2700_v41  ;;  %v2570_v15 = vmul.f32 0.5, %v2374_v35  ;;  %v3363_v37 = vadd.f32 %v8350_v14, %v8315_v1 }
 0x5cf   : > { %v8353_v2 = vpop.f32.mrb[22].mxu1  ;;  %6831 = verf.f32 %v2698_v60  ;;  %v3355_v63 = vadd.f32 %v8315_v1, %v3354_v57 }
 0x5d0   : > { %6124 = vmatprep.mubr.bf16.mxu1 %v3155_v19  ;;  %v3357_v55 = vpop.f32.mrb[23].mxu1  ;;  %v3366_v14 = vadd.f32 %v8353_v2, %v8315_v1 }
 0x5d1   : > { %6125 = vmatmul.mubr.bf16.gmra.mrb[100].mxu1 %v3156_v20  ;;  %v3358_v47 = vadd.f32 %v8315_v1, %v3357_v55 }
 0x5d2   : > { %3819 = vxpose.xlu1.b32.cont [3/16] (narrow) %v3347_v11, 16 }
 0x5d5   : > { %v6826_v21 = vpop.eup %6825  ;;  %v8356_v51 = vpop.f32.mrb[24].mxu1 }
 0x5d6   : > { %3820 = vxpose.xlu1.b32.cont [4/16] (narrow) %v3350_v7, 16  ;;  %v5990_v44 = vpop.f32.mrb[108].mxu0  ;;  %v6828_v42 = vpop.eup %6827  ;;  %v2955_v33 = vadd.f32 1.0, %v6826_v21 }
 0x5d7   : > { %v8358_v36 = vpop.f32.mrb[25].mxu1  ;;  %v2395_v5 = vadd.f32 %v8340_v40, %v5990_v44  ;;  %v2386_v4 = vpop.f32.mrb[109].mxu0  ;;  %v2953_v17 = vadd.f32 1.0, %v6828_v42 }
 0x5d8   : > { %v8362_v12 = vpop.f32.mrb[26].mxu1  ;;  %v2387_v31 = vadd.f32 %v8340_v40, %v2386_v4  ;;  %v5991_v32 = vpop.f32.mrb[110].mxu0  ;;  %v3083_v28 = vmul.f32 %v2955_v33, %v2571_v54  ;;  %v3371_v2 = vadd.f32 %v8315_v1, %v8358_v36 }
 0x5d9   : > { %v6830_v49 = vpop.eup %6829  ;;  %v8365_v38 = vpop.f32.mrb[27].mxu1  ;;  %v2703_v34 = vmul.f32 0.70710677, %v2395_v5  ;;  %v3081_v53 = vmul.f32 %v2953_v17, %v2569_v29  ;;  %v2398_v39 = vadd.f32 %v8340_v40, %v5991_v32  ;;  %v2575_v20 = vmul.f32 0.5, %v2395_v5 }
 0x5da   : > { %v2389_v58 = vpop.f32.mrb[111].mxu0  ;;  %v6832_v22 = vpop.eup %6831  ;;  %3821 = vxpose.xlu1.b32.cont [5/16] (narrow) %v3355_v63, 16  ;;  %v2956_v0 = vadd.f32 1.0, %v6830_v49  ;;  %v2701_v8 = vmul.f32 0.70710677, %v2387_v31  ;;  %v2573_v21 = vmul.f32 0.5, %v2387_v31  ;;  %v3374_v36 = vadd.f32 %v8315_v1, %v8365_v38 }
 0x5db   : > { %v2954_v43 = vadd.f32 1.0, %v6832_v22  ;;  %6833 = verf.f32 %v2703_v34  ;;  %v2390_v23 = vadd.f32 %v8340_v40, %v2389_v58  ;;  %v2704_v62 = vmul.f32 0.70710677, %v2398_v39 }
 0x5dc   : > { %v3084_v46 = vmul.f32 %v2956_v0, %v2572_v25  ;;  %6835 = verf.f32 %v2701_v8  ;;  %v2576_v33 = vmul.f32 0.5, %v2398_v39 }
 0x5dd   : > { %v3082_v6 = vmul.f32 %v2954_v43, %v2570_v15  ;;  %v8370_v61 = vpop.f32.mrb[28].mxu1  ;;  %v2702_v52 = vmul.f32 0.70710677, %v2390_v23  ;;  %6837 = verf.f32 %v2704_v62  ;;  %v2574_v25 = vmul.f32 0.5, %v2390_v23 }
 0x5de   : > { %3822 = vxpose.xlu1.b32.cont [6/16] (narrow) %v3358_v47, 16  ;;  %v5994_v50 = vpop.f32.mrb[112].mxu0  ;;  %v3158_v24 = vpack.c.bf16 %v3084_v46, %v3083_v28  ;;  %v8372_v56 = vpop.f32.mrb[29].mxu1 }
 0x5df   : > { %v2411_v16 = vadd.f32 %v8340_v40, %v5994_v50  ;;  %v2402_v18 = vpop.f32.mrb[113].mxu0  ;;  %v3157_v9 = vpack.c.bf16 %v3082_v6, %v3081_v53  ;;  %v8377_v26 = vpop.f32.mrb[30].mxu1  ;;  %6839 = verf.f32 %v2702_v52 }
 0x5e0   : > { %v2403_v27 = vadd.f32 %v8340_v40, %v2402_v18  ;;  %v5995_v59 = vpop.f32.mrb[114].mxu0  ;;  %v8380_v45 = vpop.f32.mrb[31].mxu1 }
 0x5e1   : > { %v2707_v48 = vmul.f32 0.70710677, %v2411_v16  ;;  %v2414_v35 = vadd.f32 %v8340_v40, %v5995_v59  ;;  %v2405_v30 = vpop.f32.mrb[115].mxu0  ;;  %6128 = vmatprep.mubr.bf16.mxu1 %v3157_v9  ;;  %v2579_v8 = vmul.f32 0.5, %v2411_v16 }
 0x5e2   : > { %3823 = vxpose.xlu1.b32.cont [7/16] (narrow) %v3363_v37, 16  ;;  %v2705_v13 = vmul.f32 0.70710677, %v2403_v27  ;;  %v2406_v10 = vadd.f32 %v8340_v40, %v2405_v30  ;;  %6129 = vmatmul.mubr.bf16.gmra.mrb[104].mxu1 %v3158_v24  ;;  %v2577_v6 = vmul.f32 0.5, %v2403_v27 }
 0x5e3   : > { %6841 = verf.f32 %v2707_v48  ;;  %v2708_v41 = vmul.f32 0.70710677, %v2414_v35  ;;  %v2580_v50 = vmul.f32 0.5, %v2414_v35 }
 0x5e4   : > { %6843 = verf.f32 %v2705_v13  ;;  %v2706_v60 = vmul.f32 0.70710677, %v2406_v10  ;;  %v2578_v59 = vmul.f32 0.5, %v2406_v10 }
 0x5e5   : > { %v6834_v19 = vpop.eup %6833  ;;  %6845 = verf.f32 %v2708_v41  ;;  %v8386_v11 = vpop.f32.mrb[32].mxu1  ;;  %v3379_v41 = vadd.f32 %v8356_v51, %v8315_v1 }
 0x5e6   : > { %3824 = vxpose.xlu1.b32.cont [8/16] (narrow) %v3366_v14, 16  ;;  %v2959_v57 = vadd.f32 1.0, %v6834_v19  ;;  %6847 = verf.f32 %v2706_v60  ;;  %v5998_v55 = vpop.f32.mrb[116].mxu0  ;;  %v6836_v7 = vpop.eup %6835 }
 0x5e7   : > { %v8388_v54 = vpop.f32.mrb[33].mxu1  ;;  %v8391_v29 = vadd.f32 %v8340_v40, %v5998_v55  ;;  %v2418_v44 = vpop.f32.mrb[117].mxu0  ;;  %v2957_v42 = vadd.f32 1.0, %v6836_v7 }
 0x5e8   : > { %v8395_v4 = vpop.f32.mrb[34].mxu1  ;;  %v8398_v5 = vadd.f32 %v8340_v40, %v2418_v44  ;;  %v5999_v63 = vpop.f32.mrb[118].mxu0  ;;  %v3087_v58 = vmul.f32 %v2959_v57, %v2575_v20 }
 0x5e9   : > { %v6838_v17 = vpop.eup %6837  ;;  %v8400_v31 = vpop.f32.mrb[35].mxu1  ;;  %v2711_v32 = vmul.f32 0.70710677, %v8391_v29  ;;  %v8404_v49 = vadd.f32 %v8340_v40, %v5999_v63  ;;  %v3085_v28 = vmul.f32 %v2957_v42, %v2573_v21  ;;  %v3382_v63 = vadd.f32 %v8362_v12, %v8315_v1 }
 0x5ea   : > { %v2421_v15 = vpop.f32.mrb[119].mxu0  ;;  %v6840_v34 = vpop.eup %6839  ;;  %3825 = vxpose.xlu1.b32.cont [9/16] (narrow) %v3371_v2, 16  ;;  %v2960_v22 = vadd.f32 1.0, %v6838_v17  ;;  %v2709_v0 = vmul.f32 0.70710677, %v8398_v5 }
 0x5eb   : > { %v2958_v53 = vadd.f32 1.0, %v6840_v34  ;;  %6849 = verf.f32 %v2711_v32  ;;  %v2712_v39 = vmul.f32 0.70710677, %v8404_v49  ;;  %v8411_v47 = vadd.f32 %v8340_v40, %v2421_v15 }
 0x5ec   : > { %v3088_v43 = vmul.f32 %v2960_v22, %v2576_v33  ;;  %6851 = verf.f32 %v2709_v0  ;;  %v2583_v32 = vmul.f32 0.5, %v8391_v29  ;;  %v2584_v0 = vmul.f32 0.5, %v8404_v49 }
 0x5ed   : > { %v6842_v46 = vpop.eup %6841  ;;  %v3086_v23 = vmul.f32 %v2958_v53, %v2574_v25  ;;  %v8413_v62 = vpop.f32.mrb[36].mxu1  ;;  %6853 = verf.f32 %v2712_v39  ;;  %v2710_v30 = vmul.f32 0.70710677, %v8411_v47  ;;  %v3387_v29 = vadd.f32 %v8315_v1, %v8372_v56 }
 0x5ee   : > { %v6844_v38 = vpop.eup %6843  ;;  %3826 = vxpose.xlu1.b32.cont [10/16] (narrow) %v3374_v36, 16  ;;  %v2963_v52 = vadd.f32 1.0, %v6842_v46  ;;  %v3160_v24 = vpack.c.bf16 %v3088_v43, %v3087_v58  ;;  %v6002_v18 = vpop.f32.mrb[120].mxu0  ;;  %v2581_v46 = vmul.f32 0.5, %v8398_v5  ;;  %v3390_v5 = vadd.f32 %v8315_v1, %v8380_v45 }
 0x5ef   : > { %v6846_v9 = vpop.eup %6845  ;;  %v8415_v16 = vpop.f32.mrb[37].mxu1  ;;  %v2961_v37 = vadd.f32 1.0, %v6844_v38  ;;  %v3159_v48 = vpack.c.bf16 %v3086_v23, %v3085_v28  ;;  %v8423_v19 = vadd.f32 %v8340_v40, %v6002_v18  ;;  %6855 = verf.f32 %v2710_v30 }
 0x5f0   : > { %v2434_v13 = vpop.f32.mrb[121].mxu0  ;;  %v6848_v27 = vpop.eup %6847  ;;  %v3091_v60 = vmul.f32 %v2963_v52, %v2579_v8  ;;  %v2964_v35 = vadd.f32 1.0, %v6846_v9  ;;  %v2582_v18 = vmul.f32 0.5, %v8411_v47 }
 0x5f1   : > { %v8420_v14 = vpop.f32.mrb[38].mxu1  ;;  %v6003_v20 = vpop.f32.mrb[122].mxu0  ;;  %v3089_v55 = vmul.f32 %v2961_v37, %v2577_v6  ;;  %v2962_v10 = vadd.f32 1.0, %v6848_v27  ;;  %6132 = vmatprep.mubr.bf16.mxu1 %v3159_v48  ;;  %v2715_v51 = vmul.f32 0.70710677, %v8423_v19  ;;  %v2435_v2 = vadd.f32 %v8340_v40, %v2434_v13 }
 0x5f2   : > { %v8425_v57 = vpop.f32.mrb[39].mxu1  ;;  %v2437_v7 = vpop.f32.mrb[123].mxu0  ;;  %3827 = vxpose.xlu1.b32.cont [11/16] (narrow) %v3379_v41, 16  ;;  %v3092_v21 = vmul.f32 %v2964_v35, %v2580_v50  ;;  %6133 = vmatmul.mubr.bf16.gmra.mrb[108].mxu1 %v3160_v24  ;;  %v8430_v42 = vadd.f32 %v8340_v40, %v6003_v20 }
 0x5f3   : > { %v3090_v44 = vmul.f32 %v2962_v10, %v2578_v59  ;;  %v8433_v33 = vadd.f32 %v8340_v40, %v2437_v7  ;;  %6857 = verf.f32 %v2715_v51  ;;  %v2713_v34 = vmul.f32 0.70710677, %v2435_v2 }
 0x5f4   : > { %v3162_v17 = vpack.c.bf16 %v3092_v21, %v3091_v60  ;;  %v2716_v22 = vmul.f32 0.70710677, %v8430_v42  ;;  %v2587_v21 = vmul.f32 0.5, %v8423_v19 }
 0x5f5   : > { %v6850_v25 = vpop.eup %6849  ;;  %v3161_v15 = vpack.c.bf16 %v3090_v44, %v3089_v55  ;;  %v8438_v36 = vpop.f32.mrb[40].mxu1  ;;  %6859 = verf.f32 %v2713_v34  ;;  %v2714_v12 = vmul.f32 0.70710677, %v8433_v33  ;;  %v3395_v44 = vadd.f32 %v8370_v61, %v8315_v1 }
 0x5f6   : > { %3828 = vxpose.xlu1.b32.cont [12/16] (narrow) %v3382_v63, 16  ;;  %v2967_v58 = vadd.f32 1.0, %v6850_v25  ;;  %v6852_v28 = vpop.eup %6851  ;;  %v8441_v53 = vpop.f32.mrb[41].mxu1  ;;  %6861 = verf.f32 %v2716_v22  ;;  %v2585_v63 = vmul.f32 0.5, %v2435_v2  ;;  %v2586_v19 = vmul.f32 0.5, %v8433_v33 }
 0x5f7   : > { %6136 = vmatprep.mubr.bf16.mxu1 %v3161_v15  ;;  %v6006_v43 = vpop.f32.mrb[124].mxu0  ;;  %v6854_v8 = vpop.eup %6853  ;;  %v2965_v23 = vadd.f32 1.0, %v6852_v28  ;;  %6863 = verf.f32 %v2714_v12  ;;  %v2588_v15 = vmul.f32 0.5, %v8430_v42  ;;  %v3398_v61 = vadd.f32 %v8377_v26, %v8315_v1 }
 0x5f8   : > { %v8447_v39 = vpop.f32.mrb[42].mxu1  ;;  %v2450_v6 = vpop.f32.mrb[125].mxu0  ;;  %v3095_v52 = vmul.f32 %v2967_v58, %v2583_v32  ;;  %v2968_v49 = vadd.f32 1.0, %v6854_v8  ;;  %v2459_v50 = vadd.f32 %v8340_v40, %v6006_v43 }
 0x5f9   : > { %v8450_v38 = vpop.f32.mrb[43].mxu1  ;;  %v6007_v24 = vpop.f32.mrb[126].mxu0  ;;  %v2451_v56 = vadd.f32 %v8340_v40, %v2450_v6  ;;  %v3093_v13 = vmul.f32 %v2965_v23, %v2581_v46 }
 0x5fa   : > { %3829 = vxpose.xlu1.b32.cont [13/16] (narrow) %v3387_v29, 16  ;;  %6137 = vmatmul.mubr.bf16.gmra.mrb[112].mxu1 %v3162_v17  ;;  %v2453_v9 = vpop.f32.mrb[127].mxu0  ;;  %v6856_v37 = vpop.eup %6855  ;;  %v3096_v59 = vmul.f32 %v2968_v49, %v2584_v0  ;;  %v2719_v48 = vmul.f32 0.70710677, %v2459_v50  ;;  %v2462_v30 = vadd.f32 %v8340_v40, %v6007_v24  ;;  %v2591_v29 = vmul.f32 0.5, %v2459_v50 }
 0x5fb   : > { %v2966_v27 = vadd.f32 1.0, %v6856_v37  ;;  %v2717_v41 = vmul.f32 0.70710677, %v2451_v56  ;;  %v2454_v60 = vadd.f32 %v8340_v40, %v2453_v9  ;;  %v2589_v33 = vmul.f32 0.5, %v2451_v56 }
 0x5fc   : > { %v3164_v35 = vpack.c.bf16 %v3096_v59, %v3095_v52  ;;  %6865 = verf.f32 %v2719_v48  ;;  %v2720_v47 = vmul.f32 0.70710677, %v2462_v30 }
 0x5fd   : > { %v6858_v20 = vpop.eup %6857  ;;  %v8459_v55 = vpop.f32.mrb[44].mxu1  ;;  %v3094_v10 = vmul.f32 %v2966_v27, %v2582_v18  ;;  %6867 = verf.f32 %v2717_v41  ;;  %v2718_v7 = vmul.f32 0.70710677, %v2454_v60  ;;  %v2592_v18 = vmul.f32 0.5, %v2462_v30 }
 0x5fe   : > { %3830 = vxpose.xlu1.b32.cont [14/16] (narrow) %v3390_v5, 16  ;;  %v8461_v45 = vpop.f32.mrb[45].mxu1  ;;  %v2971_v51 = vadd.f32 1.0, %v6858_v20  ;;  %6869 = verf.f32 %v2720_v47  ;;  %v2590_v59 = vmul.f32 0.5, %v2454_v60 }
 0x5ff   : > { %v8466_v40 = vpop.f32.mrb[46].mxu1  ;;  %v3163_v17 = vpack.c.bf16 %v3094_v10, %v3093_v13  ;;  %6871 = verf.f32 %v2718_v7  ;;  %v6860_v25 = vpop.eup %6859 }
 0x600   : > { %v8468_v32 = vpop.f32.mrb[47].mxu1  ;;  %v6862_v34 = vpop.eup %6861  ;;  %v2969_v58 = vadd.f32 1.0, %v6860_v25  ;;  %v3099_v28 = vmul.f32 %v2971_v51, %v2587_v21  ;;  %v6939_v51 = vld [vmem:[#allocation2] sm:$0xff] }
 0x601   : > { %6140 = vmatprep.mubr.bf16.mxu1 %v3163_v17  ;;  %v6864_v22 = vpop.eup %6863  ;;  %v2972_v0 = vadd.f32 1.0, %v6862_v34 }
 0x602   : > { %3831 = vxpose.xlu1.b32.cont [15/16] (narrow) %v3395_v44, 16  ;;  %6141 = vmatmul.mubr.bf16.gmra.mrb[116].mxu1 %v3164_v35  ;;  %v3097_v2 = vmul.f32 %v2969_v58, %v2585_v63  ;;  %v2970_v12 = vadd.f32 1.0, %v6864_v22 }
 0x603   : > { %v3100_v43 = vmul.f32 %v2972_v0, %v2588_v15 }
 0x604   : > { %v3098_v42 = vmul.f32 %v2970_v12, %v2586_v19 }
 0x605   : > { %v8474_v8 = vpop.f32.mrb[48].mxu1  ;;  %v3166_v6 = vpack.c.bf16 %v3100_v43, %v3099_v28 }
 0x606   : > { %3832 = vxpose.xlu1.b32.end [16/16] (narrow) %v3398_v61, 16  ;;  %v6866_v46 = vpop.eup %6865  ;;  %v8476_v23 = vpop.f32.mrb[49].mxu1  ;;  %v3165_v9 = vpack.c.bf16 %v3098_v42, %v3097_v2  ;;  %v6940_v61 = vld [vmem:[#allocation2 + $0x8] sm:$0xff] }
 0x607   : > { %v6868_v52 = vpop.eup %6867  ;;  %v8478_v49 = vpop.f32.mrb[50].mxu1  ;;  %v2975_v24 = vadd.f32 1.0, %v6866_v46 }
 0x608   : > { %v6870_v26 = vpop.eup %6869  ;;  %v8480_v37 = vpop.f32.mrb[51].mxu1  ;;  %v2973_v5 = vadd.f32 1.0, %v6868_v52  ;;  %6144 = vmatprep.mubr.bf16.mxu1 %v3165_v9 }
 0x609   : > { %v6872_v48 = vpop.eup %6871  ;;  %v3103_v13 = vmul.f32 %v2975_v24, %v2591_v29  ;;  %v2976_v27 = vadd.f32 1.0, %v6870_v26  ;;  %v3406_v26 = vadd.f32 %v8315_v1, %v8400_v31 }
 0x60a   : > { %v3101_v50 = vmul.f32 %v2973_v5, %v2589_v33  ;;  %v2974_v41 = vadd.f32 1.0, %v6872_v48  ;;  %6145 = vmatmul.mubr.bf16.gmra.mrb[120].mxu1 %v3166_v6  ;;  %v3403_v6 = vadd.f32 %v8315_v1, %v8388_v54  ;;  %v3411_v54 = vadd.f32 %v8386_v11, %v8315_v1 }
 0x60b   : > { %v3104_v56 = vmul.f32 %v2976_v27, %v2592_v18  ;;  %v3419_v27 = vadd.f32 %v8315_v1, %v8415_v16  ;;  %v3422_v11 = vadd.f32 %v8315_v1, %v8425_v57  ;;  %v3467_v57 = vadd.f32 %v8315_v1, %v8476_v23 }
 0x60c   : > { %v3102_v35 = vmul.f32 %v2974_v41, %v2590_v59  ;;  %v3438_v23 = vadd.f32 %v8315_v1, %v8450_v38 }
 0x60d   : > { %v8482_v47 = vpop.f32.mrb[52].mxu1  ;;  %v3168_v20 = vpack.c.bf16 %v3104_v56, %v3103_v13  ;;  %v3414_v13 = vadd.f32 %v8395_v4, %v8315_v1  ;;  %v3427_v4 = vadd.f32 %v8413_v62, %v8315_v1  ;;  %v3435_v62 = vadd.f32 %v8315_v1, %v8441_v53  ;;  %v8589_v53 = vld [vmem:[%s7616_s0] ss:$0 sm:$0xff] }
 0x60e   : > { %v8484_v10 = vpop.f32.mrb[53].mxu1  ;;  %v3167_v30 = vpack.c.bf16 %v3102_v35, %v3101_v50  ;;  %v3446_v38 = vadd.f32 %v8589_v53, %v8447_v39  ;;  %v3454_v39 = vadd.f32 %v8589_v53, %v8468_v32  ;;  %v3462_v32 = vadd.f32 %v8589_v53, %v8466_v40 }
 0x60f   : > { %v8486_v7 = vpop.f32.mrb[54].mxu1 }
 0x610   : > { %v8488_v21 = vpop.f32.mrb[55].mxu1  ;;  %6148 = vmatprep.mubr.bf16.mxu1 %v3167_v30 }
 0x611   : > { %v3801_v60 = vpop.trf.xlu0 }
 0x612   : > { %v8490_v44 = vadd.f32 %v6939_v51, %v3801_v60  ;;  %6149 = vmatmul.mubr.bf16.gmra.mrb[124].mxu1 %v3168_v20  ;;  %v3430_v60 = vadd.f32 %v8420_v14, %v8315_v1  ;;  %v3470_v51 = vadd.f32 %v8315_v1, %v8480_v37  ;;  %v3443_v37 = vadd.f32 %v8589_v53, %v8438_v36 }
 0x613   : > { %v3451_v36 = vadd.f32 %v8589_v53, %v8461_v45  ;;  %v3459_v45 = vadd.f32 %v8589_v53, %v8459_v55 }
 0x614   : > { %v4059_v63 = vmul.f32 %v7599_v3, %v8490_v44 }
 0x615   : > { %v8494_v17 = vpop.f32.mrb[56].mxu1  ;;  %v3802_v0 = vpop.trf.xlu0 }
 0x616   : > { %4075 = vadd.xlane.f32.xlu0 %v4059_v63  ;;  %v8496_v25 = vpop.f32.mrb[57].mxu1  ;;  %v8510_v2 = vadd.f32 %v6940_v61, %v3802_v0  ;;  %v3507_v55 = vadd.f32 %v8589_v53, %v8494_v17 }
 0x617   : > { %v8498_v15 = vpop.f32.mrb[58].mxu1 }
 0x618   : > { %v8500_v34 = vpop.f32.mrb[59].mxu1  ;;  %v4060_v12 = vmul.f32 %v7599_v3, %v8510_v2 }
 0x61d   : > { %v8502_v58 = vpop.f32.mrb[60].mxu1 }
 0x61e   : > { %v8504_v19 = vpop.f32.mrb[61].mxu1  ;;  %v3523_v17 = vadd.f32 %v8589_v53, %v8502_v58 }
 0x61f   : > { %v8506_v22 = vpop.f32.mrb[62].mxu1  ;;  %v3515_v40 = vadd.f32 %v8589_v53, %v8504_v19 }
 0x620   : > { %v8508_v28 = vpop.f32.mrb[63].mxu1 }
 0x625   : > { %v8514_v43 = vpop.f32.mrb[64].mxu1 }
 0x626   : > { %v8516_v42 = vpop.f32.mrb[65].mxu1 }
 0x627   : > { %v8518_v29 = vpop.f32.mrb[66].mxu1 }
 0x628   : > { %v8520_v46 = vpop.f32.mrb[67].mxu1 }
 0x62d   : > { %4077 = vadd.xlane.f32.xlu1 %v4060_v12  ;;  %v3475_v12 = vadd.f32 %v8474_v8, %v8315_v1  ;;  %v3483_v1 = vadd.f32 %v8589_v53, %v8484_v10  ;;  %v3491_v10 = vadd.f32 %v8589_v53, %v8482_v47  ;;  %v3499_v47 = vadd.f32 %v8589_v53, %v8496_v25 }
 0x62e   : > { %v3518_v25 = vadd.f32 %v8589_v53, %v8508_v28 }
 0x630   : > { %v8522_v33 = vpop.f32.mrb[68].mxu1 }
 0x631   : > { %v8526_v52 = vpop.f32.mrb[69].mxu1 }
 0x632   : > { %v8528_v24 = vpop.f32.mrb[70].mxu1 }
 0x633   : > { %v8530_v18 = vpop.f32.mrb[71].mxu1 }
 0x640   : > { %v8532_v9 = vpop.f32.mrb[72].mxu1 }
 0x641   : > { %v8536_v5 = vpop.f32.mrb[73].mxu1 }
 0x642   : > { %v8538_v59 = vpop.f32.mrb[74].mxu1 }
 0x643   : > { %3849 = vxpose.xlu0.b32.start [1/16] (narrow) %v3403_v6, 16  ;;  %v8540_v48 = vpop.f32.mrb[75].mxu1  ;;  %v3478_v6 = vadd.f32 %v8589_v53, %v8478_v49  ;;  %v3486_v49 = vadd.f32 %v8589_v53, %v8488_v21  ;;  %v3494_v21 = vadd.f32 %v8589_v53, %v8486_v7  ;;  %v3510_v7 = vadd.f32 %v8589_v53, %v8498_v15 }
 0x644   : > { %v3526_v15 = vadd.f32 %v8589_v53, %v8506_v22 }
 0x647   : > { %3850 = vxpose.xlu0.b32.cont [2/16] (narrow) %v3406_v26, 16 }
 0x64a   : > { %v3833_v28 = vpop.trf.xlu1 }
 0x64b   : > { %3851 = vxpose.xlu0.b32.cont [3/16] (narrow) %v3411_v54, 16 }
 0x64e   : > { %v3834_v22 = vpop.trf.xlu1 }
 0x64f   : > { %3852 = vxpose.xlu0.b32.cont [4/16] (narrow) %v3414_v13, 16 }
 0x650   : > { %v8548_v50 = vpop.f32.mrb[76].mxu1 }
 0x651   : > { %v8550_v31 = vpop.f32.mrb[77].mxu1 }
 0x652   : > { %v8552_v41 = vpop.f32.mrb[78].mxu1 }
 0x653   : > { %3853 = vxpose.xlu0.b32.cont [5/16] (narrow) %v3419_v27, 16  ;;  %v8554_v56 = vpop.f32.mrb[79].mxu1 }
 0x657   : > { %3854 = vxpose.xlu0.b32.cont [6/16] (narrow) %v3422_v11, 16 }
 0x658   : > { %v8560_v35 = vpop.f32.mrb[80].mxu1 }
 0x659   : > { %v8562_v20 = vpop.f32.mrb[81].mxu1 }
 0x65a   : > { %v8564_v16 = vpop.f32.mrb[82].mxu1  ;;  %v3595_v19 = vadd.f32 %v8589_v53, %v8562_v20 }
 0x65b   : > { %3855 = vxpose.xlu0.b32.cont [7/16] (narrow) %v3427_v4, 16  ;;  %v8566_v30 = vpop.f32.mrb[83].mxu1 }
 0x65f   : > { %3856 = vxpose.xlu0.b32.cont [8/16] (narrow) %v3430_v60, 16 }
 0x660   : > { %3881 = vxpose.xlu1.b32.start [1/16] (narrow) %v3467_v57, 16  ;;  %v8576_v63 = vpop.f32.mrb[84].mxu1  ;;  %v3502_v57 = vadd.f32 %v8589_v53, %v8500_v34 }
 0x661   : > { %v8578_v0 = vpop.f32.mrb[85].mxu1 }
 0x662   : > { %v8580_v61 = vpop.f32.mrb[86].mxu1 }
 0x663   : > { %3857 = vxpose.xlu0.b32.cont [9/16] (narrow) %v3435_v62, 16  ;;  %v8582_v14 = vpop.f32.mrb[87].mxu1 }
 0x664   : > { %3882 = vxpose.xlu1.b32.cont [2/16] (narrow) %v3470_v51, 16 }
 0x667   : > { %3858 = vxpose.xlu0.b32.cont [10/16] (narrow) %v3438_v23, 16 }
 0x668   : > { %3883 = vxpose.xlu1.b32.cont [3/16] (narrow) %v3475_v12, 16  ;;  %v8595_v26 = vpop.f32.mrb[88].mxu1  ;;  %v3598_v12 = vadd.f32 %v8589_v53, %v8566_v30  ;;  %v6943_v30 = vld [vmem:[#allocation2 + $0x18] sm:$0xff] }
 0x669   : > { %v8597_v54 = vpop.f32.mrb[89].mxu1 }
 0x66a   : > { %v8603_v8 = vpop.f32.mrb[90].mxu1 }
 0x66b   : > { %3859 = vxpose.xlu0.b32.cont [11/16] (narrow) %v3443_v37, 16  ;;  %v8605_v13 = vpop.f32.mrb[91].mxu1  ;;  %v3603_v37 = vadd.f32 %v8589_v53, %v8560_v35 }
 0x66c   : > { %3884 = vxpose.xlu1.b32.cont [4/16] (narrow) %v3478_v6, 16  ;;  %v6942_v6 = vld [vmem:[#allocation2 + $0x10] sm:$0xff] }
 0x66f   : > { %3860 = vxpose.xlu0.b32.cont [12/16] (narrow) %v3446_v38, 16  ;;  %v8661_v38 = vadd.f32 %v6942_v6, %v3833_v28 }
 0x670   : > { %3885 = vxpose.xlu1.b32.cont [5/16] (narrow) %v3483_v1, 16  ;;  %v8615_v27 = vpop.f32.mrb[92].mxu1 }
 0x671   : > { %v8617_v11 = vpop.f32.mrb[93].mxu1  ;;  %v4061_v35 = vmul.f32 %v7599_v3, %v8661_v38 }
 0x672   : > { %v8619_v4 = vpop.f32.mrb[94].mxu1 }
 0x673   : > { %3861 = vxpose.xlu0.b32.cont [13/16] (narrow) %v3451_v36, 16  ;;  %v8625_v60 = vpop.f32.mrb[95].mxu1 }
 0x674   : > { %3886 = vxpose.xlu1.b32.cont [6/16] (narrow) %v3486_v49, 16  ;;  %v3606_v49 = vadd.f32 %v8589_v53, %v8564_v16  ;;  %v3619_v16 = vadd.f32 %v8589_v53, %v8576_v63  ;;  %v3630_v63 = vadd.f32 %v8589_v53, %v8605_v13  ;;  %v3646_v28 = vadd.f32 %v8589_v53, %v8625_v60 }
 0x677   : > { %3862 = vxpose.xlu0.b32.cont [14/16] (narrow) %v3454_v39, 16  ;;  %v8671_v39 = vadd.f32 %v6943_v30, %v3834_v22  ;;  %v3654_v22 = vadd.f32 %v8589_v53, %v8619_v4  ;;  %v3531_v30 = vadd.f32 %v8589_v53, %v8516_v42 }
 0x678   : > { %3887 = vxpose.xlu1.b32.cont [7/16] (narrow) %v3491_v10, 16  ;;  %v3611_v10 = vadd.f32 %v8589_v53, %v8578_v0  ;;  %v3622_v0 = vadd.f32 %v8589_v53, %v8580_v61 }
 0x67b   : > { %3863 = vxpose.xlu0.b32.cont [15/16] (narrow) %v3459_v45, 16  ;;  %v4062_v45 = vmul.f32 %v7599_v3, %v8671_v39 }
 0x67c   : > { %3888 = vxpose.xlu1.b32.cont [8/16] (narrow) %v3494_v21, 16  ;;  %v3614_v21 = vadd.f32 %v8589_v53, %v8582_v14  ;;  %v3627_v14 = vadd.f32 %v8589_v53, %v8597_v54  ;;  %v3643_v54 = vadd.f32 %v8589_v53, %v8617_v11 }
 0x67f   : > { %3864 = vxpose.xlu0.b32.end [16/16] (narrow) %v3462_v32, 16 }
 0x680   : > { %3889 = vxpose.xlu1.b32.cont [9/16] (narrow) %v3499_v47, 16 }
 0x684   : > { %3890 = vxpose.xlu1.b32.cont [10/16] (narrow) %v3502_v57, 16 }
 0x688   : > { %3891 = vxpose.xlu1.b32.cont [11/16] (narrow) %v3507_v55, 16 }
 0x68c   : > { %3892 = vxpose.xlu1.b32.cont [12/16] (narrow) %v3510_v7, 16  ;;  %v3635_v7 = vadd.f32 %v8589_v53, %v8595_v26 }
 0x690   : > { %3893 = vxpose.xlu1.b32.cont [13/16] (narrow) %v3515_v40, 16 }
 0x693   : > { %v8641_v62 = vpop.f32.mrb[96].mxu1 }
 0x694   : > { %3894 = vxpose.xlu1.b32.cont [14/16] (narrow) %v3518_v25, 16  ;;  %v8643_v34 = vpop.f32.mrb[97].mxu1 }
 0x695   : > { %v8645_v51 = vpop.f32.mrb[98].mxu1 }
 0x696   : > { %v8649_v23 = vpop.f32.mrb[99].mxu1 }
 0x698   : > { %3895 = vxpose.xlu1.b32.cont [15/16] (narrow) %v3523_v17, 16  ;;  %v3638_v17 = vadd.f32 %v8589_v53, %v8603_v8 }
 0x69c   : > { %3896 = vxpose.xlu1.b32.end [16/16] (narrow) %v3526_v15, 16 }
 0x6a0   : > { %3945 = vxpose.xlu1.b32.start [1/16] (narrow) %v3595_v19, 16 }
 0x6a4   : > { %3946 = vxpose.xlu1.b32.cont [2/16] (narrow) %v3598_v12, 16  ;;  %v8659_v58 = vpop.f32.mrb[100].mxu1 }
 0x6a5   : > { %v8663_v1 = vpop.f32.mrb[101].mxu1 }
 0x6a6   : > { %v8665_v36 = vpop.f32.mrb[102].mxu1 }
 0x6a7   : > { %v8667_v20 = vpop.f32.mrb[103].mxu1 }
 0x6a8   : > { %3947 = vxpose.xlu1.b32.cont [3/16] (narrow) %v3603_v37, 16  ;;  %v3651_v37 = vadd.f32 %v8589_v53, %v8615_v27  ;;  %v3534_v27 = vadd.f32 %v8589_v53, %v8520_v46 }
 0x6ac   : > { %3948 = vxpose.xlu1.b32.cont [4/16] (narrow) %v3606_v49, 16  ;;  %4079 = vadd.xlane.f32.xlu0 %v4061_v35 }
 0x6b0   : > { %3949 = vxpose.xlu1.b32.cont [5/16] (narrow) %v3611_v10, 16  ;;  %4081 = vadd.xlane.f32.xlu0 %v4062_v45 }
 0x6b4   : > { %3950 = vxpose.xlu1.b32.cont [6/16] (narrow) %v3614_v21, 16 }
 0x6b5   : > { %v8683_v32 = vpop.f32.mrb[104].mxu1 }
 0x6b6   : > { %v8685_v47 = vpop.f32.mrb[105].mxu1 }
 0x6b7   : > { %v8687_v57 = vpop.f32.mrb[106].mxu1 }
 0x6b8   : > { %3951 = vxpose.xlu1.b32.cont [7/16] (narrow) %v3619_v16, 16  ;;  %v8691_v55 = vpop.f32.mrb[107].mxu1  ;;  %v3539_v16 = vadd.f32 %v8589_v53, %v8514_v43 }
 0x6bc   : > { %3952 = vxpose.xlu1.b32.cont [8/16] (narrow) %v3622_v0, 16 }
 0x6c0   : > { %3953 = vxpose.xlu1.b32.cont [9/16] (narrow) %v3627_v14, 16 }
 0x6c4   : > { %3954 = vxpose.xlu1.b32.cont [10/16] (narrow) %v3630_v63, 16  ;;  %v3542_v63 = vadd.f32 %v8589_v53, %v8518_v29  ;;  %v3555_v29 = vadd.f32 %v8589_v53, %v8522_v33  ;;  %v3566_v33 = vadd.f32 %v8589_v53, %v8540_v48  ;;  %v3579_v48 = vadd.f32 %v8589_v53, %v8550_v31 }
 0x6c5   : > { %v8699_v40 = vpop.f32.mrb[108].mxu1  ;;  %v3590_v31 = vadd.f32 %v8589_v53, %v8552_v41 }
 0x6c6   : > { %v8701_v25 = vpop.f32.mrb[109].mxu1 }
 0x6c7   : > { %v8703_v61 = vpop.f32.mrb[110].mxu1 }
 0x6c8   : > { %3955 = vxpose.xlu1.b32.cont [11/16] (narrow) %v3635_v7, 16  ;;  %v8707_v15 = vpop.f32.mrb[111].mxu1 }
 0x6cc   : > { %3956 = vxpose.xlu1.b32.cont [12/16] (narrow) %v3638_v17, 16 }
 0x6cd   : > { %v6138_v13 = vpop.f32.mrb[112].mxu1 }
 0x6ce   : > { %v3722_v19 = vpop.f32.mrb[113].mxu1  ;;  %v3731_v42 = vadd.f32 %v8589_v53, %v6138_v13  ;;  %v3550_v13 = vadd.f32 %v8589_v53, %v8530_v18  ;;  %v3563_v18 = vadd.f32 %v8589_v53, %v8536_v5  ;;  %v3574_v5 = vadd.f32 %v8589_v53, %v8538_v59 }
 0x6cf   : > { %v6139_v26 = vpop.f32.mrb[114].mxu1  ;;  %v3723_v60 = vadd.f32 %v8589_v53, %v3722_v19  ;;  %v3587_v59 = vadd.f32 %v8589_v53, %v8548_v50 }
 0x6d0   : > { %3957 = vxpose.xlu1.b32.cont [13/16] (narrow) %v3643_v54, 16  ;;  %v3725_v12 = vpop.f32.mrb[115].mxu1  ;;  %v3734_v46 = vadd.f32 %v8589_v53, %v6139_v26  ;;  %v3547_v54 = vadd.f32 %v8589_v53, %v8526_v52  ;;  %v3558_v52 = vadd.f32 %v8589_v53, %v8528_v24  ;;  %v3571_v24 = vadd.f32 %v8589_v53, %v8532_v9 }
 0x6d1   : > { %v3726_v45 = vadd.f32 %v8589_v53, %v3725_v12  ;;  %v3582_v9 = vadd.f32 %v8589_v53, %v8554_v56  ;;  %v8765_v56 = vpop.xlane.xlu1 %4077 }
 0x6d4   : > { %3958 = vxpose.xlu1.b32.cont [14/16] (narrow) %v3646_v28, 16 }
 0x6d5   : > { %v6142_v8 = vpop.f32.mrb[116].mxu1 }
 0x6d6   : > { %v3738_v6 = vpop.f32.mrb[117].mxu1  ;;  %v3747_v26 = vadd.f32 %v8589_v53, %v6142_v8 }
 0x6d7   : > { %v6143_v11 = vpop.f32.mrb[118].mxu1  ;;  %v3739_v43 = vadd.f32 %v8589_v53, %v3738_v6 }
 0x6d8   : > { %3959 = vxpose.xlu1.b32.cont [15/16] (narrow) %v3651_v37, 16  ;;  %v3741_v49 = vpop.f32.mrb[119].mxu1  ;;  %v3750_v28 = vadd.f32 %v8589_v53, %v6143_v11 }
 0x6d9   : > { %v3742_v19 = vadd.f32 %v8589_v53, %v3741_v49 }
 0x6dc   : > { %3960 = vxpose.xlu1.b32.end [16/16] (narrow) %v3654_v22, 16 }
 0x6dd   : > { %3913 = vxpose.xlu0.b32.start [1/16] (narrow) %v3531_v30, 16  ;;  %v6146_v35 = vpop.f32.mrb[120].mxu1 }
 0x6de   : > { %v3754_v10 = vpop.f32.mrb[121].mxu1  ;;  %v3763_v8 = vadd.f32 %v8589_v53, %v6146_v35 }
 0x6df   : > { %v6147_v21 = vpop.f32.mrb[122].mxu1  ;;  %v3755_v12 = vadd.f32 %v8589_v53, %v3754_v10 }
 0x6e0   : > { %4009 = vxpose.xlu1.b32.start [1/16] (narrow) %v3723_v60, 16  ;;  %v3757_v4 = vpop.f32.mrb[123].mxu1  ;;  %v3766_v6 = vadd.f32 %v8589_v53, %v6147_v21  ;;  %v3897_v60 = vpop.trf.xlu1 }
 0x6e1   : > { %3914 = vxpose.xlu0.b32.cont [2/16] (narrow) %v3534_v27, 16  ;;  %v3758_v37 = vadd.f32 %v8589_v53, %v3757_v4  ;;  %v8769_v27 = vpop.xlane.xlu0 %4075 }
 0x6e4   : > { %4010 = vxpose.xlu1.b32.cont [2/16] (narrow) %v3726_v45, 16  ;;  %v3898_v35 = vpop.trf.xlu1  ;;  %v6944_v45 = vld [vmem:[#allocation2 + $0x58] sm:$0xff] }
 0x6e5   : > { %3915 = vxpose.xlu0.b32.cont [3/16] (narrow) %v3539_v16, 16  ;;  %v6150_v0 = vpop.f32.mrb[124].mxu1  ;;  %v3865_v4 = vpop.trf.xlu0  ;;  %v6945_v16 = vld [vmem:[#allocation2 + $0x20] sm:$0xff] }
 0x6e6   : > { %v3770_v14 = vpop.f32.mrb[125].mxu1  ;;  %v3779_v49 = vadd.f32 %v8589_v53, %v6150_v0  ;;  %v8773_v41 = vadd.f32 %v6945_v16, %v3865_v4  ;;  %v6953_v4 = vld [vmem:[#allocation2 + $0x60] sm:$0xff] }
 0x6e7   : > { %v6151_v7 = vpop.f32.mrb[126].mxu1  ;;  %v3771_v22 = vadd.f32 %v8589_v53, %v3770_v14  ;;  %v6946_v14 = vld [vmem:[#allocation2 + $0x28] sm:$0xff] }
 0x6e8   : > { %4011 = vxpose.xlu1.b32.cont [3/16] (narrow) %v3731_v42, 16  ;;  %v3773_v17 = vpop.f32.mrb[127].mxu1  ;;  %v3782_v30 = vadd.f32 %v8589_v53, %v6151_v7  ;;  %v6947_v7 = vld [vmem:[#allocation2 + $0x30] sm:$0xff] }
 0x6e9   : > { %3916 = vxpose.xlu0.b32.cont [4/16] (narrow) %v3542_v63, 16  ;;  %v3774_v11 = vadd.f32 %v8589_v53, %v3773_v17  ;;  %v3866_v0 = vpop.trf.xlu0  ;;  %v8781_v17 = vadd.f32 %v6947_v7, %v3897_v60 }
 0x6ea   : > { %v8777_v63 = vadd.f32 %v6946_v14, %v3866_v0 }
 0x6ec   : > { %4012 = vxpose.xlu1.b32.cont [4/16] (narrow) %v3734_v46, 16  ;;  %v4063_v46 = vmul.f32 %v7599_v3, %v8773_v41 }
 0x6ed   : > { %3917 = vxpose.xlu0.b32.cont [5/16] (narrow) %v3547_v54, 16  ;;  %v4064_v54 = vmul.f32 %v7599_v3, %v8777_v63 }
 0x6f0   : > { %4013 = vxpose.xlu1.b32.cont [5/16] (narrow) %v3739_v43, 16  ;;  %v6948_v43 = vld [vmem:[#allocation2 + $0x38] sm:$0xff] }
 0x6f1   : > { %3918 = vxpose.xlu0.b32.cont [6/16] (narrow) %v3550_v13, 16  ;;  %v8785_v13 = vadd.f32 %v6948_v43, %v3898_v35  ;;  %v4107_v35 = vmul.f32 0.03125, %v8769_v27  ;;  %v6954_v43 = vld [vmem:[#allocation2 + $0x78] sm:$0xff] }
 0x6f3   : > { %v4123_v14 = vsub.f32 %v8490_v44, %v4107_v35  ;;  %v6576_v35 = vld [vmem:[%s7629_s28 + $0x38] sm:$0xff]  }
 0x6f4   : > { %4014 = vxpose.xlu1.b32.cont [6/16] (narrow) %v3742_v19, 16  ;;  %v4065_v19 = vmul.f32 %v7599_v3, %v8781_v17 }
 0x6f5   : > { %3919 = vxpose.xlu0.b32.cont [7/16] (narrow) %v3555_v29, 16  ;;  %v4066_v29 = vmul.f32 %v7599_v3, %v8785_v13 }
 0x6f8   : > { %4015 = vxpose.xlu1.b32.cont [7/16] (narrow) %v3747_v26, 16  ;;  %v3659_v26 = vadd.f32 %v8589_v53, %v8643_v34  ;;  %v3678_v34 = vadd.f32 %v8589_v53, %v8667_v20  ;;  %v3694_v20 = vadd.f32 %v8589_v53, %v8691_v55  ;;  %v3715_v55 = vadd.f32 %v8589_v53, %v8699_v40 }
 0x6f9   : > { %3920 = vxpose.xlu0.b32.cont [8/16] (narrow) %v3558_v52, 16  ;;  %v3662_v52 = vadd.f32 %v8589_v53, %v8649_v23  ;;  %v3683_v23 = vadd.f32 %v8589_v53, %v8659_v58  ;;  %v3699_v58 = vadd.f32 %v8589_v53, %v8683_v32  ;;  %v3718_v32 = vadd.f32 %v8589_v53, %v8703_v61 }
 0x6fc   : > { %4016 = vxpose.xlu1.b32.cont [8/16] (narrow) %v3750_v28, 16  ;;  %v3667_v28 = vadd.f32 %v8589_v53, %v8641_v62  ;;  %v3686_v62 = vadd.f32 %v8589_v53, %v8665_v36  ;;  %v3702_v36 = vadd.f32 %v8589_v53, %v8687_v57 }
 0x6fd   : > { %3921 = vxpose.xlu0.b32.cont [9/16] (narrow) %v3563_v18, 16  ;;  %v3670_v18 = vadd.f32 %v8589_v53, %v8645_v51  ;;  %v6570_v51 = vld [vmem:[%s7629_s28 + $0x8] sm:$0xff]  }
 0x700   : > { %4017 = vxpose.xlu1.b32.cont [9/16] (narrow) %v3755_v12, 16  ;;  %v3675_v12 = vadd.f32 %v8589_v53, %v8663_v1  ;;  %v6571_v1 = vld [vmem:[%s7629_s28 + $0x10] sm:$0xff]  }
 0x701   : > { %3922 = vxpose.xlu0.b32.cont [10/16] (narrow) %v3566_v33, 16  ;;  %v6569_v33 = vld [vmem:[%s7629_s28] sm:$0xff]  }
 0x702   : > { %6152 = vmatprep.subr.bf16.mxu0 %v6569_v33 }
 0x703   : > { %6153 = vmatpush3.bf16.msra.mxu0 %v6569_v33 }
 0x704   : > { %4018 = vxpose.xlu1.b32.cont [10/16] (narrow) %v3758_v37, 16  ;;  %v3691_v37 = vadd.f32 %v8589_v53, %v8685_v47  ;;  %6154 = vmatprep.subr.bf16.mxu0 %v6570_v51  ;;  %v3707_v47 = vadd.f32 %v8589_v53, %v8701_v25 }
 0x705   : > { %3923 = vxpose.xlu0.b32.cont [11/16] (narrow) %v3571_v24, 16  ;;  %v3710_v24 = vadd.f32 %v8589_v53, %v8707_v15 }
 0x707   : > { %6155 = vmatpush3.bf16.msra.mxu0 %v6570_v51 }
 0x708   : > { %4019 = vxpose.xlu1.b32.cont [11/16] (narrow) %v3763_v8, 16  ;;  %6156 = vmatprep.subr.bf16.mxu0 %v6571_v1 }
 0x709   : > { %3924 = vxpose.xlu0.b32.cont [12/16] (narrow) %v3574_v5, 16 }
 0x70b   : > { %6157 = vmatpush3.bf16.msra.mxu0 %v6571_v1 }
 0x70c   : > { %4020 = vxpose.xlu1.b32.cont [12/16] (narrow) %v3766_v6, 16  ;;  %v6949_v6 = vld [vmem:[#allocation2 + $0x40] sm:$0xff] }
 0x70d   : > { %3925 = vxpose.xlu0.b32.cont [13/16] (narrow) %v3579_v48, 16 }
 0x710   : > { %4021 = vxpose.xlu1.b32.cont [13/16] (narrow) %v3771_v22, 16  ;;  %v6950_v22 = vld [vmem:[#allocation2 + $0x48] sm:$0xff] }
 0x711   : > { %3926 = vxpose.xlu0.b32.cont [14/16] (narrow) %v3582_v9, 16 }
 0x714   : > { %4022 = vxpose.xlu1.b32.cont [14/16] (narrow) %v3774_v11, 16  ;;  %v6951_v11 = vld [vmem:[#allocation2 + $0x50] sm:$0xff] }
 0x715   : > { %3927 = vxpose.xlu0.b32.cont [15/16] (narrow) %v3587_v59, 16 }
 0x718   : > { %4023 = vxpose.xlu1.b32.cont [15/16] (narrow) %v3779_v49, 16 }
 0x719   : > { %3928 = vxpose.xlu0.b32.end [16/16] (narrow) %v3590_v31, 16 }
 0x71c   : > { %4024 = vxpose.xlu1.b32.end [16/16] (narrow) %v3782_v30, 16 }
 0x720   : > { %v8767_v10 = vpop.trf.xlu1 }
 0x721   : > { %v8833_v40 = vadd.f32 %v6951_v11, %v8767_v10 }
 0x723   : > { %v4069_v59 = vmul.f32 %v7599_v3, %v8833_v40 }
 0x724   : > { %v3962_v50 = vpop.trf.xlu1 }
 0x725   : > { %v8771_v21 = vadd.f32 %v6944_v45, %v3962_v50  ;;  %v6952_v45 = vld [vmem:[#allocation2 + $0x70] sm:$0xff] }
 0x727   : > { %v4070_v42 = vmul.f32 %v7599_v3, %v8771_v21 }
 0x739   : > { %v4080_v8 = vpop.xlane.xlu0 %4079 }
 0x73a   : > { %v4109_v0 = vmul.f32 0.03125, %v4080_v8 }
 0x73d   : > { %v4082_v5 = vpop.xlane.xlu0 %4081 }
 0x743   : > { %4097 = vadd.xlane.f32.xlu1 %v4070_v42  ;;  %v4108_v42 = vmul.f32 0.03125, %v8765_v56 }
 0x745   : > { %v4124_v56 = vsub.f32 %v8510_v2, %v4108_v42 }
 0x746   : > { %4083 = vadd.xlane.f32.xlu0 %v4063_v46 }
 0x747   : > { %v8865_v33 = vmul.f32 %v7599_v3, %v4124_v56 }
 0x74a   : > { %4085 = vadd.xlane.f32.xlu0 %v4064_v54 }
 0x74e   : > { %4087 = vadd.xlane.f32.xlu0 %v4065_v19  ;;  %v6955_v19 = vld [vmem:[#allocation2 + $0x68] sm:$0xff] }
 0x752   : > { %4089 = vadd.xlane.f32.xlu0 %v4066_v29 }
 0x75d   : > { %v3929_v57 = vpop.trf.xlu0 }
 0x75e   : > { %v8826_v48 = vadd.f32 %v6949_v6, %v3929_v57 }
 0x760   : > { %v4067_v15 = vmul.f32 %v7599_v3, %v8826_v48  ;;  %v4025_v60 = vpop.trf.xlu1 }
 0x761   : > { %v3930_v25 = vpop.trf.xlu0  ;;  %v8840_v10 = vadd.f32 %v6952_v45, %v4025_v60  ;;  %v6575_v60 = vld [vmem:[%s7629_s28 + $0x30] sm:$0xff]  }
 0x762   : > { %v8828_v9 = vadd.f32 %v6950_v22, %v3930_v25 }
 0x764   : > { %v4068_v53 = vmul.f32 %v7599_v3, %v8828_v9  ;;  %v4026_v7 = vpop.trf.xlu1 }
 0x765   : > { %v8848_v27 = vadd.f32 %v6954_v43, %v4026_v7 }
 0x77f   : > { %3977 = vxpose.xlu0.b32.start [1/16] (narrow) %v3659_v26, 16  ;;  %v4073_v26 = vmul.f32 %v7599_v3, %v8840_v10 }
 0x783   : > { %3978 = vxpose.xlu0.b32.cont [2/16] (narrow) %v3662_v52, 16  ;;  %v4125_v52 = vsub.f32 %v8661_v38, %v4109_v0 }
 0x785   : > { %v8868_v51 = vmul.f32 %v7599_v3, %v4125_v52 }
 0x787   : > { %3979 = vxpose.xlu0.b32.cont [3/16] (narrow) %v3667_v28, 16  ;;  %v4110_v28 = vmul.f32 0.03125, %v4082_v5 }
 0x78b   : > { %3980 = vxpose.xlu0.b32.cont [4/16] (narrow) %v3670_v18, 16  ;;  %v8857_v18 = vmul.f32 %v7599_v3, %v4123_v14 }
 0x78f   : > { %3981 = vxpose.xlu0.b32.cont [5/16] (narrow) %v3675_v12, 16 }
 0x793   : > { %3982 = vxpose.xlu0.b32.cont [6/16] (narrow) %v3678_v34, 16 }
 0x797   : > { %3983 = vxpose.xlu0.b32.cont [7/16] (narrow) %v3683_v23, 16  ;;  %v6572_v23 = vld [vmem:[%s7629_s28 + $0x18] sm:$0xff]  }
 0x798   : > { %6158 = vmatprep.subr.bf16.mxu0 %v6572_v23 }
 0x799   : > { %6159 = vmatpush3.bf16.msra.mxu0 %v6572_v23 }
 0x79b   : > { %3984 = vxpose.xlu0.b32.cont [8/16] (narrow) %v3686_v62, 16  ;;  %v4074_v62 = vmul.f32 %v7599_v3, %v8848_v27 }
 0x79f   : > { %3985 = vxpose.xlu0.b32.cont [9/16] (narrow) %v3691_v37, 16  ;;  %v4126_v37 = vsub.f32 %v8671_v39, %v4110_v28 }
 0x7a3   : > { %3986 = vxpose.xlu0.b32.cont [10/16] (narrow) %v3694_v20, 16 }
 0x7a7   : > { %3987 = vxpose.xlu0.b32.cont [11/16] (narrow) %v3699_v58, 16 }
 0x7ab   : > { %3988 = vxpose.xlu0.b32.cont [12/16] (narrow) %v3702_v36, 16  ;;  %v4155_v36 = vmul.f32 %v8857_v18, %v8857_v18 }
 0x7af   : > { %3989 = vxpose.xlu0.b32.cont [13/16] (narrow) %v3707_v47, 16  ;;  %v8875_v47 = vmul.f32 %v7599_v3, %v4126_v37 }
 0x7b1   : > { %v4158_v6 = vmul.f32 %v8875_v47, %v8875_v47 }
 0x7b3   : > { %3990 = vxpose.xlu0.b32.cont [14/16] (narrow) %v3710_v24, 16  ;;  %v4157_v24 = vmul.f32 %v8868_v51, %v8868_v51 }
 0x7b7   : > { %3991 = vxpose.xlu0.b32.cont [15/16] (narrow) %v3715_v55, 16  ;;  %v4156_v55 = vmul.f32 %v8865_v33, %v8865_v33 }
 0x7bb   : > { %3992 = vxpose.xlu0.b32.end [16/16] (narrow) %v3718_v32, 16 }
 0x7d3   : > { %v4084_v61 = vpop.xlane.xlu0 %4083 }
 0x7d4   : > { %v4111_v12 = vmul.f32 0.03125, %v4084_v61 }
 0x7d6   : > { %v4127_v1 = vsub.f32 %v8773_v41, %v4111_v12 }
 0x7d7   : > { %v4086_v49 = vpop.xlane.xlu0 %4085 }
 0x7d8   : > { %v4112_v20 = vmul.f32 0.03125, %v4086_v49  ;;  %v8882_v32 = vmul.f32 %v7599_v3, %v4127_v1 }
 0x7da   : > { %v4128_v8 = vsub.f32 %v8777_v63, %v4112_v20  ;;  %v4159_v11 = vmul.f32 %v8882_v32, %v8882_v32 }
 0x7db   : > { %v4088_v31 = vpop.xlane.xlu0 %4087 }
 0x7dc   : > { %v4113_v58 = vmul.f32 0.03125, %v4088_v31  ;;  %v8889_v25 = vmul.f32 %v7599_v3, %v4128_v8  ;;  %v6573_v31 = vld [vmem:[%s7629_s28 + $0x20] sm:$0xff]  }
 0x7dd   : > { %6160 = vmatprep.subr.bf16.mxu0 %v6573_v31 }
 0x7de   : > { %v4129_v5 = vsub.f32 %v8781_v17, %v4113_v58  ;;  %6161 = vmatpush3.bf16.msra.mxu0 %v6573_v31 }
 0x7df   : > { %v4090_v30 = vpop.xlane.xlu0 %4089 }
 0x7e0   : > { %v4114_v57 = vmul.f32 0.03125, %v4090_v30  ;;  %v8892_v22 = vmul.f32 %v7599_v3, %v4129_v5  ;;  %v6574_v30 = vld [vmem:[%s7629_s28 + $0x28] sm:$0xff]  }
 0x7e1   : > { %6162 = vmatprep.subr.bf16.mxu0 %v6574_v30 }
 0x7e2   : > { %v4161_v61 = vmul.f32 %v8892_v22, %v8892_v22  ;;  %6163 = vmatpush3.bf16.msra.mxu0 %v6574_v30 }
 0x7e3   : > { %6164 = vmatprep.subr.bf16.mxu0 %v6575_v60 }
 0x7e6   : > { %6165 = vmatpush3.bf16.msra.mxu0 %v6575_v60 }
 0x7e7   : > { %6166 = vmatprep.subr.bf16.mxu0 %v6576_v35 }
 0x7e8   : > { %4091 = vadd.xlane.f32.xlu0 %v4067_v15  ;;  %v4130_v15 = vsub.f32 %v8785_v13, %v4114_v57 }
 0x7ea   : > { %6167 = vmatpush3.bf16.msra.mxu0 %v6576_v35 }
 0x7ec   : > { %4093 = vadd.xlane.f32.xlu0 %v4068_v53  ;;  %v8898_v53 = vmul.f32 %v7599_v3, %v4130_v15 }
 0x7ee   : > { %v4162_v49 = vmul.f32 %v8898_v53, %v8898_v53 }
 0x7f0   : > { %4095 = vadd.xlane.f32.xlu0 %v4069_v59  ;;  %v4160_v59 = vmul.f32 %v8889_v25, %v8889_v25 }
 0x7ff   : > { %v3993_v50 = vpop.trf.xlu0 }
 0x800   : > { %v8842_v16 = vadd.f32 %v6953_v4, %v3993_v50  ;;  %v4098_v50 = vpop.xlane.xlu1 %4097 }
 0x801   : > { %v4118_v42 = vmul.f32 0.03125, %v4098_v50 }
 0x802   : > { %v4071_v46 = vmul.f32 %v7599_v3, %v8842_v16 }
 0x803   : > { %v3994_v54 = vpop.trf.xlu0 }
 0x804   : > { %v8850_v29 = vadd.f32 %v6955_v19, %v3994_v54  ;;  %4099 = vadd.xlane.f32.xlu0 %v4071_v46  ;;  %v4134_v54 = vsub.f32 %v8771_v21, %v4118_v42 }
 0x806   : > { %v4072_v34 = vmul.f32 %v7599_v3, %v8850_v29  ;;  %v8922_v28 = vmul.f32 %v7599_v3, %v4134_v54 }
 0x808   : > { %4103 = vadd.xlane.f32.xlu0 %v4073_v26  ;;  %4101 = vadd.xlane.f32.xlu1 %v4072_v34 }
 0x80c   : > { %4171 = vadd.xlane.f32.xlu0 %v4155_v36  ;;  %4105 = vadd.xlane.f32.xlu1 %v4074_v62  ;;  %v4166_v62 = vmul.f32 %v8922_v28, %v8922_v28 }
 0x810   : > { %4175 = vadd.xlane.f32.xlu0 %v4157_v24  ;;  %4173 = vadd.xlane.f32.xlu1 %v4156_v55 }
 0x814   : > { %4179 = vadd.xlane.f32.xlu0 %v4159_v11  ;;  %4177 = vadd.xlane.f32.xlu1 %v4158_v6 }
 0x818   : > { %4183 = vadd.xlane.f32.xlu0 %v4161_v61  ;;  %4181 = vadd.xlane.f32.xlu1 %v4160_v59  ;;  %v8943_v59 = vld [vmem:[%s7570_s12] sm:$0xff]  }
 0x819   : > { %6252 = vmatprep.subr.bf16.mxu1 %v8943_v59  ;;  %6184 = vmatprep.subr.bf16.mxu0 %v8943_v59 }
 0x81a   : > { %6260 = vmatpush3.bf16.msra.mxu1 %v8943_v59 }
 0x81c   : > { %4185 = vadd.xlane.f32.xlu1 %v4162_v49 }
 0x875   : > { %v4092_v45 = vpop.xlane.xlu0 %4091 }
 0x876   : > { %v4115_v4 = vmul.f32 0.03125, %v4092_v45 }
 0x878   : > { %v4131_v0 = vsub.f32 %v8826_v48, %v4115_v4 }
 0x879   : > { %v4094_v14 = vpop.xlane.xlu0 %4093 }
 0x87a   : > { %v8912_v46 = vmul.f32 %v7599_v3, %v4131_v0  ;;  %v4116_v7 = vmul.f32 0.03125, %v4094_v14 }
 0x87c   : > { %v4132_v43 = vsub.f32 %v8828_v9, %v4116_v7  ;;  %v4163_v19 = vmul.f32 %v8912_v46, %v8912_v46 }
 0x87d   : > { %v4096_v26 = vpop.xlane.xlu0 %4095 }
 0x87e   : > { %v8919_v56 = vmul.f32 %v7599_v3, %v4132_v43  ;;  %v4117_v52 = vmul.f32 0.03125, %v4096_v26  ;;  %4187 = vadd.xlane.f32.xlu0 %v4163_v19 }
 0x880   : > { %v4133_v12 = vsub.f32 %v8833_v40, %v4117_v52  ;;  %v4164_v34 = vmul.f32 %v8919_v56, %v8919_v56 }
 0x882   : > { %v8928_v23 = vmul.f32 %v7599_v3, %v4133_v12  ;;  %4189 = vadd.xlane.f32.xlu1 %v4164_v34 }
 0x884   : > { %v4165_v37 = vmul.f32 %v8928_v23, %v8928_v23 }
 0x886   : > { %4193 = vadd.xlane.f32.xlu1 %v4166_v62  ;;  %4191 = vadd.xlane.f32.xlu0 %v4165_v37 }
 0x891   : > { %v4100_v1 = vpop.xlane.xlu0 %4099 }
 0x892   : > { %v4119_v20 = vmul.f32 0.03125, %v4100_v1 }
 0x894   : > { %v4135_v58 = vsub.f32 %v8842_v16, %v4119_v20 }
 0x895   : > { %v4102_v36 = vpop.xlane.xlu1 %4101  ;;  %v4104_v24 = vpop.xlane.xlu0 %4103 }
 0x896   : > { %v8936_v55 = vmul.f32 %v7599_v3, %v4135_v58  ;;  %v4120_v8 = vmul.f32 0.03125, %v4102_v36  ;;  %v4121_v5 = vmul.f32 0.03125, %v4104_v24 }
 0x898   : > { %v4136_v57 = vsub.f32 %v8850_v29, %v4120_v8  ;;  %v4137_v6 = vsub.f32 %v8840_v10, %v4121_v5  ;;  %v4167_v15 = vmul.f32 %v8936_v55, %v8936_v55 }
 0x899   : > { %v4106_v11 = vpop.xlane.xlu1 %4105  ;;  %v4172_v61 = vpop.xlane.xlu0 %4171 }
 0x89a   : > { %v8946_v49 = vmul.f32 %v7599_v3, %v4136_v57  ;;  %v8949_v31 = vmul.f32 %v7599_v3, %v4137_v6  ;;  %v4122_v30 = vmul.f32 0.03125, %v4106_v11  ;;  %v4203_v60 = vmul.f32 0.03125, %v4172_v61  ;;  %4195 = vadd.xlane.f32.xlu0 %v4167_v15  ;;  %v8970_v11 = vld [vmem:[%s849_s27] ss:$0 sm:$0xff] }
 0x89c   : > { %v4138_v35 = vsub.f32 %v8848_v27, %v4122_v30  ;;  %v4219_v50 = vadd.f32 1e-05, %v4203_v60  ;;  %v4168_v45 = vmul.f32 %v8946_v49, %v8946_v49  ;;  %v4169_v4 = vmul.f32 %v8949_v31, %v8949_v31 }
 0x89d   : > { %v4174_v42 = vpop.xlane.xlu1 %4173  ;;  %v4176_v0 = vpop.xlane.xlu0 %4175 }
 0x89e   : > { %v8960_v14 = vmul.f32 %v7599_v3, %v4138_v35  ;;  %6873 = vrsqrt.f32 %v4219_v50  ;;  %v4204_v7 = vmul.f32 0.03125, %v4174_v42  ;;  %v4205_v54 = vmul.f32 0.03125, %v4176_v0  ;;  %4197 = vadd.xlane.f32.xlu1 %v4168_v45  ;;  %4199 = vadd.xlane.f32.xlu0 %v4169_v4 }
 0x8a0   : > { %v4220_v43 = vadd.f32 1e-05, %v4204_v7  ;;  %v4221_v19 = vadd.f32 1e-05, %v4205_v54  ;;  %v4170_v26 = vmul.f32 %v8960_v14, %v8960_v14 }
 0x8a1   : > { %v4178_v52 = vpop.xlane.xlu1 %4177  ;;  %v4180_v12 = vpop.xlane.xlu0 %4179 }
 0x8a2   : > { %6875 = vrsqrt.f32 %v4220_v43  ;;  %v4206_v34 = vmul.f32 0.03125, %v4178_v52  ;;  %v4207_v62 = vmul.f32 0.03125, %v4180_v12  ;;  %4201 = vadd.xlane.f32.xlu1 %v4170_v26 }
 0x8a3   : > { %6877 = vrsqrt.f32 %v4221_v19 }
 0x8a4   : > { %v4222_v37 = vadd.f32 1e-05, %v4206_v34  ;;  %v4223_v1 = vadd.f32 1e-05, %v4207_v62 }
 0x8a5   : > { %v4182_v20 = vpop.xlane.xlu1 %4181  ;;  %v4184_v58 = vpop.xlane.xlu0 %4183 }
 0x8a6   : > { %6879 = vrsqrt.f32 %v4222_v37  ;;  %v4208_v36 = vmul.f32 0.03125, %v4182_v20  ;;  %v4209_v24 = vmul.f32 0.03125, %v4184_v58 }
 0x8a7   : > { %6881 = vrsqrt.f32 %v4223_v1 }
 0x8a8   : > { %v6874_v8 = vpop.eup %6873  ;;  %v4224_v5 = vadd.f32 1e-05, %v4208_v36  ;;  %v4225_v57 = vadd.f32 1e-05, %v4209_v24 }
 0x8a9   : > { %v4186_v6 = vpop.xlane.xlu1 %4185  ;;  %v4251_v15 = vmul.f32 %v6874_v8, %v8857_v18  ;;  %v8980_v18 = vld [vmem:[%s852_s8] ss:$0 sm:$0xff] }
 0x8aa   : > { %6883 = vrsqrt.f32 %v4224_v5  ;;  %v4210_v61 = vmul.f32 0.03125, %v4186_v6 }
 0x8ab   : > { %6885 = vrsqrt.f32 %v4225_v57  ;;  %v4273_v45 = vmul.f32 %v8970_v11, %v4251_v15 }
 0x8ac   : > { %v6876_v30 = vpop.eup %6875  ;;  %v4226_v60 = vadd.f32 1e-05, %v4210_v61 }
 0x8ad   : > { %v6878_v35 = vpop.eup %6877  ;;  %v4252_v50 = vmul.f32 %v6876_v30, %v8865_v33  ;;  %v4295_v33 = vadd.f32 %v8980_v18, %v4273_v45  ;;  %v6578_v30 = vld [vmem:[%s7570_s12 + $0x8] sm:$0xff]  }
 0x8ae   : > { %v4253_v4 = vmul.f32 %v6878_v35, %v8868_v51  ;;  %6887 = vrsqrt.f32 %v4226_v60  ;;  %6253 = vmatprep.subr.bf16.mxu1 %v6578_v30  ;;  %v6580_v60 = vld [vmem:[%s7570_s12 + $0x18] sm:$0xff]  }
 0x8af   : > { %v4274_v42 = vmul.f32 %v8970_v11, %v4252_v50  ;;  %6261 = vmatpush3.bf16.msra.mxu1 %v6578_v30 }
 0x8b0   : > { %v6880_v0 = vpop.eup %6879  ;;  %v4275_v54 = vmul.f32 %v8970_v11, %v4253_v4 }
 0x8b1   : > { %v6882_v7 = vpop.eup %6881  ;;  %v4254_v43 = vmul.f32 %v6880_v0, %v8875_v47  ;;  %v4296_v19 = vadd.f32 %v8980_v18, %v4274_v42 }
 0x8b2   : > { %v4255_v51 = vmul.f32 %v6882_v7, %v8882_v32  ;;  %v4297_v62 = vadd.f32 %v8980_v18, %v4275_v54 }
 0x8b3   : > { %v4276_v26 = vmul.f32 %v8970_v11, %v4254_v43  ;;  %v4311_v52 = vpack.c.bf16 %v4296_v19, %v4295_v33  ;;  %v6581_v33 = vld [vmem:[%s7570_s12 + $0x20] sm:$0xff]  }
 0x8b4   : > { %v6884_v12 = vpop.eup %6883  ;;  %v4277_v47 = vmul.f32 %v8970_v11, %v4255_v51 }
 0x8b5   : > { %v6886_v34 = vpop.eup %6885  ;;  %6168 = vmatprep.mubr.bf16.mxu0 %v4311_v52  ;;  %v4298_v37 = vadd.f32 %v8980_v18, %v4276_v26  ;;  %v4256_v1 = vmul.f32 %v6884_v12, %v8889_v25  ;;  %v6582_v26 = vld [vmem:[%s7570_s12 + $0x28] sm:$0xff]  }
 0x8b6   : > { %v4257_v20 = vmul.f32 %v6886_v34, %v8892_v22  ;;  %v4299_v24 = vadd.f32 %v8980_v18, %v4277_v47  ;;  %v6583_v34 = vld [vmem:[%s7570_s12 + $0x30] sm:$0xff]  }
 0x8b7   : > { %v4312_v58 = vpack.c.bf16 %v4298_v37, %v4297_v62  ;;  %v4278_v32 = vmul.f32 %v8970_v11, %v4256_v1 }
 0x8b8   : > { %v6888_v36 = vpop.eup %6887  ;;  %v4279_v25 = vmul.f32 %v8970_v11, %v4257_v20  ;;  %v6584_v20 = vld [vmem:[%s7570_s12 + $0x38] sm:$0xff]  }
 0x8b9   : > { %6169 = vmatmul.mubr.bf16.vlgmr.msra.gmra.mrb[128].mxu0 %v4312_v58  ;;  %v4300_v8 = vadd.f32 %v8980_v18, %v4278_v32  ;;  %v4258_v5 = vmul.f32 %v6888_v36, %v8898_v53  ;;  %v6579_v53 = vld [vmem:[%s7570_s12 + $0x10] sm:$0xff]  }
 0x8ba   : > { %6185 = vmatpush3.bf16.msra.mxu0 %v8943_v59  ;;  %v4301_v6 = vadd.f32 %v8980_v18, %v4279_v25  ;;  %6254 = vmatprep.subr.bf16.mxu1 %v6579_v53 }
 0x8bb   : > { %v4313_v57 = vpack.c.bf16 %v4300_v8, %v4299_v24  ;;  %v4280_v22 = vmul.f32 %v8970_v11, %v4258_v5  ;;  %6186 = vmatprep.subr.bf16.mxu0 %v6578_v30  ;;  %6262 = vmatpush3.bf16.msra.mxu1 %v6579_v53 }
 0x8bc   : > { %6255 = vmatprep.subr.bf16.mxu1 %v6580_v60 }
 0x8bd   : > { %6172 = vmatprep.mubr.bf16.mxu0 %v4313_v57  ;;  %v4302_v15 = vadd.f32 %v8980_v18, %v4280_v22 }
 0x8be   : > { %6187 = vmatpush3.bf16.msra.mxu0 %v6578_v30 }
 0x8bf   : > { %v4314_v61 = vpack.c.bf16 %v4302_v15, %v4301_v6  ;;  %6188 = vmatprep.subr.bf16.mxu0 %v6579_v53  ;;  %6263 = vmatpush3.bf16.msra.mxu1 %v6580_v60 }
 0x8c0   : > { %6256 = vmatprep.subr.bf16.mxu1 %v6581_v33 }
 0x8c1   : > { %6173 = vmatmul.mubr.bf16.gmra.mrb[132].mxu0 %v4314_v61 }
 0x8c2   : > { %6189 = vmatpush3.bf16.msra.mxu0 %v6579_v53 }
 0x8c3   : > { %6190 = vmatprep.subr.bf16.mxu0 %v6580_v60  ;;  %6264 = vmatpush3.bf16.msra.mxu1 %v6581_v33 }
 0x8c4   : > { %6257 = vmatprep.subr.bf16.mxu1 %v6582_v26 }
 0x8c6   : > { %6191 = vmatpush3.bf16.msra.mxu0 %v6580_v60 }
 0x8c7   : > { %6192 = vmatprep.subr.bf16.mxu0 %v6581_v33  ;;  %6265 = vmatpush3.bf16.msra.mxu1 %v6582_v26 }
 0x8c8   : > { %6258 = vmatprep.subr.bf16.mxu1 %v6583_v34 }
 0x8ca   : > { %6193 = vmatpush3.bf16.msra.mxu0 %v6581_v33 }
 0x8cb   : > { %6194 = vmatprep.subr.bf16.mxu0 %v6582_v26  ;;  %6266 = vmatpush3.bf16.msra.mxu1 %v6583_v34 }
 0x8cc   : > { %6259 = vmatprep.subr.bf16.mxu1 %v6584_v20 }
 0x8ce   : > { %6195 = vmatpush3.bf16.msra.mxu0 %v6582_v26 }
 0x8cf   : > { %6196 = vmatprep.subr.bf16.mxu0 %v6583_v34  ;;  %6267 = vmatpush3.bf16.msra.mxu1 %v6584_v20 }
 0x8d2   : > { %6197 = vmatpush3.bf16.msra.mxu0 %v6583_v34 }
 0x8d3   : > { %6198 = vmatprep.subr.bf16.mxu0 %v6584_v20 }
 0x8d6   : > { %6199 = vmatpush3.bf16.msra.mxu0 %v6584_v20 }
 0x90b   : > { %v4188_v59 = vpop.xlane.xlu0 %4187 }
 0x90c   : > { %v4211_v35 = vmul.f32 0.03125, %v4188_v59 }
 0x90e   : > { %v4227_v50 = vadd.f32 1e-05, %v4211_v35 }
 0x90f   : > { %v4190_v45 = vpop.xlane.xlu1 %4189 }
 0x910   : > { %6889 = vrsqrt.f32 %v4227_v50  ;;  %v4212_v4 = vmul.f32 0.03125, %v4190_v45 }
 0x912   : > { %v4228_v42 = vadd.f32 1e-05, %v4212_v4 }
 0x913   : > { %v4194_v0 = vpop.xlane.xlu1 %4193  ;;  %v4192_v7 = vpop.xlane.xlu0 %4191 }
 0x914   : > { %6891 = vrsqrt.f32 %v4228_v42  ;;  %v4214_v54 = vmul.f32 0.03125, %v4194_v0  ;;  %v4213_v43 = vmul.f32 0.03125, %v4192_v7 }
 0x916   : > { %v4230_v19 = vadd.f32 1e-05, %v4214_v54  ;;  %v4229_v51 = vadd.f32 1e-05, %v4213_v43 }
 0x918   : > { %6893 = vrsqrt.f32 %v4230_v19 }
 0x919   : > { %6895 = vrsqrt.f32 %v4229_v51 }
 0x91a   : > { %v6890_v52 = vpop.eup %6889 }
 0x91b   : > { %v4259_v12 = vmul.f32 %v6890_v52, %v8912_v46 }
 0x91d   : > { %v4281_v1 = vmul.f32 %v8970_v11, %v4259_v12 }
 0x91e   : > { %v6892_v62 = vpop.eup %6891 }
 0x91f   : > { %v4260_v37 = vmul.f32 %v6892_v62, %v8919_v56  ;;  %v4303_v46 = vadd.f32 %v8980_v18, %v4281_v1 }
 0x921   : > { %v4282_v47 = vmul.f32 %v8970_v11, %v4260_v37 }
 0x922   : > { %v6894_v58 = vpop.eup %6893 }
 0x923   : > { %v6896_v32 = vpop.eup %6895  ;;  %v4304_v36 = vadd.f32 %v8980_v18, %v4282_v47  ;;  %v4262_v24 = vmul.f32 %v6894_v58, %v8922_v28  ;;  %v9039_v47 = vld [vmem:[%s860_s20] ss:$0 sm:$0xff] }
 0x924   : > { %v4261_v56 = vmul.f32 %v6896_v32, %v8928_v23 }
 0x925   : > { %v4315_v8 = vpack.c.bf16 %v4304_v36, %v4303_v46  ;;  %v4284_v5 = vmul.f32 %v8970_v11, %v4262_v24 }
 0x926   : > { %v4283_v25 = vmul.f32 %v8970_v11, %v4261_v56 }
 0x927   : > { %6176 = vmatprep.mubr.bf16.mxu0 %v4315_v8  ;;  %v4196_v57 = vpop.xlane.xlu0 %4195  ;;  %v4306_v22 = vadd.f32 %v8980_v18, %v4284_v5 }
 0x928   : > { %v4215_v6 = vmul.f32 0.03125, %v4196_v57  ;;  %v4305_v15 = vadd.f32 %v8980_v18, %v4283_v25 }
 0x92a   : > { %v4231_v61 = vadd.f32 1e-05, %v4215_v6  ;;  %v4316_v28 = vpack.c.bf16 %v4306_v22, %v4305_v15 }
 0x92b   : > { %v4198_v30 = vpop.xlane.xlu1 %4197  ;;  %v4200_v53 = vpop.xlane.xlu0 %4199 }
 0x92c   : > { %6897 = vrsqrt.f32 %v4231_v61  ;;  %v4216_v23 = vmul.f32 0.03125, %v4198_v30  ;;  %6177 = vmatmul.mubr.bf16.gmra.mrb[136].mxu0 %v4316_v28  ;;  %v4217_v60 = vmul.f32 0.03125, %v4200_v53 }
 0x92e   : > { %v4232_v59 = vadd.f32 1e-05, %v4216_v23  ;;  %v4233_v35 = vadd.f32 1e-05, %v4217_v60 }
 0x92f   : > { %v4202_v50 = vpop.xlane.xlu1 %4201 }
 0x930   : > { %6899 = vrsqrt.f32 %v4232_v59  ;;  %v4218_v45 = vmul.f32 0.03125, %v4202_v50 }
 0x931   : > { %6901 = vrsqrt.f32 %v4233_v35 }
 0x932   : > { %v4234_v4 = vadd.f32 1e-05, %v4218_v45 }
 0x934   : > { %6903 = vrsqrt.f32 %v4234_v4 }
 0x936   : > { %v6898_v42 = vpop.eup %6897 }
 0x937   : > { %v4263_v0 = vmul.f32 %v6898_v42, %v8936_v55 }
 0x939   : > { %v4285_v33 = vmul.f32 %v8970_v11, %v4263_v0 }
 0x93a   : > { %v6900_v7 = vpop.eup %6899 }
 0x93b   : > { %v6902_v54 = vpop.eup %6901  ;;  %v4264_v43 = vmul.f32 %v6900_v7, %v8946_v49  ;;  %v4307_v52 = vadd.f32 %v8980_v18, %v4285_v33 }
 0x93c   : > { %v4265_v19 = vmul.f32 %v6902_v54, %v8949_v31 }
 0x93d   : > { %v4286_v51 = vmul.f32 %v8970_v11, %v4264_v43 }
 0x93e   : > { %v6904_v26 = vpop.eup %6903  ;;  %v4287_v55 = vmul.f32 %v8970_v11, %v4265_v19 }
 0x93f   : > { %v4308_v12 = vadd.f32 %v8980_v18, %v4286_v51  ;;  %v4266_v34 = vmul.f32 %v6904_v26, %v8960_v14 }
 0x940   : > { %v4309_v49 = vadd.f32 %v8980_v18, %v4287_v55 }
 0x941   : > { %v4317_v62 = vpack.c.bf16 %v4308_v12, %v4307_v52  ;;  %v4288_v37 = vmul.f32 %v8970_v11, %v4266_v34 }
 0x943   : > { %6180 = vmatprep.mubr.bf16.mxu0 %v4317_v62  ;;  %v4310_v1 = vadd.f32 %v8980_v18, %v4288_v37 }
 0x945   : > { %v4318_v31 = vpack.c.bf16 %v4310_v1, %v4309_v49 }
 0x947   : > { %6181 = vmatmul.mubr.bf16.gmra.mrb[140].mxu0 %v4318_v31 }
 0x98c   : > { %v6170_v20 = vpop.f32.mrb[128].mxu0 }
 0x98d   : > { %v4433_v14 = vadd.f32 %v6170_v20, %v9039_v47  ;;  %v4424_v58 = vpop.f32.mrb[129].mxu0 }
 0x98e   : > { %v4425_v32 = vadd.f32 %v9039_v47, %v4424_v58  ;;  %v6171_v11 = vpop.f32.mrb[130].mxu0 }
 0x98f   : > { %v4505_v46 = vmul.f32 0.70710677, %v4433_v14  ;;  %v4436_v36 = vadd.f32 %v6171_v11, %v9039_v47  ;;  %v4427_v24 = vpop.f32.mrb[131].mxu0  ;;  %v4489_v7 = vmul.f32 0.5, %v4433_v14 }
 0x990   : > { %v4503_v18 = vmul.f32 0.70710677, %v4425_v32  ;;  %v4428_v56 = vadd.f32 %v9039_v47, %v4427_v24  ;;  %v4487_v33 = vmul.f32 0.5, %v4425_v32 }
 0x991   : > { %6905 = verf.f32 %v4505_v46  ;;  %v4506_v8 = vmul.f32 0.70710677, %v4436_v36  ;;  %v4490_v54 = vmul.f32 0.5, %v4436_v36 }
 0x992   : > { %6907 = verf.f32 %v4503_v18  ;;  %v4504_v5 = vmul.f32 0.70710677, %v4428_v56  ;;  %v4488_v19 = vmul.f32 0.5, %v4428_v56 }
 0x993   : > { %6909 = verf.f32 %v4506_v8 }
 0x994   : > { %6911 = verf.f32 %v4504_v5  ;;  %v6174_v25 = vpop.f32.mrb[132].mxu0 }
 0x995   : > { %v4449_v57 = vadd.f32 %v6174_v25, %v9039_v47  ;;  %v4440_v22 = vpop.f32.mrb[133].mxu0 }
 0x996   : > { %v4441_v6 = vadd.f32 %v9039_v47, %v4440_v22  ;;  %v6175_v15 = vpop.f32.mrb[134].mxu0 }
 0x997   : > { %v4509_v61 = vmul.f32 0.70710677, %v4449_v57  ;;  %v4452_v28 = vadd.f32 %v6175_v15, %v9039_v47  ;;  %v4443_v30 = vpop.f32.mrb[135].mxu0  ;;  %v4493_v11 = vmul.f32 0.5, %v4449_v57 }
 0x998   : > { %v4507_v53 = vmul.f32 0.70710677, %v4441_v6  ;;  %v4444_v23 = vadd.f32 %v9039_v47, %v4443_v30  ;;  %v4491_v32 = vmul.f32 0.5, %v4441_v6 }
 0x999   : > { %6913 = verf.f32 %v4509_v61  ;;  %v4510_v60 = vmul.f32 0.70710677, %v4452_v28  ;;  %v4494_v14 = vmul.f32 0.5, %v4452_v28 }
 0x99a   : > { %6915 = verf.f32 %v4507_v53  ;;  %v4508_v59 = vmul.f32 0.70710677, %v4444_v23  ;;  %v4492_v36 = vmul.f32 0.5, %v4444_v23 }
 0x99b   : > { %v6906_v35 = vpop.eup %6905  ;;  %6917 = verf.f32 %v4510_v60 }
 0x99c   : > { %v6908_v50 = vpop.eup %6907  ;;  %v4537_v45 = vadd.f32 1.0, %v6906_v35  ;;  %6919 = verf.f32 %v4508_v59 }
 0x99d   : > { %v6910_v4 = vpop.eup %6909  ;;  %v4535_v42 = vadd.f32 1.0, %v6908_v50 }
 0x99e   : > { %v6912_v0 = vpop.eup %6911  ;;  %v4538_v43 = vadd.f32 1.0, %v6910_v4  ;;  %v4553_v26 = vmul.f32 %v4537_v45, %v4489_v7 }
 0x99f   : > { %v4536_v51 = vadd.f32 1.0, %v6912_v0  ;;  %v4551_v12 = vmul.f32 %v4535_v42, %v4487_v33 }
 0x9a0   : > { %v4554_v52 = vmul.f32 %v4538_v43, %v4490_v54 }
 0x9a1   : > { %v4552_v34 = vmul.f32 %v4536_v51, %v4488_v19 }
 0x9a2   : > { %v4568_v55 = vpack.c.bf16 %v4554_v52, %v4553_v26 }
 0x9a3   : > { %v6914_v62 = vpop.eup %6913  ;;  %v4567_v37 = vpack.c.bf16 %v4552_v34, %v4551_v12 }
 0x9a4   : > { %v6916_v49 = vpop.eup %6915  ;;  %v4541_v1 = vadd.f32 1.0, %v6914_v62 }
 0x9a5   : > { %v6918_v31 = vpop.eup %6917  ;;  %v4539_v20 = vadd.f32 1.0, %v6916_v49  ;;  %6200 = vmatprep.mubr.bf16.mxu0 %v4567_v37 }
 0x9a6   : > { %v6920_v58 = vpop.eup %6919  ;;  %v4542_v46 = vadd.f32 1.0, %v6918_v31  ;;  %6201 = vmatmul.mubr.bf16.vlgmr.msra.gmra.mrb[144].mxu0 %v4568_v55  ;;  %v4557_v18 = vmul.f32 %v4541_v1, %v4493_v11 }
 0x9a7   : > { %v4540_v24 = vadd.f32 1.0, %v6920_v58  ;;  %v4555_v8 = vmul.f32 %v4539_v20, %v4491_v32 }
 0x9a8   : > { %v4558_v56 = vmul.f32 %v4542_v46, %v4494_v14 }
 0x9a9   : > { %v4556_v5 = vmul.f32 %v4540_v24, %v4492_v36 }
 0x9aa   : > { %v4570_v25 = vpack.c.bf16 %v4558_v56, %v4557_v18 }
 0x9ab   : > { %v4569_v22 = vpack.c.bf16 %v4556_v5, %v4555_v8 }
 0x9ad   : > { %6204 = vmatprep.mubr.bf16.mxu1 %v4569_v22 }
 0x9ae   : > { %6205 = vmatmul.mubr.bf16.vlgmr.msra.gmra.mrb[128].mxu1 %v4570_v25 }
 0x9ff   : > { %v6178_v15 = vpop.f32.mrb[136].mxu0 }
 0xa00   : > { %v4465_v61 = vadd.f32 %v6178_v15, %v9039_v47  ;;  %v4456_v30 = vpop.f32.mrb[137].mxu0 }
 0xa01   : > { %v4457_v57 = vadd.f32 %v9039_v47, %v4456_v30  ;;  %v6179_v28 = vpop.f32.mrb[138].mxu0 }
 0xa02   : > { %v4513_v53 = vmul.f32 0.70710677, %v4465_v61  ;;  %v4468_v6 = vadd.f32 %v6179_v28, %v9039_v47  ;;  %v4459_v23 = vpop.f32.mrb[139].mxu0  ;;  %v4497_v43 = vmul.f32 0.5, %v4465_v61 }
 0xa03   : > { %v4511_v60 = vmul.f32 0.70710677, %v4457_v57  ;;  %v4460_v59 = vadd.f32 %v9039_v47, %v4459_v23  ;;  %v4495_v51 = vmul.f32 0.5, %v4457_v57 }
 0xa04   : > { %6921 = verf.f32 %v4513_v53  ;;  %v4514_v35 = vmul.f32 0.70710677, %v4468_v6  ;;  %v4498_v33 = vmul.f32 0.5, %v4468_v6 }
 0xa05   : > { %6923 = verf.f32 %v4511_v60  ;;  %v4512_v50 = vmul.f32 0.70710677, %v4460_v59  ;;  %v4496_v26 = vmul.f32 0.5, %v4460_v59 }
 0xa06   : > { %6925 = verf.f32 %v4514_v35 }
 0xa07   : > { %6927 = verf.f32 %v4512_v50 }
 0xa0e   : > { %v6922_v45 = vpop.eup %6921 }
 0xa0f   : > { %v6924_v4 = vpop.eup %6923  ;;  %v4545_v42 = vadd.f32 1.0, %v6922_v45 }
 0xa10   : > { %v6926_v0 = vpop.eup %6925  ;;  %v4543_v7 = vadd.f32 1.0, %v6924_v4  ;;  %v5623_v4 = vld [vmem:[%s863_s30] ss:$0 sm:$0xff] }
 0xa11   : > { %v6928_v54 = vpop.eup %6927  ;;  %v4546_v19 = vadd.f32 1.0, %v6926_v0  ;;  %v4561_v12 = vmul.f32 %v4545_v42, %v4497_v43 }
 0xa12   : > { %v4544_v52 = vadd.f32 1.0, %v6928_v54  ;;  %v4559_v55 = vmul.f32 %v4543_v7, %v4495_v51 }
 0xa13   : > { %v4562_v34 = vmul.f32 %v4546_v19, %v4498_v33 }
 0xa14   : > { %v4560_v62 = vmul.f32 %v4544_v52, %v4496_v26 }
 0xa15   : > { %v4572_v37 = vpack.c.bf16 %v4562_v34, %v4561_v12 }
 0xa16   : > { %v4571_v49 = vpack.c.bf16 %v4560_v62, %v4559_v55 }
 0xa18   : > { %6208 = vmatprep.mubr.bf16.mxu1 %v4571_v49 }
 0xa19   : > { %6209 = vmatmul.mubr.bf16.gmra.mrb[132].mxu1 %v4572_v37 }
 0xa1a   : > { %v6182_v1 = vpop.f32.mrb[140].mxu0 }
 0xa1b   : > { %v4481_v31 = vadd.f32 %v6182_v1, %v9039_v47  ;;  %v4472_v20 = vpop.f32.mrb[141].mxu0 }
 0xa1c   : > { %v4473_v58 = vadd.f32 %v9039_v47, %v4472_v20  ;;  %v6183_v11 = vpop.f32.mrb[142].mxu0 }
 0xa1d   : > { %v4517_v14 = vmul.f32 0.70710677, %v4481_v31  ;;  %v4484_v46 = vadd.f32 %v6183_v11, %v9039_v47  ;;  %v4475_v32 = vpop.f32.mrb[143].mxu0  ;;  %v4501_v30 = vmul.f32 0.5, %v4481_v31 }
 0xa1e   : > { %v4515_v36 = vmul.f32 0.70710677, %v4473_v58  ;;  %v4476_v24 = vadd.f32 %v9039_v47, %v4475_v32  ;;  %v4499_v53 = vmul.f32 0.5, %v4473_v58 }
 0xa1f   : > { %6929 = verf.f32 %v4517_v14  ;;  %v4518_v18 = vmul.f32 0.70710677, %v4484_v46  ;;  %v4502_v57 = vmul.f32 0.5, %v4484_v46 }
 0xa20   : > { %6931 = verf.f32 %v4515_v36  ;;  %v4516_v56 = vmul.f32 0.70710677, %v4476_v24  ;;  %v4500_v6 = vmul.f32 0.5, %v4476_v24 }
 0xa21   : > { %6933 = verf.f32 %v4518_v18 }
 0xa22   : > { %6935 = verf.f32 %v4516_v56 }
 0xa29   : > { %v6930_v8 = vpop.eup %6929 }
 0xa2a   : > { %v6932_v5 = vpop.eup %6931  ;;  %v4549_v25 = vadd.f32 1.0, %v6930_v8 }
 0xa2b   : > { %v6934_v22 = vpop.eup %6933  ;;  %v4547_v15 = vadd.f32 1.0, %v6932_v5 }
 0xa2c   : > { %v6936_v61 = vpop.eup %6935  ;;  %v4550_v28 = vadd.f32 1.0, %v6934_v22  ;;  %v4565_v47 = vmul.f32 %v4549_v25, %v4501_v30 }
 0xa2d   : > { %v4548_v23 = vadd.f32 1.0, %v6936_v61  ;;  %v4563_v59 = vmul.f32 %v4547_v15, %v4499_v53 }
 0xa2e   : > { %v4566_v60 = vmul.f32 %v4550_v28, %v4502_v57 }
 0xa2f   : > { %v4564_v35 = vmul.f32 %v4548_v23, %v4500_v6 }
 0xa30   : > { %v4574_v50 = vpack.c.bf16 %v4566_v60, %v4565_v47 }
 0xa31   : > { %v4573_v45 = vpack.c.bf16 %v4564_v35, %v4563_v59 }
 0xa33   : > { %6212 = vmatprep.mubr.bf16.mxu1 %v4573_v45 }
 0xa34   : > { %6213 = vmatmul.mubr.bf16.gmra.mrb[136].mxu1 %v4574_v50 }
 0xa79   : > { %v6202_v42 = vpop.f32.mrb[144].mxu0 }
 0xa7a   : > { %v4689_v0 = vadd.f32 %v6202_v42, %v5623_v4  ;;  %v4680_v7 = vpop.f32.mrb[145].mxu0 }
 0xa7b   : > { %v4681_v54 = vadd.f32 %v5623_v4, %v4680_v7  ;;  %v6203_v43 = vpop.f32.mrb[146].mxu0 }
 0xa7c   : > { %v9063_v33 = vadd.f32 %v4689_v0, %v8661_v38  ;;  %v4692_v19 = vadd.f32 %v6203_v43, %v5623_v4  ;;  %v4683_v51 = vpop.f32.mrb[147].mxu0 }
 0xa7d   : > { %v9066_v26 = vadd.f32 %v4681_v54, %v8490_v44  ;;  %v4684_v52 = vadd.f32 %v5623_v4, %v4683_v51 }
 0xa7e   : > { %4761 = vst [vmem:[#allocation2 + $0x10] sm:$0xff] %v9063_v33  ;;  %v9070_v12 = vadd.f32 %v4692_v19, %v8671_v39 }
 0xa7f   : > { %4759 = vst [vmem:[#allocation2] sm:$0xff] %v9066_v26  ;;  %v9074_v34 = vadd.f32 %v4684_v52, %v8510_v2 }
 0xa80   : > { %4762 = vst [vmem:[#allocation2 + $0x18] sm:$0xff] %v9070_v12 }
 0xa81   : > { %4760 = vst [vmem:[#allocation2 + $0x8] sm:$0xff] %v9074_v34  ;;  %v6206_v38 = vpop.f32.mrb[128].mxu1 }
 0xa82   : > { %v4705_v55 = vadd.f32 %v6206_v38, %v5623_v4  ;;  %v4696_v62 = vpop.f32.mrb[129].mxu1 }
 0xa83   : > { %v4697_v44 = vadd.f32 %v5623_v4, %v4696_v62  ;;  %v6207_v37 = vpop.f32.mrb[130].mxu1 }
 0xa84   : > { %v9079_v49 = vadd.f32 %v4705_v55, %v8781_v17  ;;  %v4708_v1 = vadd.f32 %v6207_v37, %v5623_v4  ;;  %v4699_v39 = vpop.f32.mrb[131].mxu1 }
 0xa85   : > { %v9082_v31 = vadd.f32 %v4697_v44, %v8773_v41  ;;  %v4700_v20 = vadd.f32 %v5623_v4, %v4699_v39 }
 0xa86   : > { %4765 = vst [vmem:[#allocation2 + $0x30] sm:$0xff] %v9079_v49  ;;  %v9086_v2 = vadd.f32 %v4708_v1, %v8785_v13  ;;  %v4787_v6 = vmul.f32 (!%p5632_p11), %v7599_v3, %v9079_v49 }
 0xa87   : > { %4763 = vst [vmem:[#allocation2 + $0x20] sm:$0xff] %v9082_v31  ;;  %v9090_v58 = vadd.f32 %v4700_v20, %v8777_v63  ;;  %v4785_v28 = vmul.f32 (!%p5632_p11), %v7599_v3, %v9082_v31 }
 0xa88   : > { %4766 = vst [vmem:[#allocation2 + $0x38] sm:$0xff] %v9086_v2  ;;  %v4788_v23 = vmul.f32 (!%p5632_p11), %v7599_v3, %v9086_v2 }
 0xa89   : > { %4764 = vst [vmem:[#allocation2 + $0x28] sm:$0xff] %v9090_v58  ;;  %v4786_v53 = vmul.f32 (!%p5632_p11), %v7599_v3, %v9090_v58 }
 0xaec   : > { %v6210_v17 = vpop.f32.mrb[132].mxu1 }
 0xaed   : > { %v4721_v11 = vadd.f32 %v6210_v17, %v5623_v4  ;;  %v4712_v14 = vpop.f32.mrb[133].mxu1 }
 0xaee   : > { %v4713_v41 = vadd.f32 %v5623_v4, %v4712_v14  ;;  %v6211_v46 = vpop.f32.mrb[134].mxu1 }
 0xaef   : > { %v9095_v32 = vadd.f32 %v4721_v11, %v8833_v40  ;;  %v4724_v36 = vadd.f32 %v6211_v46, %v5623_v4  ;;  %v4715_v13 = vpop.f32.mrb[135].mxu1 }
 0xaf0   : > { %v9098_v24 = vadd.f32 %v4713_v41, %v8826_v48  ;;  %v4716_v18 = vadd.f32 %v5623_v4, %v4715_v13 }
 0xaf1   : > { %4769 = vst [vmem:[#allocation2 + $0x50] sm:$0xff] %v9095_v32  ;;  %v9102_v63 = vadd.f32 %v4724_v36, %v8771_v21  ;;  %v4791_v59 = vmul.f32 (!%p5632_p11), %v7599_v3, %v9095_v32 }
 0xaf2   : > { %4767 = vst [vmem:[#allocation2 + $0x40] sm:$0xff] %v9098_v24  ;;  %v9106_v56 = vadd.f32 %v4716_v18, %v8828_v9  ;;  %v4789_v47 = vmul.f32 (!%p5632_p11), %v7599_v3, %v9098_v24 }
 0xaf3   : > { %4770 = vst [vmem:[#allocation2 + $0x58] sm:$0xff] %v9102_v63  ;;  %v4792_v35 = vmul.f32 (!%p5632_p11), %v7599_v3, %v9102_v63 }
 0xaf4   : > { %4768 = vst [vmem:[#allocation2 + $0x48] sm:$0xff] %v9106_v56  ;;  %v4790_v60 = vmul.f32 (!%p5632_p11), %v7599_v3, %v9106_v56 }
 0xb07   : > { %v6214_v40 = vpop.f32.mrb[136].mxu1 }
 0xb08   : > { %v4737_v8 = vadd.f32 %v6214_v40, %v5623_v4  ;;  %v4728_v5 = vpop.f32.mrb[137].mxu1 }
 0xb09   : > { %v4729_v48 = vadd.f32 %v5623_v4, %v4728_v5  ;;  %v6215_v25 = vpop.f32.mrb[138].mxu1  ;;  %4778 = sbr.rel (%p5632_p11) target bundleno = 3411 (0xd53), region = 124 }
 0xb0a   : > { %v9111_v22 = vadd.f32 %v4737_v8, %v8840_v10  ;;  %v4740_v15 = vadd.f32 %v6215_v25, %v5623_v4  ;;  %v4731_v21 = vpop.f32.mrb[139].mxu1  ;;  %v4781_v10 = vmul.f32 (!%p5632_p11), %v7599_v3, %v9066_v26 }
 0xb0b   : > { %v9114_v61 = vadd.f32 %v4729_v48, %v8842_v16  ;;  %v4732_v30 = vadd.f32 %v5623_v4, %v4731_v21  ;;  %v4783_v16 = vmul.f32 (!%p5632_p11), %v7599_v3, %v9063_v33 }
 0xb0c   : > { %4773 = vst [vmem:[#allocation2 + $0x70] sm:$0xff] %v9111_v22  ;;  %v9118_v9 = vadd.f32 %v4740_v15, %v8848_v27  ;;  %4797 = vadd.xlane.f32.xlu0 (!%p5632_p11), %v4781_v10  ;;  %v4782_v27 = vmul.f32 (!%p5632_p11), %v7599_v3, %v9074_v34  ;;  %v4795_v4 = vmul.f32 (!%p5632_p11), %v7599_v3, %v9111_v22 }
 0xb0d   : > { %4771 = vst [vmem:[#allocation2 + $0x60] sm:$0xff] %v9114_v61  ;;  %v9122_v57 = vadd.f32 %v4732_v30, %v8850_v29  ;;  %4801 = vadd.xlane.f32.xlu1 (!%p5632_p11), %v4783_v16  ;;  %v4784_v29 = vmul.f32 (!%p5632_p11), %v7599_v3, %v9070_v12  ;;  %v4793_v50 = vmul.f32 (!%p5632_p11), %v7599_v3, %v9114_v61 }
 0xb0e   : > { %4774 = vst [vmem:[#allocation2 + $0x78] sm:$0xff] %v9118_v9  ;;  %v4796_v42 = vmul.f32 (!%p5632_p11), %v7599_v3, %v9118_v9 }
 0xb0f   : > { %4772 = vst [vmem:[#allocation2 + $0x68] sm:$0xff] %v9122_v57  ;;  %v4794_v45 = vmul.f32 (!%p5632_p11), %v7599_v3, %v9122_v57 }
 0xb10   : > { %4799 = vadd.xlane.f32.xlu0 %v4782_v27 }
 0xb11   : > { %4803 = vadd.xlane.f32.xlu1 %v4784_v29 }
 0xb14   : > { %4805 = vadd.xlane.f32.xlu0 %v4785_v28 }
 0xb15   : > { %4807 = vadd.xlane.f32.xlu1 %v4786_v53 }
 0xb18   : > { %4809 = vadd.xlane.f32.xlu0 %v4787_v6 }
 0xb19   : > { %4811 = vadd.xlane.f32.xlu1 %v4788_v23 }
 0xb1c   : > { %4813 = vadd.xlane.f32.xlu0 %v4789_v47 }
 0xb1d   : > { %4815 = vadd.xlane.f32.xlu1 %v4790_v60 }
 0xb20   : > { %4817 = vadd.xlane.f32.xlu0 %v4791_v59 }
 0xb21   : > { %4819 = vadd.xlane.f32.xlu1 %v4792_v35 }
 0xb24   : > { %4821 = vadd.xlane.f32.xlu0 %v4793_v50 }
 0xb25   : > { %4823 = vadd.xlane.f32.xlu1 %v4794_v45 }
 0xb28   : > { %4825 = vadd.xlane.f32.xlu0 %v4795_v4 }
 0xb29   : > { %4827 = vadd.xlane.f32.xlu1 %v4796_v42 }
 0xb99   : > { %v4798_v0 = vpop.xlane.xlu0 %4797 }
 0xb9a   : > { %v4802_v7 = vpop.xlane.xlu1 %4801  ;;  %v4829_v54 = vmul.f32 0.03125, %v4798_v0 }
 0xb9b   : > { %v4831_v43 = vmul.f32 0.03125, %v4802_v7 }
 0xb9c   : > { %v4845_v19 = vsub.f32 %v9066_v26, %v4829_v54 }
 0xb9d   : > { %v4847_v51 = vsub.f32 %v9063_v33, %v4831_v43  ;;  %v4800_v52 = vpop.xlane.xlu0 %4799 }
 0xb9e   : > { %v4804_v38 = vpop.xlane.xlu1 %4803  ;;  %v9162_v55 = vmul.f32 %v7599_v3, %v4845_v19  ;;  %v4830_v44 = vmul.f32 0.03125, %v4800_v52 }
 0xb9f   : > { %v9165_v62 = vmul.f32 %v7599_v3, %v4847_v51  ;;  %v4832_v37 = vmul.f32 0.03125, %v4804_v38 }
 0xba0   : > { %v4846_v1 = vsub.f32 %v9074_v34, %v4830_v44  ;;  %v4877_v20 = vmul.f32 %v9162_v55, %v9162_v55 }
 0xba1   : > { %v4848_v39 = vsub.f32 %v9070_v12, %v4832_v37  ;;  %v4806_v26 = vpop.xlane.xlu0 %4805  ;;  %v4879_v33 = vmul.f32 %v9165_v62, %v9165_v62 }
 0xba2   : > { %v4808_v17 = vpop.xlane.xlu1 %4807  ;;  %v9174_v11 = vmul.f32 %v7599_v3, %v4846_v1  ;;  %v4833_v41 = vmul.f32 0.03125, %v4806_v26  ;;  %4893 = vadd.xlane.f32.xlu0 %v4877_v20 }
 0xba3   : > { %v9177_v14 = vmul.f32 %v7599_v3, %v4848_v39  ;;  %v4834_v46 = vmul.f32 0.03125, %v4808_v17 }
 0xba4   : > { %v4849_v34 = vsub.f32 %v9082_v31, %v4833_v41  ;;  %v4878_v36 = vmul.f32 %v9174_v11, %v9174_v11 }
 0xba5   : > { %v4850_v12 = vsub.f32 %v9090_v58, %v4834_v46  ;;  %v4810_v13 = vpop.xlane.xlu0 %4809  ;;  %v4880_v40 = vmul.f32 %v9177_v14, %v9177_v14 }
 0xba6   : > { %v4812_v18 = vpop.xlane.xlu1 %4811  ;;  %v9186_v8 = vmul.f32 %v7599_v3, %v4849_v34  ;;  %v4835_v48 = vmul.f32 0.03125, %v4810_v13  ;;  %4897 = vadd.xlane.f32.xlu0 %v4879_v33  ;;  %4895 = vadd.xlane.f32.xlu1 %v4878_v36  ;;  %v7240_v34 = vmov 0.0   ;;  %v6959_v36 = vld [vmem:[#allocation11 + $0x18] sm:$0xff]   ;;  %v6960_v13 = vld [vmem:[#allocation11 + $0x20] sm:$0xff]  }
 0xba7   : > { %v9189_v5 = vmul.f32 %v7599_v3, %v4850_v12  ;;  %v4836_v31 = vmul.f32 0.03125, %v4812_v18  ;;  %6216 = vmatprep.subr.bf16.mxu0 %v7240_v34  ;;  %v6958_v12 = vld [vmem:[#allocation11 + $0x10] sm:$0xff]   ;;  %6232 = vmatprep.mubr.msk.bf16.mxu0 %vm7241_vm2, %v7240_v34  ;;  %v6961_v18 = vld [vmem:[#allocation11 + $0x28] sm:$0xff]  }
 0xba8   : > { %v4851_v58 = vsub.f32 %v9079_v49, %v4835_v48  ;;  %v4881_v15 = vmul.f32 %v9186_v8, %v9186_v8  ;;  %v6963_v48 = vld [vmem:[#allocation11 + $0x38] sm:$0xff]  }
 0xba9   : > { %v4852_v25 = vsub.f32 %v9086_v2, %v4836_v31  ;;  %v4814_v21 = vpop.xlane.xlu0 %4813  ;;  %v4882_v10 = vmul.f32 %v9189_v5, %v9189_v5 }
 0xbaa   : > { %v4816_v30 = vpop.xlane.xlu1 %4815  ;;  %v9198_v16 = vmul.f32 %v7599_v3, %v4851_v58  ;;  %v4837_v29 = vmul.f32 0.03125, %v4814_v21  ;;  %4899 = vadd.xlane.f32.xlu1 %v4880_v40  ;;  %4901 = vadd.xlane.f32.xlu0 %v4881_v15  ;;  %v6962_v40 = vld [vmem:[#allocation11 + $0x30] sm:$0xff]  }
 0xbab   : > { %v9201_v27 = vmul.f32 %v7599_v3, %v4852_v25  ;;  %v4838_v49 = vmul.f32 0.03125, %v4816_v30 }
 0xbac   : > { %v4853_v2 = vsub.f32 %v9098_v24, %v4837_v29  ;;  %v4883_v53 = vmul.f32 %v9198_v16, %v9198_v16 }
 0xbad   : > { %v4854_v28 = vsub.f32 %v9106_v56, %v4838_v49  ;;  %v4818_v6 = vpop.xlane.xlu0 %4817  ;;  %v4884_v47 = vmul.f32 %v9201_v27, %v9201_v27 }
 0xbae   : > { %v4820_v23 = vpop.xlane.xlu1 %4819  ;;  %v9210_v60 = vmul.f32 %v7599_v3, %v4853_v2  ;;  %v4839_v35 = vmul.f32 0.03125, %v4818_v6  ;;  %4903 = vadd.xlane.f32.xlu1 %v4882_v10  ;;  %4905 = vadd.xlane.f32.xlu0 %v4883_v53 }
 0xbaf   : > { %v9213_v59 = vmul.f32 %v7599_v3, %v4854_v28  ;;  %v4840_v24 = vmul.f32 0.03125, %v4820_v23 }
 0xbb0   : > { %v4855_v56 = vsub.f32 %v9095_v32, %v4839_v35  ;;  %v4885_v45 = vmul.f32 %v9210_v60, %v9210_v60 }
 0xbb1   : > { %v4856_v50 = vsub.f32 %v9102_v63, %v4840_v24  ;;  %v4822_v4 = vpop.xlane.xlu0 %4821  ;;  %v4886_v0 = vmul.f32 %v9213_v59, %v9213_v59 }
 0xbb2   : > { %v4824_v42 = vpop.xlane.xlu1 %4823  ;;  %v9222_v7 = vmul.f32 %v7599_v3, %v4855_v56  ;;  %v4841_v43 = vmul.f32 0.03125, %v4822_v4  ;;  %4907 = vadd.xlane.f32.xlu1 %v4884_v47  ;;  %4909 = vadd.xlane.f32.xlu0 %v4885_v45 }
 0xbb3   : > { %v9225_v54 = vmul.f32 %v7599_v3, %v4856_v50  ;;  %v4842_v32 = vmul.f32 0.03125, %v4824_v42 }
 0xbb4   : > { %v4857_v63 = vsub.f32 %v9114_v61, %v4841_v43  ;;  %v4887_v51 = vmul.f32 %v9222_v7, %v9222_v7 }
 0xbb5   : > { %v4858_v19 = vsub.f32 %v9122_v57, %v4842_v32  ;;  %v4826_v52 = vpop.xlane.xlu0 %4825  ;;  %v4888_v44 = vmul.f32 %v9225_v54, %v9225_v54 }
 0xbb6   : > { %v4828_v38 = vpop.xlane.xlu1 %4827  ;;  %v9234_v37 = vmul.f32 %v7599_v3, %v4857_v63  ;;  %v4843_v39 = vmul.f32 0.03125, %v4826_v52  ;;  %4911 = vadd.xlane.f32.xlu1 %v4886_v0  ;;  %4913 = vadd.xlane.f32.xlu0 %v4887_v51 }
 0xbb7   : > { %v9237_v1 = vmul.f32 %v7599_v3, %v4858_v19  ;;  %v4844_v61 = vmul.f32 0.03125, %v4828_v38 }
 0xbb8   : > { %v4859_v57 = vsub.f32 %v9111_v22, %v4843_v39  ;;  %v4889_v26 = vmul.f32 %v9234_v37, %v9234_v37  ;;  %v9259_v39 = vld [vmem:[%s9451_s17] ss:$0 sm:$0xff] }
 0xbb9   : > { %v4860_v20 = vsub.f32 %v9118_v9, %v4844_v61  ;;  %v4890_v41 = vmul.f32 %v9237_v1, %v9237_v1  ;;  %v6956_v9 = vld [vmem:[#allocation11] sm:$0xff]  }
 0xbba   : > { %v9244_v17 = vmul.f32 %v7599_v3, %v4859_v57  ;;  %4915 = vadd.xlane.f32.xlu1 %v4888_v44  ;;  %4917 = vadd.xlane.f32.xlu0 %v4889_v26 }
 0xbbb   : > { %v9247_v33 = vmul.f32 %v7599_v3, %v4860_v20  ;;  %6217 = vmatpush3.bf16.msra.mxu0 %v6956_v9  ;;  %v6957_v3 = vld [vmem:[#allocation11 + $0x8] sm:$0xff]  }
 0xbbc   : > { %v4891_v46 = vmul.f32 %v9244_v17, %v9244_v17  ;;  %6218 = vmatprep.subr.bf16.mxu0 %v7240_v34 }
 0xbbd   : > { %v4892_v22 = vmul.f32 %v9247_v33, %v9247_v33 }
 0xbbe   : > { %4919 = vadd.xlane.f32.xlu1 %v4890_v41  ;;  %4921 = vadd.xlane.f32.xlu0 %v4891_v46 }
 0xbbf   : > { %6219 = vmatpush3.bf16.msra.mxu0 %v6957_v3 }
 0xbc0   : > { %6220 = vmatprep.subr.bf16.mxu0 %v7240_v34 }
 0xbc2   : > { %4923 = vadd.xlane.f32.xlu1 %v4892_v22 }
 0xbc3   : > { %6221 = vmatpush3.bf16.msra.mxu0 %v6958_v12 }
 0xbc4   : > { %6222 = vmatprep.subr.bf16.mxu0 %v7240_v34 }
 0xbc7   : > { %6223 = vmatpush3.bf16.msra.mxu0 %v6959_v36 }
 0xbc8   : > { %6224 = vmatprep.subr.bf16.mxu0 %v7240_v34 }
 0xbcb   : > { %6225 = vmatpush3.bf16.msra.mxu0 %v6960_v13 }
 0xbcc   : > { %6226 = vmatprep.subr.bf16.mxu0 %v7240_v34 }
 0xbcf   : > { %6227 = vmatpush3.bf16.msra.mxu0 %v6961_v18 }
 0xbd0   : > { %6228 = vmatprep.subr.bf16.mxu0 %v7240_v34 }
 0xbd3   : > { %6229 = vmatpush3.bf16.msra.mxu0 %v6962_v40 }
 0xbd4   : > { %6230 = vmatprep.subr.bf16.mxu0 %v7240_v34 }
 0xbd7   : > { %6231 = vmatpush3.bf16.msra.mxu0 %v6963_v48 }
 0xc2f   : > { %v4894_v31 = vpop.xlane.xlu0 %4893 }
 0xc30   : > { %v4925_v58 = vmul.f32 0.03125, %v4894_v31 }
 0xc32   : > { %v4941_v25 = vadd.f32 1e-05, %v4925_v58 }
 0xc33   : > { %v4896_v15 = vpop.xlane.xlu1 %4895  ;;  %v4898_v21 = vpop.xlane.xlu0 %4897 }
 0xc34   : > { %v4926_v30 = vmul.f32 0.03125, %v4896_v15  ;;  %v4927_v10 = vmul.f32 0.03125, %v4898_v21  ;;  %6964 = vrsqrt.f32 %v4941_v25 }
 0xc36   : > { %v4942_v29 = vadd.f32 1e-05, %v4926_v30  ;;  %v4943_v49 = vadd.f32 1e-05, %v4927_v10 }
 0xc37   : > { %v4900_v2 = vpop.xlane.xlu1 %4899  ;;  %v4902_v28 = vpop.xlane.xlu0 %4901 }
 0xc38   : > { %6966 = vrsqrt.f32 %v4942_v29  ;;  %v4928_v53 = vmul.f32 0.03125, %v4900_v2  ;;  %v4929_v6 = vmul.f32 0.03125, %v4902_v28 }
 0xc39   : > { %6968 = vrsqrt.f32 %v4943_v49 }
 0xc3a   : > { %v4944_v23 = vadd.f32 1e-05, %v4928_v53  ;;  %v4945_v47 = vadd.f32 1e-05, %v4929_v6 }
 0xc3b   : > { %v4904_v35 = vpop.xlane.xlu1 %4903  ;;  %v4906_v24 = vpop.xlane.xlu0 %4905 }
 0xc3c   : > { %6970 = vrsqrt.f32 %v4944_v23  ;;  %v4930_v56 = vmul.f32 0.03125, %v4904_v35  ;;  %v4931_v50 = vmul.f32 0.03125, %v4906_v24 }
 0xc3d   : > { %6972 = vrsqrt.f32 %v4945_v47 }
 0xc3e   : > { %v4946_v45 = vadd.f32 1e-05, %v4930_v56  ;;  %v4947_v4 = vadd.f32 1e-05, %v4931_v50  ;;  %v6965_v42 = vpop.eup %6964 }
 0xc3f   : > { %v4908_v0 = vpop.xlane.xlu1 %4907  ;;  %v4910_v43 = vpop.xlane.xlu0 %4909  ;;  %v4973_v51 = vmul.f32 %v6965_v42, %v9162_v55 }
 0xc40   : > { %6974 = vrsqrt.f32 %v4946_v45  ;;  %v4932_v32 = vmul.f32 0.03125, %v4908_v0  ;;  %v4933_v63 = vmul.f32 0.03125, %v4910_v43 }
 0xc41   : > { %6976 = vrsqrt.f32 %v4947_v4  ;;  %v4995_v9 = vmul.f32 %v9259_v39, %v4973_v51 }
 0xc42   : > { %v6967_v19 = vpop.eup %6966  ;;  %v4948_v52 = vadd.f32 1e-05, %v4932_v32  ;;  %v4949_v38 = vadd.f32 1e-05, %v4933_v63 }
 0xc43   : > { %v6969_v44 = vpop.eup %6968  ;;  %v4974_v61 = vmul.f32 %v6967_v19, %v9174_v11  ;;  %v4912_v57 = vpop.xlane.xlu1 %4911  ;;  %v9268_v11 = vld [vmem:[%s9452_s14] ss:$0 sm:$0xff] }
 0xc44   : > { %v4914_v20 = vpop.xlane.xlu0 %4913  ;;  %v4975_v26 = vmul.f32 %v6969_v44, %v9165_v62  ;;  %6978 = vrsqrt.f32 %v4948_v52  ;;  %v4934_v41 = vmul.f32 0.03125, %v4912_v57  ;;  %v5017_v21 = vadd.f32 %v9268_v11, %v4995_v9 }
 0xc45   : > { %v4935_v46 = vmul.f32 0.03125, %v4914_v20  ;;  %v4996_v22 = vmul.f32 %v9259_v39, %v4974_v61  ;;  %6980 = vrsqrt.f32 %v4949_v38 }
 0xc46   : > { %v6971_v55 = vpop.eup %6970  ;;  %v4950_v34 = vadd.f32 1e-05, %v4934_v41  ;;  %v4997_v36 = vmul.f32 %v9259_v39, %v4975_v26 }
 0xc47   : > { %v4951_v3 = vadd.f32 1e-05, %v4935_v46  ;;  %v6973_v12 = vpop.eup %6972  ;;  %v4976_v62 = vmul.f32 %v6971_v55, %v9177_v14  ;;  %v4916_v13 = vpop.xlane.xlu1 %4915  ;;  %v5018_v31 = vadd.f32 %v9268_v11, %v4996_v22 }
 0xc48   : > { %v4918_v18 = vpop.xlane.xlu0 %4917  ;;  %v4977_v40 = vmul.f32 %v6973_v12, %v9186_v8  ;;  %6982 = vrsqrt.f32 %v4950_v34  ;;  %v4936_v48 = vmul.f32 0.03125, %v4916_v13  ;;  %v5019_v14 = vadd.f32 %v9268_v11, %v4997_v36 }
 0xc49   : > { %v4998_v58 = vmul.f32 %v9259_v39, %v4976_v62  ;;  %6984 = vrsqrt.f32 %v4951_v3  ;;  %v4937_v25 = vmul.f32 0.03125, %v4918_v18  ;;  %v5058_v47 = vadd.f32 %v5018_v31, %v5017_v21 }
 0xc4a   : > { %v6975_v15 = vpop.eup %6974  ;;  %v4999_v30 = vmul.f32 %v9259_v39, %v4977_v40  ;;  %v4952_v10 = vadd.f32 1e-05, %v4936_v48 }
 0xc4b   : > { %v6977_v29 = vpop.eup %6976  ;;  %v5020_v49 = vadd.f32 %v9268_v11, %v4998_v58  ;;  %v4978_v8 = vmul.f32 %v6975_v15, %v9189_v5  ;;  %v4953_v2 = vadd.f32 1e-05, %v4937_v25  ;;  %v4920_v28 = vpop.xlane.xlu1 %4919  ;;  %v5059_v51 = vrot.slane %v5058_v47, 4 }
 0xc4c   : > { %v4922_v53 = vpop.xlane.xlu0 %4921  ;;  %v4979_v6 = vmul.f32 %v6977_v29, %v9198_v16  ;;  %6986 = vrsqrt.f32 %v4952_v10  ;;  %v4938_v23 = vmul.f32 0.03125, %v4920_v28  ;;  %v5021_v50 = vadd.f32 %v9268_v11, %v4999_v30 }
 0xc4d   : > { %v5065_v35 = vadd.f32 %v5020_v49, %v5019_v14  ;;  %v5000_v24 = vmul.f32 %v9259_v39, %v4978_v8  ;;  %6988 = vrsqrt.f32 %v4953_v2  ;;  %v4939_v4 = vmul.f32 0.03125, %v4922_v53 }
 0xc4e   : > { %v6979_v56 = vpop.eup %6978  ;;  %v4954_v45 = vadd.f32 1e-05, %v4938_v23  ;;  %v5001_v43 = vmul.f32 %v9259_v39, %v4979_v6  ;;  %v5060_v9 = vadd.f32 %v5059_v51, %v5058_v47 }
 0xc4f   : > { %v6981_v42 = vpop.eup %6980  ;;  %v5066_v0 = vrot.slane %v5065_v35, 4  ;;  %v5022_v5 = vadd.f32 %v9268_v11, %v5000_v24  ;;  %v4980_v16 = vmul.f32 %v6979_v56, %v9201_v27  ;;  %v4924_v32 = vpop.xlane.xlu1 %4923  ;;  %v4955_v19 = vadd.f32 1e-05, %v4939_v4 }
 0xc50   : > { %v4981_v63 = vmul.f32 %v6981_v42, %v9210_v60  ;;  %6990 = vrsqrt.f32 %v4954_v45  ;;  %v4940_v61 = vmul.f32 0.03125, %v4924_v32  ;;  %v5023_v41 = vadd.f32 %v9268_v11, %v5001_v43 }
 0xc51   : > { %v5072_v52 = vadd.f32 %v5022_v5, %v5021_v50  ;;  %v5002_v38 = vmul.f32 %v9259_v39, %v4980_v16  ;;  %6992 = vrsqrt.f32 %v4955_v19  ;;  %v5067_v20 = vadd.f32 %v5066_v0, %v5065_v35 }
 0xc52   : > { %v6983_v44 = vpop.eup %6982  ;;  %v5003_v27 = vmul.f32 %v9259_v39, %v4981_v63  ;;  %v4956_v55 = vadd.f32 1e-05, %v4940_v61  ;;  %v5061_v21 = vrot.slane %v5060_v9, 2 }
 0xc53   : > { %v6985_v57 = vpop.eup %6984  ;;  %v5073_v26 = vrot.slane %v5072_v52, 4  ;;  %v5024_v46 = vadd.f32 %v9268_v11, %v5002_v38  ;;  %v4982_v60 = vmul.f32 %v6983_v44, %v9213_v59  ;;  %v5068_v48 = vrot.slane %v5067_v20, 2 }
 0xc54   : > { %v4983_v22 = vmul.f32 %v6985_v57, %v9222_v7  ;;  %6994 = vrsqrt.f32 %v4956_v55  ;;  %v5025_v31 = vadd.f32 %v9268_v11, %v5003_v27  ;;  %v5062_v47 = vadd.f32 %v5061_v21, %v5060_v9 }
 0xc55   : > { %v5079_v34 = vadd.f32 %v5024_v46, %v5023_v41  ;;  %v5074_v12 = vadd.f32 %v5073_v26, %v5072_v52  ;;  %v5004_v36 = vmul.f32 %v9259_v39, %v4982_v60  ;;  %v5069_v28 = vadd.f32 %v5068_v48, %v5067_v20 }
 0xc56   : > { %v6987_v3 = vpop.eup %6986  ;;  %v5005_v62 = vmul.f32 %v9259_v39, %v4983_v22  ;;  %v5063_v63 = vrot.slane %v5062_v47, 1 }
 0xc57   : > { %v6989_v13 = vpop.eup %6988  ;;  %v5080_v18 = vrot.slane %v5079_v34, 4  ;;  %v4984_v40 = vmul.f32 %v6987_v3, %v9225_v54  ;;  %v5026_v59 = vadd.f32 %v9268_v11, %v5004_v36  ;;  %v5075_v30 = vrot.slane %v5074_v12, 2 }
 0xc58   : > { %v4985_v7 = vmul.f32 %v6989_v13, %v9234_v37  ;;  %v5027_v29 = vadd.f32 %v9268_v11, %v5005_v62  ;;  %v5070_v0 = vrot.slane %v5069_v28, 1  ;;  %v5064_v27 = vadd.f32 %v5063_v63, %v5062_v47 }
 0xc59   : > { %v5081_v58 = vadd.f32 %v5080_v18, %v5079_v34  ;;  %v5006_v25 = vmul.f32 %v9259_v39, %v4984_v40  ;;  %v5086_v10 = vadd.f32 %v5026_v59, %v5025_v31  ;;  %v5076_v35 = vadd.f32 %v5075_v30, %v5074_v12 }
 0xc5a   : > { %v6991_v15 = vpop.eup %6990  ;;  %v5007_v54 = vmul.f32 %v9259_v39, %v4985_v7  ;;  %v5071_v61 = vadd.f32 %v5070_v0, %v5069_v28  ;;  %v5114_v40 = vmul.f32 0.0625, %v5064_v27 }
 0xc5b   : > { %v5082_v14 = vrot.slane %v5081_v58, 2  ;;  %v5028_v49 = vadd.f32 %v9268_v11, %v5006_v25  ;;  %v4986_v8 = vmul.f32 %v6991_v15, %v9237_v1  ;;  %v6993_v2 = vpop.eup %6992  ;;  %v5087_v53 = vrot.slane %v5086_v10, 4 }
 0xc5c   : > { %v4987_v23 = vmul.f32 %v6993_v2, %v9244_v17  ;;  %v5029_v50 = vadd.f32 %v9268_v11, %v5007_v54  ;;  %v5077_v17 = vrot.slane %v5076_v35, 1  ;;  %v5115_v36 = vmul.f32 0.0625, %v5071_v61 }
 0xc5d   : > { %v5093_v37 = vadd.f32 %v5028_v49, %v5027_v29  ;;  %v5008_v6 = vmul.f32 %v9259_v39, %v4986_v8  ;;  %v5088_v24 = vadd.f32 %v5087_v53, %v5086_v10  ;;  %v5083_v4 = vadd.f32 %v5082_v14, %v5081_v58 }
 0xc5e   : > { %v6995_v42 = vpop.eup %6994  ;;  %v5009_v5 = vmul.f32 %v9259_v39, %v4987_v23  ;;  %v5123_v58 = vpack.c.bf16 %v5115_v36, %v5115_v36  ;;  %v5122_v30 = vpack.c.bf16 %v5114_v40, %v5114_v40 }
 0xc5f   : > { %v5094_v56 = vrot.slane %v5093_v37, 4  ;;  %v5030_v45 = vadd.f32 %v9268_v11, %v5008_v6  ;;  %v5089_v1 = vrot.slane %v5088_v24, 2  ;;  %v4988_v43 = vmul.f32 %v6995_v42, %v9247_v33 }
 0xc60   : > { %v5084_v52 = vrot.slane %v5083_v4, 1  ;;  %v5031_v20 = vadd.f32 %v9268_v11, %v5009_v5  ;;  %v5078_v33 = vadd.f32 %v5077_v17, %v5076_v35  ;;  %v5162_v54 = vunpack.c.l.b16 %v5123_v58 }
 0xc61   : > { %v5095_v16 = vadd.f32 %v5094_v56, %v5093_v37  ;;  %v5100_v32 = vadd.f32 %v5030_v45, %v5029_v50  ;;  %v5090_v19 = vadd.f32 %v5089_v1, %v5088_v24  ;;  %v5010_v51 = vmul.f32 %v9259_v39, %v4988_v43 }
 0xc62   : > { %v5085_v60 = vadd.f32 %v5084_v52, %v5083_v4  ;;  %v5116_v62 = vmul.f32 0.0625, %v5078_v33  ;;  %v5161_v53 = vunpack.c.l.b16 %v5122_v30 }
 0xc63   : > { %v5096_v38 = vrot.slane %v5095_v16, 2  ;;  %v5101_v44 = vrot.slane %v5100_v32, 4  ;;  %v5091_v57 = vrot.slane %v5090_v19, 1  ;;  %v5032_v26 = vadd.f32 %v9268_v11, %v5010_v51 }
 0xc64   : > { %v5117_v48 = vmul.f32 0.0625, %v5085_v60  ;;  %v5124_v25 = vpack.c.bf16 %v5116_v62, %v5116_v62  ;;  %v5170_v35 = vsel %vm5169_vm3, %v5162_v54, %v5161_v53 }
 0xc65   : > { %v5097_v41 = vadd.f32 %v5096_v38, %v5095_v16  ;;  %v5102_v46 = vadd.f32 %v5101_v44, %v5100_v32  ;;  %v5107_v9 = vadd.f32 %v5032_v26, %v5031_v20  ;;  %v5092_v34 = vadd.f32 %v5091_v57, %v5090_v19  ;;  %v5635_v16 = vld [vmem:[%s9453_s10] ss:$0 sm:$0xff] }
 0xc66   : > { %v5125_v10 = vpack.c.bf16 %v5117_v48, %v5117_v48  ;;  %v5163_v2 = vunpack.c.l.b16 %v5124_v25 }
 0xc67   : > { %v5098_v22 = vrot.slane %v5097_v41, 1  ;;  %v5103_v55 = vrot.slane %v5102_v46, 2  ;;  %v5108_v12 = vrot.slane %v5107_v9, 4  ;;  %v5118_v31 = vmul.f32 0.0625, %v5092_v34 }
 0xc68   : > { %v5164_v37 = vunpack.c.l.b16 %v5125_v10  ;;  %v5172_v56 = vsel %vm5171_vm4, %v5163_v2, %v5170_v35 }
 0xc69   : > { %v5099_v3 = vadd.f32 %v5098_v22, %v5097_v41  ;;  %v5104_v39 = vadd.f32 %v5103_v55, %v5102_v46  ;;  %v5109_v18 = vadd.f32 %v5108_v12, %v5107_v9  ;;  %v5126_v29 = vpack.c.bf16 %v5118_v31, %v5118_v31 }
 0xc6a   : > { %v5174_v45 = vsel %vm5173_vm5, %v5164_v37, %v5172_v56 }
 0xc6b   : > { %v5105_v13 = vrot.slane %v5104_v39, 1  ;;  %v5110_v59 = vrot.slane %v5109_v18, 2  ;;  %v5119_v7 = vmul.f32 0.0625, %v5099_v3  ;;  %v5165_v6 = vunpack.c.l.b16 %v5126_v29 }
 0xc6d   : > { %v5106_v11 = vadd.f32 %v5105_v13, %v5104_v39  ;;  %v5111_v15 = vadd.f32 %v5110_v59, %v5109_v18  ;;  %v5127_v49 = vpack.c.bf16 %v5119_v7, %v5119_v7  ;;  %v5176_v4 = vsel %vm5175_vm6, %v5165_v6, %v5174_v45 }
 0xc6f   : > { %v5120_v21 = vmul.f32 0.0625, %v5106_v11  ;;  %v5112_v14 = vrot.slane %v5111_v15, 1  ;;  %v5166_v47 = vunpack.c.l.b16 %v5127_v49 }
 0xc71   : > { %v5128_v8 = vpack.c.bf16 %v5120_v21, %v5120_v21  ;;  %v5113_v28 = vadd.f32 %v5112_v14, %v5111_v15  ;;  %v5178_v0 = vsel %vm5177_vm7, %v5166_v47, %v5176_v4 }
 0xc73   : > { %v5121_v23 = vmul.f32 0.0625, %v5113_v28  ;;  %v5167_v24 = vunpack.c.l.b16 %v5128_v8 }
 0xc75   : > { %v5129_v50 = vpack.c.bf16 %v5121_v23, %v5121_v23  ;;  %v5180_v1 = vsel %vm5179_vm8, %v5167_v24, %v5178_v0 }
 0xc77   : > { %v5168_v42 = vunpack.c.l.b16 %v5129_v50 }
 0xc79   : > { %v5182_v5 = vsel %vm5181_vm9, %v5168_v42, %v5180_v1 }
 0xc7a   : > { %v5183_v43 = vpack.c.b16 %v5182_v5, %v5182_v5 }
 0xc7c   : > { %6233 = vmatmul.mubr.bf16.vlgmr.msra.gmra.mrb[0].mxu0 %v5183_v43 }
 0xd4f   : > { %v5267_v32 = vpop.f32.mrb[0].mxu0 }
 0xd50   : > { %v5268_v63 = vadd.f32 %v5635_v16, %v5267_v32  ;;  %v6234_v17 = vpop.f32.mrb[1].mxu0 }
 0xd51   : > { %v5270_v19 = vpop.f32.mrb[2].mxu0 }
 0xd52   : > { %5273 = vst [vmem:[#allocation12] sm:$0xff] %v5268_v63  ;;  %v6235_v51 = vpop.f32.mrb[3].mxu0 }
 0xd53 PF: > { %p6316_p13 = scmp.eq.s32.totalorder %s7372_s2, 1  ;;  %s7242_s5 = smov [#allocation12]  }
 0xd54   : > { %s5283_s6 = sshll.u32 %s7242_s5, 4  ;;  %s5284_s6 = int_to_ptr.vmem [resolvable:$true] %s5283_s6 }
 0xd55   : > { %s7138_s7 = scalar_lea.vmem %s5284_s6, 128  ;;  %p7145_p0 = scmp.lt.s32.totalorder %s5284_s6, %s5284_s6 }
 0xd56   : > { %p7139_p2 = scmp.ne.s32.totalorder %s5284_s6, %s7138_s7  ;;  %p7146_p6 = scmp.lt.s32.totalorder %s7138_s7, %s7138_s7 }
 0xd58   : > { %p7140_p3 = pnand %p7139_p2, %p6316_p13  ;;  %p7147_p9 = por %p7146_p6, %p7145_p0 }
 0xd5a   : > { %p7141_p12 = pneg %p7140_p3 }
 0xd5c   : > { %p7148_p1 = pnand %p7147_p9, %p7141_p12 }
 0xd5e   : > { %7151 = shalt.err (!%p7148_p1)
}
 0xd5f   : > { %s9454_s29 = sld [smem:[#allocation41_spill]] }
 0xd65   : > { %s7152_s25 = scalar_lea.hbm %s9454_s29, 128 }
 0xd66   : > { %p7153_p7 = scmp.ne.s32.totalorder %s9454_s29, %s7152_s25  ;;  %p7158_p8 = scmp.lt.u32.totalorder %s7152_s25, %s9454_s29 }
 0xd68   : > { %p7154_p4 = pnand %p7153_p7, %p6316_p13 }
 0xd6a   : > { %p7155_p5 = pneg %p7154_p4 }
 0xd6c   : > { %p7160_p10 = pnand %p7158_p8, %p7155_p5 }
 0xd6e   : > { %7163 = shalt.err (!%p7160_p10)
}
 0xd6f   : > { %6287 = dma.vmem_to_hbm [thread:$0]  (%p6316_p13), %s5284_s6, 128, %s9454_s29, [#allocation5]  }
 0xd70   : > { %7205 = dma.done.wait (%p6316_p13), [#allocation5], 128  }
 0xd71   : > { %7207 = vsyncadd (%p6316_p13), [#allocation5], 4294967168 }
 0xd72 PF: > { %s35_s22 = sadd.s32 1, %s7230_s22   ;;  %s9455_s0 = sld [smem:[#allocation18_spill]] }
 0xd73   : > { %p32_p11 = scmp.ge.s32.totalorder %s35_s22, 4   ;;  %s9456_s30 = sld [smem:[#allocation19_spill]] }
 0xd74   : > { %s9457_s20 = sld [smem:[#allocation22_spill]]  ;;  %s9458_s21 = sld [smem:[#allocation20_spill]] }
 0xd75   : > { %s9459_s1 = sld [smem:[#allocation21_spill]]  ;;  %34 = sbr.rel (!%p32_p11) target bundleno = 27 (0x1b), region = 193 }
 0xd7c   :  { %5296 = vsyncpa [#allocation4], 1 }
 0xd7d   :  { %5298 = vsyncpa [#allocation4 + $0x1], 1 }
 0xd7e   :  { %5299 = vsyncpa [#allocation7], 1 }
 0xd7f   :  { %5300 = vsyncpa [#allocation10], 1 }
 0xd80   :  { %5302 = vsyncpa [#allocation10 + $0x1], 1 }
 0xd81   :  { %5303 = vsyncpa [#allocation5], 1 }
 0xd82   :  { %5305 = vsyncpa [#allocation5 + $0x1], 1 }

</bundles_post_ra>
